<compile_context>
chip_gen: v7x
topology: tpu7x:2x2x1
jax: 0.10.0
libtpu: 0.0.40
codegen_flags: <defaults>
</compile_context>

<pallas_src>
import functools

import jax
import jax.numpy as jnp
from jax.experimental import pallas as pl
from jax.experimental.pallas import tpu as pltpu

EMBEDDING_DIM = 64
NUM_EMBEDDINGS = 512
BETA = 0.25
_VMEM_LIMIT = 32 * 1024 * 1024

# Tap tables: (phase_index, dy, dx) per tap, matching the stacked-weight order.
# Encoder stride-2 conv: phase p = (ky%2)*2 + (kx%2), offset (ky//2, kx//2).
ENC_TAPS = tuple(((ky % 2) * 2 + (kx % 2), ky // 2, kx // 2)
                 for ky in range(3) for kx in range(3))
# Decoder sub-pixel transposed conv: single phase, 2x2 unit-offset window.
DEC_TAPS = tuple((0, dy, dx) for dy in (0, 1) for dx in (0, 1))


def _round_up(x, m):
    return (x + m - 1) // m * m


# --------------------------------------------------------------------------
# In-kernel VMEM-local im2col (shared by the conv and the fused conv+VQ kernel)
# --------------------------------------------------------------------------

def _im2col(x_ref, taps, ho, wo):
    """Stack the shifted tap windows along the contraction dim (lanes)."""
    cin = x_ref.shape[-1]
    m = ho * wo
    cols = [x_ref[p, 0, dy:dy + ho, dx:dx + wo, :].reshape(m, cin)  # aligned collapse (wo % 8 == 0)
            for (p, dy, dx) in taps]
    return cols


def _conv_kernel(x_ref, w_ref, b_ref, o_ref, *, taps, ho, wo, act):
    """out = act( im2col(x) @ W + b ) — ONE MXU matmul per grid step.

    x_ref: (P, 1, Hq, Wq, Cin)  phase-decomposed padded NHWC input (bf16, VMEM resident)
    w_ref: (T*Cin, Cout)        stacked-K weights (bf16, resident across the grid)
    b_ref: (1, Cout)            f32 bias
    o_ref: (1, ho*wo, Cout)     spatially flattened output tile
    """
    cin = x_ref.shape[-1]
    cout = o_ref.shape[-1]
    m = ho * wo
    cols = _im2col(x_ref, taps, ho, wo)
    if cin > 1:
        # Single stacked-K matmul: bf16 operands, f32 accumulation on the MXU.
        x_all = jnp.concatenate(cols, axis=1)                       # (m, T*Cin)
        y = jnp.dot(x_all, w_ref[...], preferred_element_type=jnp.float32)
    else:
        # Cin == 1 (conv1): K would be T=9 -> VPU broadcast-MAC instead of an
        # underfilled MXU matmul.
        # TODO(synk): lane-dense relayout of this Cin=1 input (review item 4).
        y = jnp.zeros((m, cout), jnp.float32)
        for t, col in enumerate(cols):
            wt = w_ref[t:t + 1, :].astype(jnp.float32)              # (1, Cout)
            y = y + col.astype(jnp.float32) * wt
    y = y + b_ref[...]
    if act == "relu":
        y = jnp.maximum(y, 0.0)
    elif act == "sigmoid":
        y = jax.nn.sigmoid(y)
    o_ref[...] = y.reshape(1, m, cout).astype(o_ref.dtype)


def conv_taps(phases, w_flat, bias, taps, act, out_dtype):
    """Fused tap-stacked conv.

    phases: (P, B, Hq, Wq, Cin) bf16, valid output spatial size (Hq-1, Wq-1).
    w_flat: (T*Cin, Cout) bf16; bias: (Cout,) f32.
    Returns (B, Hq-1, Wq-1, Cout) in `out_dtype`.
    """
    P, B, Hq, Wq, Cin = phases.shape
    Kt, Cout = w_flat.shape
    ho, wo = Hq - 1, Wq - 1
    # Pad the width dim so the in-kernel (ho, wo_pad, Cin) -> (ho*wo_pad, Cin)
    # flatten is a tile-aligned collapse; extra columns (conv over zeros) are
    # sliced off afterwards.
    wo_pad = _round_up(wo, 8)
    wq2 = wo_pad + 1
    if wq2 > Wq:
        phases = jnp.pad(phases, ((0, 0), (0, 0), (0, 0), (0, wq2 - Wq), (0, 0)))
    m = ho * wo_pad

    kernel = functools.partial(_conv_kernel, taps=tuple(taps), ho=ho, wo=wo_pad, act=act)
    out = pl.pallas_call(
        kernel,
        out_shape=jax.ShapeDtypeStruct((B, m, Cout), out_dtype),
        grid=(B,),
        in_specs=[
            pl.BlockSpec((P, 1, Hq, wq2, Cin), lambda b: (0, b, 0, 0, 0)),
            pl.BlockSpec((Kt, Cout), lambda b: (0, 0)),     # resident stacked weights
            pl.BlockSpec((1, Cout), lambda b: (0, 0)),      # resident bias
        ],
        out_specs=pl.BlockSpec((1, m, Cout), lambda b: (b, 0, 0)),
        compiler_params=pltpu.CompilerParams(
            dimension_semantics=("parallel",),              # megacore / v7x 2-TC
            vmem_limit_bytes=_VMEM_LIMIT),
    )(phases, w_flat, bias.reshape(1, Cout))
    return out.reshape(B, ho, wo_pad, Cout)[:, :, :wo, :]


# --------------------------------------------------------------------------
# Fused encoder-conv2 + vector-quantizer kernel (z never leaves VMEM)
# --------------------------------------------------------------------------

def _conv_vq_kernel(x_ref, w_ref, b_ref, et_ref, esq_ref, idx_ref, sq_ref,
                    *, taps, ho, wo):
    """z = relu(im2col(x) @ W + b); nearest-codebook index + per-row ||z-e_idx||^2."""
    m = ho * wo
    x_all = jnp.concatenate(_im2col(x_ref, taps, ho, wo), axis=1)   # (m, 9*Cin) bf16
    z = jnp.dot(x_all, w_ref[...], preferred_element_type=jnp.float32) + b_ref[...]
    z = jnp.maximum(z, 0.0)                                         # ReLU, z stays in VMEM

    # argmin_k ||z - e_k||^2 == argmin_k (||e_k||^2 - 2 z.e_k); ||e_k||^2 precomputed,
    # cross term on the MXU in bf16 against the pre-transposed resident codebook.
    cross = jnp.dot(z.astype(jnp.bfloat16), et_ref[...],
                    preferred_element_type=jnp.float32)             # (m, K)
    score = esq_ref[...] - 2.0 * cross
    min_s = jnp.min(score, axis=1, keepdims=True)                   # (m, 1)
    k = score.shape[1]
    iota_k = jax.lax.broadcasted_iota(jnp.int32, score.shape, 1)
    idx = jnp.min(jnp.where(score <= min_s, iota_k, k), axis=1, keepdims=True)

    # ||z - e_idx||^2 = ||z||^2 + min_score  (no f32 one-hot gather matmul).
    zsq = jnp.sum(z * z, axis=1, keepdims=True)
    idx_ref[...] = idx.reshape(1, m, 1)
    sq_ref[...] = (zsq + min_s).reshape(1, m, 1)


def conv2_vq(phases, w_flat, bias, e_t, e_sq, taps):
    """Fused encoder conv2 + VQ. Returns (indices (B,ho,wo) i32, sq (B,ho,wo) f32)."""
    P, B, Hq, Wq, Cin = phases.shape
    Kt, Cout = w_flat.shape
    D, K = e_t.shape
    ho, wo = Hq - 1, Wq - 1
    wo_pad = _round_up(wo, 8)
    wq2 = wo_pad + 1
    if wq2 > Wq:
        phases = jnp.pad(phases, ((0, 0), (0, 0), (0, 0), (0, wq2 - Wq), (0, 0)))
    m = ho * wo_pad

    kernel = functools.partial(_conv_vq_kernel, taps=tuple(taps), ho=ho, wo=wo_pad)
    idx, sq = pl.pallas_call(
        kernel,
        out_shape=(jax.ShapeDtypeStruct((B, m, 1), jnp.int32),
                   jax.ShapeDtypeStruct((B, m, 1), jnp.float32)),
        grid=(B,),
        in_specs=[
            pl.BlockSpec((P, 1, Hq, wq2, Cin), lambda b: (0, b, 0, 0, 0)),
            pl.BlockSpec((Kt, Cout), lambda b: (0, 0)),     # resident stacked conv2 weights
            pl.BlockSpec((1, Cout), lambda b: (0, 0)),      # resident bias
            pl.BlockSpec((D, K), lambda b: (0, 0)),         # resident bf16 codebook (D, K)
            pl.BlockSpec((1, K), lambda b: (0, 0)),         # resident precomputed ||e||^2
        ],
        out_specs=(pl.BlockSpec((1, m, 1), lambda b: (b, 0, 0)),
                   pl.BlockSpec((1, m, 1), lambda b: (b, 0, 0))),
        compiler_params=pltpu.CompilerParams(
            dimension_semantics=("parallel",),
            vmem_limit_bytes=_VMEM_LIMIT),
    )(phases, w_flat, bias.reshape(1, Cout), e_t, e_sq)

    idx = idx.reshape(B, ho, wo_pad)[:, :, :wo]
    sq = sq.reshape(B, ho, wo_pad)[:, :, :wo]
    return idx, sq


# --------------------------------------------------------------------------
# Plain-JAX glue: phase decomposition, sub-pixel merge, weight repacking
# --------------------------------------------------------------------------

def stride2_phases(x):
    """NHWC x -> 4 spatial parity phases of the pad-1 input: (4, B, H/2+1, W/2+1, C)."""
    xp = jnp.pad(x, ((0, 0), (1, 1), (1, 1), (0, 0)))
    return jnp.stack([xp[:, a::2, b::2, :] for a in (0, 1) for b in (0, 1)], axis=0)


def subpixel_phase(x):
    """NHWC x -> single-phase operand for the sub-pixel transposed conv: (1, B, H+1, W+1, C)."""
    return jnp.pad(x, ((0, 0), (0, 1), (0, 1), (0, 0)))[None]


def subpixel_merge(y, cout):
    """(B, H, W, 4*cout) phase-stacked channels -> (B, 2H, 2W, cout)."""
    B, H, W, _ = y.shape
    y = y.reshape(B, H, W, 2, 2, cout)
    y = jnp.transpose(y, (0, 1, 3, 2, 4, 5))
    return y.reshape(B, 2 * H, 2 * W, cout)


def conv_w_to_taps(w):
    """PyTorch Conv2d weight (Cout, Cin, 3, 3) -> (9, Cin, Cout), tap order ky*3+kx."""
    cout, cin = w.shape[0], w.shape[1]
    return jnp.transpose(w, (2, 3, 1, 0)).reshape(9, cin, cout)


def convT_w_to_subpixel_taps(w):
    """PyTorch ConvTranspose2d weight (Cin, Cout, 3, 3) -> (4, Cin, 4*Cout) sub-pixel taps.

    Output channels grouped as [phase(0,0) | phase(0,1) | phase(1,0) | phase(1,1)];
    output pixel (2i+a, 2j+b) = phase (a, b) value at (i, j).
    """
    cin, cout = w.shape[0], w.shape[1]
    zeros = jnp.zeros((cin, cout), w.dtype)

    def k_of(par, d):
        # flipped-kernel index contributing to output parity `par` from input offset `d`
        if par == 0:
            return 1 if d == 0 else None
        return 0 if d == 0 else 2

    taps = []
    for dy in (0, 1):
        for dx in (0, 1):
            blocks = []
            for a in (0, 1):
                for b in (0, 1):
                    ky, kx = k_of(a, dy), k_of(b, dx)
                    if ky is None or kx is None:
                        blocks.append(zeros)
                    else:
                        # flipped-kernel weight: wf[ky,kx][cin,cout] = w[cin,cout,2-ky,2-kx]
                        blocks.append(w[:, :, 2 - ky, 2 - kx])
            taps.append(jnp.concatenate(blocks, axis=1))   # (Cin, 4*Cout)
    return jnp.stack(taps, axis=0)                         # (4, Cin, 4*Cout)


def init_params(key):
    ks = jax.random.split(key, 5)
    scale = 0.1
    w1 = scale * jax.random.normal(ks[0], (32, 1, 3, 3), jnp.float32)               # Conv2d(1, 32)
    b1 = jnp.zeros((32,), jnp.float32)
    w2 = scale * jax.random.normal(ks[1], (EMBEDDING_DIM, 32, 3, 3), jnp.float32)   # Conv2d(32, D)
    b2 = jnp.zeros((EMBEDDING_DIM,), jnp.float32)
    emb = jax.random.normal(ks[2], (NUM_EMBEDDINGS, EMBEDDING_DIM), jnp.float32)    # codebook
    wd1 = scale * jax.random.normal(ks[3], (EMBEDDING_DIM, 32, 3, 3), jnp.float32)  # ConvT(D, 32)
    bd1 = jnp.zeros((32,), jnp.float32)
    wd2 = scale * jax.random.normal(ks[4], (32, 1, 3, 3), jnp.float32)              # ConvT(32, 1)
    bd2 = jnp.zeros((1,), jnp.float32)
    bf16 = jnp.bfloat16
    return {
        # Stacked-K (T*Cin, Cout) weights, pre-cast to bf16 once at init.
        "w1": conv_w_to_taps(w1).reshape(9 * 1, 32).astype(bf16),
        "b1": b1,
        "w2": conv_w_to_taps(w2).reshape(9 * 32, EMBEDDING_DIM).astype(bf16),
        "b2": b2,
        "wd1": convT_w_to_subpixel_taps(wd1).reshape(4 * EMBEDDING_DIM, 4 * 32).astype(bf16),
        "bd1": jnp.tile(bd1, 4),
        "wd2": convT_w_to_subpixel_taps(wd2).reshape(4 * 32, 4 * 1).astype(bf16),
        "bd2": jnp.tile(bd2, 4),
        # Codebook: pre-transposed bf16 copy for the in-kernel distance matmul,
        # precomputed f32 ||e||^2, bf16 row-major copy for the outside gather.
        "e_t": jnp.transpose(emb).astype(bf16),                              # (D, K)
        "e_sq": jnp.sum(emb * emb, axis=1).reshape(1, NUM_EMBEDDINGS),       # (1, K) f32
        "emb_bf16": emb.astype(bf16),
    }


# --------------------------------------------------------------------------
# VQVAE forward
# --------------------------------------------------------------------------

def vqvae_forward(params, x_nchw):
    # NCHW -> NHWC, bf16 activations throughout (f32 only for loss / final output).
    x = jnp.transpose(x_nchw, (0, 2, 3, 1)).astype(jnp.bfloat16)

    # Encoder: Conv2d(1, 32, k3, s2, p1) + ReLU   (Cin=1 VPU broadcast-MAC path)
    h = conv_taps(stride2_phases(x), params["w1"], params["b1"], ENC_TAPS,
                  act="relu", out_dtype=jnp.bfloat16)

    # Encoder Conv2d(32, D, k3, s2, p1) + ReLU fused with the VectorQuantizer.
    idx, sq = conv2_vq(stride2_phases(h), params["w2"], params["b2"],
                       params["e_t"], params["e_sq"], ENC_TAPS)
    B, Ho, Wo = idx.shape
    indices = idx.reshape(-1)
    # vq_loss forward value = mse(q, z) + beta * mse(z, q) = (1 + beta) * mse(z, q)
    vq_loss = (1.0 + BETA) * jnp.sum(sq) / (sq.size * EMBEDDING_DIM)
    # Straight-through forward value == the quantized codes; tiny gather outside.
    # TODO(synk): forward-only — the straight-through / stop-gradient structure is
    #             not represented, so jax.grad of this function is not meaningful.
    q = jnp.take(params["emb_bf16"], indices, axis=0).reshape(B, Ho, Wo, EMBEDDING_DIM)

    # Decoder: ConvTranspose2d(D, 32, k3, s2, p1, op1) + ReLU  (sub-pixel, K=256, N=128)
    h = conv_taps(subpixel_phase(q), params["wd1"], params["bd1"], DEC_TAPS,
                  act="relu", out_dtype=jnp.bfloat16)
    h = subpixel_merge(h, 32)
    # Decoder: ConvTranspose2d(32, 1, k3, s2, p1, op1) + Sigmoid (sub-pixel, K=128, N=4)
    xr = conv_taps(subpixel_phase(h), params["wd2"], params["bd2"], DEC_TAPS,
                   act="sigmoid", out_dtype=jnp.float32)
    xr = subpixel_merge(xr, 1)

    return jnp.transpose(xr, (0, 3, 1, 2)), vq_loss, indices


# --------------------------------------------------------------------------
# Main
# --------------------------------------------------------------------------

if __name__ == "__main__":
    key = jax.random.PRNGKey(0)
    pkey, xkey = jax.random.split(key)
    params = init_params(pkey)

    # Small image batch: B=2, 1 channel, 16x16 spatial (NCHW like PyTorch).
    x = jax.random.normal(xkey, (2, 1, 16, 16), jnp.float32)

    fwd = jax.jit(vqvae_forward)
    x_recon, vq_loss, indices = fwd(params, x)
    jax.block_until_ready((x_recon, vq_loss, indices))

    assert x_recon.shape == (2, 1, 16, 16), x_recon.shape
    assert indices.shape == (2 * 4 * 4,), indices.shape
    assert vq_loss.shape == (), vq_loss.shape
    assert bool(jnp.all(jnp.isfinite(x_recon)))
    assert bool(jnp.all((x_recon >= 0.0) & (x_recon <= 1.0)))  # sigmoid output
    assert bool(jnp.all((indices >= 0) & (indices < NUM_EMBEDDINGS)))
    assert bool(jnp.isfinite(vq_loss))

    # TODO(synk): PyTorch argmin returns int64 indices; int32 is used here.
    print("KERNEL_OK")
</pallas_src>

<mosaic_0001>
module attributes {stable_mosaic.version = 11 : i64} {
  func.func @_conv_kernel(%arg0: i32, %arg1: memref<4x1x9x9x1xbf16, #tpu.memory_space<vmem>>, %arg2: memref<9x32xbf16, #tpu.memory_space<vmem>>, %arg3: memref<1x32xf32, #tpu.memory_space<vmem>>, %arg4: memref<1x64x32xbf16, #tpu.memory_space<vmem>>) attributes {dimension_semantics = [#tpu.dimension_semantics<parallel>], iteration_bounds = array<i64: 2>, scalar_prefetch = 0 : i64, scratch_operands = 0 : i64, tpu.core_type = #tpu.core_type<tc>, window_params = [{transform_indices = @transform_0, window_bounds = array<i64: 4, 1, 9, 9, 1>}, {pipeline_mode = #tpu.pipeline_mode<synchronous>, transform_indices = @transform_1, window_bounds = array<i64: 9, 32>}, {pipeline_mode = #tpu.pipeline_mode<synchronous>, transform_indices = @transform_2, window_bounds = array<i64: 1, 32>}, {transform_indices = @transform_3, window_bounds = array<i64: 1, 64, 32>}]} {
    %c0 = arith.constant 0 : index
    %c0_0 = arith.constant 0 : index
    %c0_1 = arith.constant 0 : index
    %c0_2 = arith.constant 0 : index
    %c0_3 = arith.constant 0 : index
    %0 = vector.load %arg1[%c0, %c0_0, %c0_1, %c0_2, %c0_3] : memref<4x1x9x9x1xbf16, #tpu.memory_space<vmem>>, vector<1x1x8x8x1xbf16>
    %1 = vector.shape_cast %0 : vector<1x1x8x8x1xbf16> to vector<8x8x1xbf16>
    %2 = vector.shape_cast %1 : vector<8x8x1xbf16> to vector<64x1xbf16>
    %c1 = arith.constant 1 : index
    %c0_4 = arith.constant 0 : index
    %c0_5 = arith.constant 0 : index
    %c0_6 = arith.constant 0 : index
    %c0_7 = arith.constant 0 : index
    %3 = vector.load %arg1[%c1, %c0_4, %c0_5, %c0_6, %c0_7] : memref<4x1x9x9x1xbf16, #tpu.memory_space<vmem>>, vector<1x1x8x8x1xbf16>
    %4 = vector.shape_cast %3 : vector<1x1x8x8x1xbf16> to vector<8x8x1xbf16>
    %5 = vector.shape_cast %4 : vector<8x8x1xbf16> to vector<64x1xbf16>
    %c0_8 = arith.constant 0 : index
    %c0_9 = arith.constant 0 : index
    %c0_10 = arith.constant 0 : index
    %c1_11 = arith.constant 1 : index
    %c0_12 = arith.constant 0 : index
    %6 = vector.load %arg1[%c0_8, %c0_9, %c0_10, %c1_11, %c0_12] : memref<4x1x9x9x1xbf16, #tpu.memory_space<vmem>>, vector<1x1x8x8x1xbf16>
    %7 = vector.shape_cast %6 : vector<1x1x8x8x1xbf16> to vector<8x8x1xbf16>
    %8 = vector.shape_cast %7 : vector<8x8x1xbf16> to vector<64x1xbf16>
    %c2 = arith.constant 2 : index
    %c0_13 = arith.constant 0 : index
    %c0_14 = arith.constant 0 : index
    %c0_15 = arith.constant 0 : index
    %c0_16 = arith.constant 0 : index
    %9 = vector.load %arg1[%c2, %c0_13, %c0_14, %c0_15, %c0_16] : memref<4x1x9x9x1xbf16, #tpu.memory_space<vmem>>, vector<1x1x8x8x1xbf16>
    %10 = vector.shape_cast %9 : vector<1x1x8x8x1xbf16> to vector<8x8x1xbf16>
    %11 = vector.shape_cast %10 : vector<8x8x1xbf16> to vector<64x1xbf16>
    %c3 = arith.constant 3 : index
    %c0_17 = arith.constant 0 : index
    %c0_18 = arith.constant 0 : index
    %c0_19 = arith.constant 0 : index
    %c0_20 = arith.constant 0 : index
    %12 = vector.load %arg1[%c3, %c0_17, %c0_18, %c0_19, %c0_20] : memref<4x1x9x9x1xbf16, #tpu.memory_space<vmem>>, vector<1x1x8x8x1xbf16>
    %13 = vector.shape_cast %12 : vector<1x1x8x8x1xbf16> to vector<8x8x1xbf16>
    %14 = vector.shape_cast %13 : vector<8x8x1xbf16> to vector<64x1xbf16>
    %c2_21 = arith.constant 2 : index
    %c0_22 = arith.constant 0 : index
    %c0_23 = arith.constant 0 : index
    %c1_24 = arith.constant 1 : index
    %c0_25 = arith.constant 0 : index
    %15 = vector.load %arg1[%c2_21, %c0_22, %c0_23, %c1_24, %c0_25] : memref<4x1x9x9x1xbf16, #tpu.memory_space<vmem>>, vector<1x1x8x8x1xbf16>
    %16 = vector.shape_cast %15 : vector<1x1x8x8x1xbf16> to vector<8x8x1xbf16>
    %17 = vector.shape_cast %16 : vector<8x8x1xbf16> to vector<64x1xbf16>
    %c0_26 = arith.constant 0 : index
    %c0_27 = arith.constant 0 : index
    %c1_28 = arith.constant 1 : index
    %c0_29 = arith.constant 0 : index
    %c0_30 = arith.constant 0 : index
    %18 = vector.load %arg1[%c0_26, %c0_27, %c1_28, %c0_29, %c0_30] : memref<4x1x9x9x1xbf16, #tpu.memory_space<vmem>>, vector<1x1x8x8x1xbf16>
    %19 = vector.shape_cast %18 : vector<1x1x8x8x1xbf16> to vector<8x8x1xbf16>
    %20 = vector.shape_cast %19 : vector<8x8x1xbf16> to vector<64x1xbf16>
    %c1_31 = arith.constant 1 : index
    %c0_32 = arith.constant 0 : index
    %c1_33 = arith.constant 1 : index
    %c0_34 = arith.constant 0 : index
    %c0_35 = arith.constant 0 : index
    %21 = vector.load %arg1[%c1_31, %c0_32, %c1_33, %c0_34, %c0_35] : memref<4x1x9x9x1xbf16, #tpu.memory_space<vmem>>, vector<1x1x8x8x1xbf16>
    %22 = vector.shape_cast %21 : vector<1x1x8x8x1xbf16> to vector<8x8x1xbf16>
    %23 = vector.shape_cast %22 : vector<8x8x1xbf16> to vector<64x1xbf16>
    %c0_36 = arith.constant 0 : index
    %c0_37 = arith.constant 0 : index
    %c1_38 = arith.constant 1 : index
    %c1_39 = arith.constant 1 : index
    %c0_40 = arith.constant 0 : index
    %24 = vector.load %arg1[%c0_36, %c0_37, %c1_38, %c1_39, %c0_40] : memref<4x1x9x9x1xbf16, #tpu.memory_space<vmem>>, vector<1x1x8x8x1xbf16>
    %25 = vector.shape_cast %24 : vector<1x1x8x8x1xbf16> to vector<8x8x1xbf16>
    %26 = vector.shape_cast %25 : vector<8x8x1xbf16> to vector<64x1xbf16>
    %cst = arith.constant 0.000000e+00 : f32
    %27 = vector.broadcast %cst : f32 to vector<64x32xf32>
    %c0_41 = arith.constant 0 : index
    %c0_42 = arith.constant 0 : index
    %28 = vector.load %arg2[%c0_41, %c0_42] : memref<9x32xbf16, #tpu.memory_space<vmem>>, vector<1x32xbf16>
    %29 = arith.extf %28 : vector<1x32xbf16> to vector<1x32xf32>
    %30 = arith.extf %2 : vector<64x1xbf16> to vector<64x1xf32>
    %31 = vector.broadcast %30 : vector<64x1xf32> to vector<64x32xf32>
    %32 = vector.broadcast %29 : vector<1x32xf32> to vector<64x32xf32>
    %33 = arith.mulf %31, %32 : vector<64x32xf32>
    %34 = arith.addf %27, %33 : vector<64x32xf32>
    %c1_43 = arith.constant 1 : index
    %c0_44 = arith.constant 0 : index
    %35 = vector.load %arg2[%c1_43, %c0_44] : memref<9x32xbf16, #tpu.memory_space<vmem>>, vector<1x32xbf16>
    %36 = arith.extf %35 : vector<1x32xbf16> to vector<1x32xf32>
    %37 = arith.extf %5 : vector<64x1xbf16> to vector<64x1xf32>
    %38 = vector.broadcast %37 : vector<64x1xf32> to vector<64x32xf32>
    %39 = vector.broadcast %36 : vector<1x32xf32> to vector<64x32xf32>
    %40 = arith.mulf %38, %39 : vector<64x32xf32>
    %41 = arith.addf %34, %40 : vector<64x32xf32>
    %c2_45 = arith.constant 2 : index
    %c0_46 = arith.constant 0 : index
    %42 = vector.load %arg2[%c2_45, %c0_46] : memref<9x32xbf16, #tpu.memory_space<vmem>>, vector<1x32xbf16>
    %43 = arith.extf %42 : vector<1x32xbf16> to vector<1x32xf32>
    %44 = arith.extf %8 : vector<64x1xbf16> to vector<64x1xf32>
    %45 = vector.broadcast %44 : vector<64x1xf32> to vector<64x32xf32>
    %46 = vector.broadcast %43 : vector<1x32xf32> to vector<64x32xf32>
    %47 = arith.mulf %45, %46 : vector<64x32xf32>
    %48 = arith.addf %41, %47 : vector<64x32xf32>
    %c3_47 = arith.constant 3 : index
    %c0_48 = arith.constant 0 : index
    %49 = vector.load %arg2[%c3_47, %c0_48] : memref<9x32xbf16, #tpu.memory_space<vmem>>, vector<1x32xbf16>
    %50 = arith.extf %49 : vector<1x32xbf16> to vector<1x32xf32>
    %51 = arith.extf %11 : vector<64x1xbf16> to vector<64x1xf32>
    %52 = vector.broadcast %51 : vector<64x1xf32> to vector<64x32xf32>
    %53 = vector.broadcast %50 : vector<1x32xf32> to vector<64x32xf32>
    %54 = arith.mulf %52, %53 : vector<64x32xf32>
    %55 = arith.addf %48, %54 : vector<64x32xf32>
    %c4 = arith.constant 4 : index
    %c0_49 = arith.constant 0 : index
    %56 = vector.load %arg2[%c4, %c0_49] : memref<9x32xbf16, #tpu.memory_space<vmem>>, vector<1x32xbf16>
    %57 = arith.extf %56 : vector<1x32xbf16> to vector<1x32xf32>
    %58 = arith.extf %14 : vector<64x1xbf16> to vector<64x1xf32>
    %59 = vector.broadcast %58 : vector<64x1xf32> to vector<64x32xf32>
    %60 = vector.broadcast %57 : vector<1x32xf32> to vector<64x32xf32>
    %61 = arith.mulf %59, %60 : vector<64x32xf32>
    %62 = arith.addf %55, %61 : vector<64x32xf32>
    %c5 = arith.constant 5 : index
    %c0_50 = arith.constant 0 : index
    %63 = vector.load %arg2[%c5, %c0_50] : memref<9x32xbf16, #tpu.memory_space<vmem>>, vector<1x32xbf16>
    %64 = arith.extf %63 : vector<1x32xbf16> to vector<1x32xf32>
    %65 = arith.extf %17 : vector<64x1xbf16> to vector<64x1xf32>
    %66 = vector.broadcast %65 : vector<64x1xf32> to vector<64x32xf32>
    %67 = vector.broadcast %64 : vector<1x32xf32> to vector<64x32xf32>
    %68 = arith.mulf %66, %67 : vector<64x32xf32>
    %69 = arith.addf %62, %68 : vector<64x32xf32>
    %c6 = arith.constant 6 : index
    %c0_51 = arith.constant 0 : index
    %70 = vector.load %arg2[%c6, %c0_51] : memref<9x32xbf16, #tpu.memory_space<vmem>>, vector<1x32xbf16>
    %71 = arith.extf %70 : vector<1x32xbf16> to vector<1x32xf32>
    %72 = arith.extf %20 : vector<64x1xbf16> to vector<64x1xf32>
    %73 = vector.broadcast %72 : vector<64x1xf32> to vector<64x32xf32>
    %74 = vector.broadcast %71 : vector<1x32xf32> to vector<64x32xf32>
    %75 = arith.mulf %73, %74 : vector<64x32xf32>
    %76 = arith.addf %69, %75 : vector<64x32xf32>
    %c7 = arith.constant 7 : index
    %c0_52 = arith.constant 0 : index
    %77 = vector.load %arg2[%c7, %c0_52] : memref<9x32xbf16, #tpu.memory_space<vmem>>, vector<1x32xbf16>
    %78 = arith.extf %77 : vector<1x32xbf16> to vector<1x32xf32>
    %79 = arith.extf %23 : vector<64x1xbf16> to vector<64x1xf32>
    %80 = vector.broadcast %79 : vector<64x1xf32> to vector<64x32xf32>
    %81 = vector.broadcast %78 : vector<1x32xf32> to vector<64x32xf32>
    %82 = arith.mulf %80, %81 : vector<64x32xf32>
    %83 = arith.addf %76, %82 : vector<64x32xf32>
    %c8 = arith.constant 8 : index
    %c0_53 = arith.constant 0 : index
    %84 = vector.load %arg2[%c8, %c0_53] : memref<9x32xbf16, #tpu.memory_space<vmem>>, vector<1x32xbf16>
    %85 = arith.extf %84 : vector<1x32xbf16> to vector<1x32xf32>
    %86 = arith.extf %26 : vector<64x1xbf16> to vector<64x1xf32>
    %87 = vector.broadcast %86 : vector<64x1xf32> to vector<64x32xf32>
    %88 = vector.broadcast %85 : vector<1x32xf32> to vector<64x32xf32>
    %89 = arith.mulf %87, %88 : vector<64x32xf32>
    %90 = arith.addf %83, %89 : vector<64x32xf32>
    %c0_54 = arith.constant 0 : index
    %c0_55 = arith.constant 0 : index
    %91 = vector.load %arg3[%c0_54, %c0_55] : memref<1x32xf32, #tpu.memory_space<vmem>>, vector<1x32xf32>
    %92 = vector.broadcast %91 : vector<1x32xf32> to vector<64x32xf32>
    %93 = arith.addf %90, %92 : vector<64x32xf32>
    %cst_56 = arith.constant 0.000000e+00 : f32
    %94 = vector.broadcast %cst_56 : f32 to vector<64x32xf32>
    %95 = arith.maximumf %93, %94 : vector<64x32xf32>
    %96 = vector.shape_cast %95 : vector<64x32xf32> to vector<1x64x32xf32>
    %97 = arith.truncf %96 : vector<1x64x32xf32> to vector<1x64x32xbf16>
    %c0_57 = arith.constant 0 : index
    %c0_58 = arith.constant 0 : index
    %c0_59 = arith.constant 0 : index
    %98 = vector.load %arg4[%c0_57, %c0_58, %c0_59] : memref<1x64x32xbf16, #tpu.memory_space<vmem>>, vector<1x64x32xbf16>
    tpu.vector_store %arg4[%c0_57, %c0_58, %c0_59], %97 {strides = array<i32>} : memref<1x64x32xbf16, #tpu.memory_space<vmem>>, vector<1x64x32xbf16>,
    return
  }
  func.func @transform_0(%arg0: i32) -> (i32, i32, i32, i32, i32) {
    %c0_i32 = arith.constant 0 : i32
    %c0_i32_0 = arith.constant 0 : i32
    %c0_i32_1 = arith.constant 0 : i32
    %c0_i32_2 = arith.constant 0 : i32
    %c0_i32_3 = arith.constant 0 : i32
    return %c0_i32, %arg0, %c0_i32_0, %c0_i32_1, %c0_i32_2 : i32, i32, i32, i32, i32
  }
  func.func @transform_1(%arg0: i32) -> (i32, i32) {
    %c0_i32 = arith.constant 0 : i32
    %c0_i32_0 = arith.constant 0 : i32
    %c0_i32_1 = arith.constant 0 : i32
    return %c0_i32, %c0_i32_0 : i32, i32
  }
  func.func @transform_2(%arg0: i32) -> (i32, i32) {
    %c0_i32 = arith.constant 0 : i32
    %c0_i32_0 = arith.constant 0 : i32
    %c0_i32_1 = arith.constant 0 : i32
    return %c0_i32, %c0_i32_0 : i32, i32
  }
  func.func @transform_3(%arg0: i32) -> (i32, i32, i32) {
    %c0_i32 = arith.constant 0 : i32
    %c0_i32_0 = arith.constant 0 : i32
    %c0_i32_1 = arith.constant 0 : i32
    return %arg0, %c0_i32, %c0_i32_0 : i32, i32, i32
  }
}

module attributes {stable_mosaic.version = 11 : i64} {
  func.func @_conv_vq_kernel(%arg0: i32, %arg1: memref<4x1x5x9x32xbf16, #tpu.memory_space<vmem>>, %arg2: memref<288x64xbf16, #tpu.memory_space<vmem>>, %arg3: memref<1x64xf32, #tpu.memory_space<vmem>>, %arg4: memref<64x512xbf16, #tpu.memory_space<vmem>>, %arg5: memref<1x512xf32, #tpu.memory_space<vmem>>, %arg6: memref<1x32x1xi32, #tpu.memory_space<vmem>>, %arg7: memref<1x32x1xf32, #tpu.memory_space<vmem>>) attributes {dimension_semantics = [#tpu.dimension_semantics<parallel>], iteration_bounds = array<i64: 2>, scalar_prefetch = 0 : i64, scratch_operands = 0 : i64, tpu.core_type = #tpu.core_type<tc>, window_params = [{transform_indices = @transform_0, window_bounds = array<i64: 4, 1, 5, 9, 32>}, {pipeline_mode = #tpu.pipeline_mode<synchronous>, transform_indices = @transform_1, window_bounds = array<i64: 288, 64>}, {pipeline_mode = #tpu.pipeline_mode<synchronous>, transform_indices = @transform_2, window_bounds = array<i64: 1, 64>}, {pipeline_mode = #tpu.pipeline_mode<synchronous>, transform_indices = @transform_3, window_bounds = array<i64: 64, 512>}, {pipeline_mode = #tpu.pipeline_mode<synchronous>, transform_indices = @transform_4, window_bounds = array<i64: 1, 512>}, {transform_indices = @transform_5, window_bounds = array<i64: 1, 32, 1>}, {transform_indices = @transform_6, window_bounds = array<i64: 1, 32, 1>}]} {
    %c0 = arith.constant 0 : index
    %c0_0 = arith.constant 0 : index
    %c0_1 = arith.constant 0 : index
    %c0_2 = arith.constant 0 : index
    %c0_3 = arith.constant 0 : index
    %0 = vector.load %arg1[%c0, %c0_0, %c0_1, %c0_2, %c0_3] : memref<4x1x5x9x32xbf16, #tpu.memory_space<vmem>>, vector<1x1x4x8x32xbf16>
    %1 = vector.shape_cast %0 : vector<1x1x4x8x32xbf16> to vector<4x8x32xbf16>
    %2 = vector.shape_cast %1 : vector<4x8x32xbf16> to vector<32x32xbf16>
    %c1 = arith.constant 1 : index
    %c0_4 = arith.constant 0 : index
    %c0_5 = arith.constant 0 : index
    %c0_6 = arith.constant 0 : index
    %c0_7 = arith.constant 0 : index
    %3 = vector.load %arg1[%c1, %c0_4, %c0_5, %c0_6, %c0_7] : memref<4x1x5x9x32xbf16, #tpu.memory_space<vmem>>, vector<1x1x4x8x32xbf16>
    %4 = vector.shape_cast %3 : vector<1x1x4x8x32xbf16> to vector<4x8x32xbf16>
    %5 = vector.shape_cast %4 : vector<4x8x32xbf16> to vector<32x32xbf16>
    %c0_8 = arith.constant 0 : index
    %c0_9 = arith.constant 0 : index
    %c0_10 = arith.constant 0 : index
    %c1_11 = arith.constant 1 : index
    %c0_12 = arith.constant 0 : index
    %6 = vector.load %arg1[%c0_8, %c0_9, %c0_10, %c1_11, %c0_12] : memref<4x1x5x9x32xbf16, #tpu.memory_space<vmem>>, vector<1x1x4x8x32xbf16>
    %7 = vector.shape_cast %6 : vector<1x1x4x8x32xbf16> to vector<4x8x32xbf16>
    %8 = vector.shape_cast %7 : vector<4x8x32xbf16> to vector<32x32xbf16>
    %c2 = arith.constant 2 : index
    %c0_13 = arith.constant 0 : index
    %c0_14 = arith.constant 0 : index
    %c0_15 = arith.constant 0 : index
    %c0_16 = arith.constant 0 : index
    %9 = vector.load %arg1[%c2, %c0_13, %c0_14, %c0_15, %c0_16] : memref<4x1x5x9x32xbf16, #tpu.memory_space<vmem>>, vector<1x1x4x8x32xbf16>
    %10 = vector.shape_cast %9 : vector<1x1x4x8x32xbf16> to vector<4x8x32xbf16>
    %11 = vector.shape_cast %10 : vector<4x8x32xbf16> to vector<32x32xbf16>
    %c3 = arith.constant 3 : index
    %c0_17 = arith.constant 0 : index
    %c0_18 = arith.constant 0 : index
    %c0_19 = arith.constant 0 : index
    %c0_20 = arith.constant 0 : index
    %12 = vector.load %arg1[%c3, %c0_17, %c0_18, %c0_19, %c0_20] : memref<4x1x5x9x32xbf16, #tpu.memory_space<vmem>>, vector<1x1x4x8x32xbf16>
    %13 = vector.shape_cast %12 : vector<1x1x4x8x32xbf16> to vector<4x8x32xbf16>
    %14 = vector.shape_cast %13 : vector<4x8x32xbf16> to vector<32x32xbf16>
    %c2_21 = arith.constant 2 : index
    %c0_22 = arith.constant 0 : index
    %c0_23 = arith.constant 0 : index
    %c1_24 = arith.constant 1 : index
    %c0_25 = arith.constant 0 : index
    %15 = vector.load %arg1[%c2_21, %c0_22, %c0_23, %c1_24, %c0_25] : memref<4x1x5x9x32xbf16, #tpu.memory_space<vmem>>, vector<1x1x4x8x32xbf16>
    %16 = vector.shape_cast %15 : vector<1x1x4x8x32xbf16> to vector<4x8x32xbf16>
    %17 = vector.shape_cast %16 : vector<4x8x32xbf16> to vector<32x32xbf16>
    %c0_26 = arith.constant 0 : index
    %c0_27 = arith.constant 0 : index
    %c1_28 = arith.constant 1 : index
    %c0_29 = arith.constant 0 : index
    %c0_30 = arith.constant 0 : index
    %18 = vector.load %arg1[%c0_26, %c0_27, %c1_28, %c0_29, %c0_30] : memref<4x1x5x9x32xbf16, #tpu.memory_space<vmem>>, vector<1x1x4x8x32xbf16>
    %19 = vector.shape_cast %18 : vector<1x1x4x8x32xbf16> to vector<4x8x32xbf16>
    %20 = vector.shape_cast %19 : vector<4x8x32xbf16> to vector<32x32xbf16>
    %c1_31 = arith.constant 1 : index
    %c0_32 = arith.constant 0 : index
    %c1_33 = arith.constant 1 : index
    %c0_34 = arith.constant 0 : index
    %c0_35 = arith.constant 0 : index
    %21 = vector.load %arg1[%c1_31, %c0_32, %c1_33, %c0_34, %c0_35] : memref<4x1x5x9x32xbf16, #tpu.memory_space<vmem>>, vector<1x1x4x8x32xbf16>
    %22 = vector.shape_cast %21 : vector<1x1x4x8x32xbf16> to vector<4x8x32xbf16>
    %23 = vector.shape_cast %22 : vector<4x8x32xbf16> to vector<32x32xbf16>
    %c0_36 = arith.constant 0 : index
    %c0_37 = arith.constant 0 : index
    %c1_38 = arith.constant 1 : index
    %c1_39 = arith.constant 1 : index
    %c0_40 = arith.constant 0 : index
    %24 = vector.load %arg1[%c0_36, %c0_37, %c1_38, %c1_39, %c0_40] : memref<4x1x5x9x32xbf16, #tpu.memory_space<vmem>>, vector<1x1x4x8x32xbf16>
    %25 = vector.shape_cast %24 : vector<1x1x4x8x32xbf16> to vector<4x8x32xbf16>
    %26 = vector.shape_cast %25 : vector<4x8x32xbf16> to vector<32x32xbf16>
    %27 = tpu.concatenate %2, %5, %8, %11, %14, %17, %20, %23, %26 in 1 : vector<32x32xbf16>, vector<32x32xbf16>, vector<32x32xbf16>, vector<32x32xbf16>, vector<32x32xbf16>, vector<32x32xbf16>, vector<32x32xbf16>, vector<32x32xbf16>, vector<32x32xbf16> -> vector<32x288xbf16>
    %c0_41 = arith.constant 0 : index
    %c0_42 = arith.constant 0 : index
    %28 = vector.load %arg2[%c0_41, %c0_42] : memref<288x64xbf16, #tpu.memory_space<vmem>>, vector<288x64xbf16>
    %cst = arith.constant dense<0.000000e+00> : vector<32x64xf32>
    %29 = tpu.matmul %27, %28, %cst {dimension_numbers = #tpu.dot_dimension_numbers<[1], [0], [0], [1], [0, 0, 1, 1], [], []>} : vector<32x288xbf16>, vector<288x64xbf16>, vector<32x64xf32> -> vector<32x64xf32>
    %c0_43 = arith.constant 0 : index
    %c0_44 = arith.constant 0 : index
    %30 = vector.load %arg3[%c0_43, %c0_44] : memref<1x64xf32, #tpu.memory_space<vmem>>, vector<1x64xf32>
    %31 = vector.broadcast %30 : vector<1x64xf32> to vector<32x64xf32>
    %32 = arith.addf %29, %31 : vector<32x64xf32>
    %cst_45 = arith.constant 0.000000e+00 : f32
    %33 = vector.broadcast %cst_45 : f32 to vector<32x64xf32>
    %34 = arith.maximumf %32, %33 : vector<32x64xf32>
    %35 = arith.truncf %34 : vector<32x64xf32> to vector<32x64xbf16>
    %c0_46 = arith.constant 0 : index
    %c0_47 = arith.constant 0 : index
    %36 = vector.load %arg4[%c0_46, %c0_47] : memref<64x512xbf16, #tpu.memory_space<vmem>>, vector<64x512xbf16>
    %cst_48 = arith.constant dense<0.000000e+00> : vector<32x512xf32>
    %37 = tpu.matmul %35, %36, %cst_48 {dimension_numbers = #tpu.dot_dimension_numbers<[1], [0], [0], [1], [0, 0, 1, 1], [], []>} : vector<32x64xbf16>, vector<64x512xbf16>, vector<32x512xf32> -> vector<32x512xf32>
    %c0_49 = arith.constant 0 : index
    %c0_50 = arith.constant 0 : index
    %38 = vector.load %arg5[%c0_49, %c0_50] : memref<1x512xf32, #tpu.memory_space<vmem>>, vector<1x512xf32>
    %cst_51 = arith.constant 2.000000e+00 : f32
    %39 = vector.broadcast %cst_51 : f32 to vector<32x512xf32>
    %40 = arith.mulf %39, %37 : vector<32x512xf32>
    %41 = vector.broadcast %38 : vector<1x512xf32> to vector<32x512xf32>
    %42 = arith.subf %41, %40 : vector<32x512xf32>
    %cst_52 = arith.constant dense<0x7F800000> : vector<32xf32>
    %43 = vector.multi_reduction <minimumf>, %42, %cst_52 [1] : vector<32x512xf32> to vector<32xf32>
    %44 = vector.shape_cast %43 : vector<32xf32> to vector<32x1xf32>
    %45 = tpu.iota {dimensions = array<i32: 1>} : vector<32x512xi32>
    %46 = vector.broadcast %44 : vector<32x1xf32> to vector<32x512xf32>
    %47 = arith.cmpf ole, %42, %46 : vector<32x512xf32>
    %c512_i32 = arith.constant 512 : i32
    %48 = vector.broadcast %c512_i32 : i32 to vector<32x512xi32>
    %49 = arith.select %47, %45, %48 : vector<32x512xi1>, vector<32x512xi32>
    %cst_53 = arith.constant dense<2147483647> : vector<32xi32>
    %50 = vector.multi_reduction <minsi>, %49, %cst_53 [1] : vector<32x512xi32> to vector<32xi32>
    %51 = vector.shape_cast %50 : vector<32xi32> to vector<32x1xi32>
    %52 = arith.mulf %34, %34 : vector<32x64xf32>
    %cst_54 = arith.constant dense<0.000000e+00> : vector<32xf32>
    %53 = vector.multi_reduction <add>, %52, %cst_54 [1] : vector<32x64xf32> to vector<32xf32>
    %54 = vector.shape_cast %53 : vector<32xf32> to vector<32x1xf32>
    %55 = vector.shape_cast %51 : vector<32x1xi32> to vector<1x32x1xi32>
    %c0_55 = arith.constant 0 : index
    %c0_56 = arith.constant 0 : index
    %c0_57 = arith.constant 0 : index
    %56 = vector.load %arg6[%c0_55, %c0_56, %c0_57] : memref<1x32x1xi32, #tpu.memory_space<vmem>>, vector<1x32x1xi32>
    tpu.vector_store %arg6[%c0_55, %c0_56, %c0_57], %55 {strides = array<i32>} : memref<1x32x1xi32, #tpu.memory_space<vmem>>, vector<1x32x1xi32>,
    %57 = arith.addf %54, %44 : vector<32x1xf32>
    %58 = vector.shape_cast %57 : vector<32x1xf32> to vector<1x32x1xf32>
    %c0_58 = arith.constant 0 : index
    %c0_59 = arith.constant 0 : index
    %c0_60 = arith.constant 0 : index
    %59 = vector.load %arg7[%c0_58, %c0_59, %c0_60] : memref<1x32x1xf32, #tpu.memory_space<vmem>>, vector<1x32x1xf32>
    tpu.vector_store %arg7[%c0_58, %c0_59, %c0_60], %58 {strides = array<i32>} : memref<1x32x1xf32, #tpu.memory_space<vmem>>, vector<1x32x1xf32>,
    return
  }
  func.func @transform_0(%arg0: i32) -> (i32, i32, i32, i32, i32) {
    %c0_i32 = arith.constant 0 : i32
    %c0_i32_0 = arith.constant 0 : i32
    %c0_i32_1 = arith.constant 0 : i32
    %c0_i32_2 = arith.constant 0 : i32
    %c0_i32_3 = arith.constant 0 : i32
    return %c0_i32, %arg0, %c0_i32_0, %c0_i32_1, %c0_i32_2 : i32, i32, i32, i32, i32
  }
  func.func @transform_1(%arg0: i32) -> (i32, i32) {
    %c0_i32 = arith.constant 0 : i32
    %c0_i32_0 = arith.constant 0 : i32
    %c0_i32_1 = arith.constant 0 : i32
    return %c0_i32, %c0_i32_0 : i32, i32
  }
  func.func @transform_2(%arg0: i32) -> (i32, i32) {
    %c0_i32 = arith.constant 0 : i32
    %c0_i32_0 = arith.constant 0 : i32
    %c0_i32_1 = arith.constant 0 : i32
    return %c0_i32, %c0_i32_0 : i32, i32
  }
  func.func @transform_3(%arg0: i32) -> (i32, i32) {
    %c0_i32 = arith.constant 0 : i32
    %c0_i32_0 = arith.constant 0 : i32
    %c0_i32_1 = arith.constant 0 : i32
    return %c0_i32, %c0_i32_0 : i32, i32
  }
  func.func @transform_4(%arg0: i32) -> (i32, i32) {
    %c0_i32 = arith.constant 0 : i32
    %c0_i32_0 = arith.constant 0 : i32
    %c0_i32_1 = arith.constant 0 : i32
    return %c0_i32, %c0_i32_0 : i32, i32
  }
  func.func @transform_5(%arg0: i32) -> (i32, i32, i32) {
    %c0_i32 = arith.constant 0 : i32
    %c0_i32_0 = arith.constant 0 : i32
    %c0_i32_1 = arith.constant 0 : i32
    return %arg0, %c0_i32, %c0_i32_0 : i32, i32, i32
  }
  func.func @transform_6(%arg0: i32) -> (i32, i32, i32) {
    %c0_i32 = arith.constant 0 : i32
    %c0_i32_0 = arith.constant 0 : i32
    %c0_i32_1 = arith.constant 0 : i32
    return %arg0, %c0_i32, %c0_i32_0 : i32, i32, i32
  }
}

module attributes {stable_mosaic.version = 11 : i64} {
  func.func @_conv_kernel(%arg0: i32, %arg1: memref<1x1x5x9x64xbf16, #tpu.memory_space<vmem>>, %arg2: memref<256x128xbf16, #tpu.memory_space<vmem>>, %arg3: memref<1x128xf32, #tpu.memory_space<vmem>>, %arg4: memref<1x32x128xbf16, #tpu.memory_space<vmem>>) attributes {dimension_semantics = [#tpu.dimension_semantics<parallel>], iteration_bounds = array<i64: 2>, scalar_prefetch = 0 : i64, scratch_operands = 0 : i64, tpu.core_type = #tpu.core_type<tc>, window_params = [{transform_indices = @transform_0, window_bounds = array<i64: 1, 1, 5, 9, 64>}, {pipeline_mode = #tpu.pipeline_mode<synchronous>, transform_indices = @transform_1, window_bounds = array<i64: 256, 128>}, {pipeline_mode = #tpu.pipeline_mode<synchronous>, transform_indices = @transform_2, window_bounds = array<i64: 1, 128>}, {transform_indices = @transform_3, window_bounds = array<i64: 1, 32, 128>}]} {
    %c0 = arith.constant 0 : index
    %c0_0 = arith.constant 0 : index
    %c0_1 = arith.constant 0 : index
    %c0_2 = arith.constant 0 : index
    %c0_3 = arith.constant 0 : index
    %0 = vector.load %arg1[%c0, %c0_0, %c0_1, %c0_2, %c0_3] : memref<1x1x5x9x64xbf16, #tpu.memory_space<vmem>>, vector<1x1x4x8x64xbf16>
    %1 = vector.shape_cast %0 : vector<1x1x4x8x64xbf16> to vector<4x8x64xbf16>
    %2 = vector.shape_cast %1 : vector<4x8x64xbf16> to vector<32x64xbf16>
    %c0_4 = arith.constant 0 : index
    %c0_5 = arith.constant 0 : index
    %c0_6 = arith.constant 0 : index
    %c1 = arith.constant 1 : index
    %c0_7 = arith.constant 0 : index
    %3 = vector.load %arg1[%c0_4, %c0_5, %c0_6, %c1, %c0_7] : memref<1x1x5x9x64xbf16, #tpu.memory_space<vmem>>, vector<1x1x4x8x64xbf16>
    %4 = vector.shape_cast %3 : vector<1x1x4x8x64xbf16> to vector<4x8x64xbf16>
    %5 = vector.shape_cast %4 : vector<4x8x64xbf16> to vector<32x64xbf16>
    %c0_8 = arith.constant 0 : index
    %c0_9 = arith.constant 0 : index
    %c1_10 = arith.constant 1 : index
    %c0_11 = arith.constant 0 : index
    %c0_12 = arith.constant 0 : index
    %6 = vector.load %arg1[%c0_8, %c0_9, %c1_10, %c0_11, %c0_12] : memref<1x1x5x9x64xbf16, #tpu.memory_space<vmem>>, vector<1x1x4x8x64xbf16>
    %7 = vector.shape_cast %6 : vector<1x1x4x8x64xbf16> to vector<4x8x64xbf16>
    %8 = vector.shape_cast %7 : vector<4x8x64xbf16> to vector<32x64xbf16>
    %c0_13 = arith.constant 0 : index
    %c0_14 = arith.constant 0 : index
    %c1_15 = arith.constant 1 : index
    %c1_16 = arith.constant 1 : index
    %c0_17 = arith.constant 0 : index
    %9 = vector.load %arg1[%c0_13, %c0_14, %c1_15, %c1_16, %c0_17] : memref<1x1x5x9x64xbf16, #tpu.memory_space<vmem>>, vector<1x1x4x8x64xbf16>
    %10 = vector.shape_cast %9 : vector<1x1x4x8x64xbf16> to vector<4x8x64xbf16>
    %11 = vector.shape_cast %10 : vector<4x8x64xbf16> to vector<32x64xbf16>
    %12 = tpu.concatenate %2, %5, %8, %11 in 1 : vector<32x64xbf16>, vector<32x64xbf16>, vector<32x64xbf16>, vector<32x64xbf16> -> vector<32x256xbf16>
    %c0_18 = arith.constant 0 : index
    %c0_19 = arith.constant 0 : index
    %13 = vector.load %arg2[%c0_18, %c0_19] : memref<256x128xbf16, #tpu.memory_space<vmem>>, vector<256x128xbf16>
    %cst = arith.constant dense<0.000000e+00> : vector<32x128xf32>
    %14 = tpu.matmul %12, %13, %cst {dimension_numbers = #tpu.dot_dimension_numbers<[1], [0], [0], [1], [0, 0, 1, 1], [], []>} : vector<32x256xbf16>, vector<256x128xbf16>, vector<32x128xf32> -> vector<32x128xf32>
    %c0_20 = arith.constant 0 : index
    %c0_21 = arith.constant 0 : index
    %15 = vector.load %arg3[%c0_20, %c0_21] : memref<1x128xf32, #tpu.memory_space<vmem>>, vector<1x128xf32>
    %16 = vector.broadcast %15 : vector<1x128xf32> to vector<32x128xf32>
    %17 = arith.addf %14, %16 : vector<32x128xf32>
    %cst_22 = arith.constant 0.000000e+00 : f32
    %18 = vector.broadcast %cst_22 : f32 to vector<32x128xf32>
    %19 = arith.maximumf %17, %18 : vector<32x128xf32>
    %20 = vector.shape_cast %19 : vector<32x128xf32> to vector<1x32x128xf32>
    %21 = arith.truncf %20 : vector<1x32x128xf32> to vector<1x32x128xbf16>
    %c0_23 = arith.constant 0 : index
    %c0_24 = arith.constant 0 : index
    %c0_25 = arith.constant 0 : index
    %22 = vector.load %arg4[%c0_23, %c0_24, %c0_25] : memref<1x32x128xbf16, #tpu.memory_space<vmem>>, vector<1x32x128xbf16>
    tpu.vector_store %arg4[%c0_23, %c0_24, %c0_25], %21 {strides = array<i32>} : memref<1x32x128xbf16, #tpu.memory_space<vmem>>, vector<1x32x128xbf16>,
    return
  }
  func.func @transform_0(%arg0: i32) -> (i32, i32, i32, i32, i32) {
    %c0_i32 = arith.constant 0 : i32
    %c0_i32_0 = arith.constant 0 : i32
    %c0_i32_1 = arith.constant 0 : i32
    %c0_i32_2 = arith.constant 0 : i32
    %c0_i32_3 = arith.constant 0 : i32
    return %c0_i32, %arg0, %c0_i32_0, %c0_i32_1, %c0_i32_2 : i32, i32, i32, i32, i32
  }
  func.func @transform_1(%arg0: i32) -> (i32, i32) {
    %c0_i32 = arith.constant 0 : i32
    %c0_i32_0 = arith.constant 0 : i32
    %c0_i32_1 = arith.constant 0 : i32
    return %c0_i32, %c0_i32_0 : i32, i32
  }
  func.func @transform_2(%arg0: i32) -> (i32, i32) {
    %c0_i32 = arith.constant 0 : i32
    %c0_i32_0 = arith.constant 0 : i32
    %c0_i32_1 = arith.constant 0 : i32
    return %c0_i32, %c0_i32_0 : i32, i32
  }
  func.func @transform_3(%arg0: i32) -> (i32, i32, i32) {
    %c0_i32 = arith.constant 0 : i32
    %c0_i32_0 = arith.constant 0 : i32
    %c0_i32_1 = arith.constant 0 : i32
    return %arg0, %c0_i32, %c0_i32_0 : i32, i32, i32
  }
}

module attributes {stable_mosaic.version = 11 : i64} {
  func.func @_conv_kernel(%arg0: i32, %arg1: memref<1x1x9x9x32xbf16, #tpu.memory_space<vmem>>, %arg2: memref<128x4xbf16, #tpu.memory_space<vmem>>, %arg3: memref<1x4xf32, #tpu.memory_space<vmem>>, %arg4: memref<1x64x4xf32, #tpu.memory_space<vmem>>) attributes {dimension_semantics = [#tpu.dimension_semantics<parallel>], iteration_bounds = array<i64: 2>, scalar_prefetch = 0 : i64, scratch_operands = 0 : i64, tpu.core_type = #tpu.core_type<tc>, window_params = [{transform_indices = @transform_0, window_bounds = array<i64: 1, 1, 9, 9, 32>}, {pipeline_mode = #tpu.pipeline_mode<synchronous>, transform_indices = @transform_1, window_bounds = array<i64: 128, 4>}, {pipeline_mode = #tpu.pipeline_mode<synchronous>, transform_indices = @transform_2, window_bounds = array<i64: 1, 4>}, {transform_indices = @transform_3, window_bounds = array<i64: 1, 64, 4>}]} {
    %c0 = arith.constant 0 : index
    %c0_0 = arith.constant 0 : index
    %c0_1 = arith.constant 0 : index
    %c0_2 = arith.constant 0 : index
    %c0_3 = arith.constant 0 : index
    %0 = vector.load %arg1[%c0, %c0_0, %c0_1, %c0_2, %c0_3] : memref<1x1x9x9x32xbf16, #tpu.memory_space<vmem>>, vector<1x1x8x8x32xbf16>
    %1 = vector.shape_cast %0 : vector<1x1x8x8x32xbf16> to vector<8x8x32xbf16>
    %2 = vector.shape_cast %1 : vector<8x8x32xbf16> to vector<64x32xbf16>
    %c0_4 = arith.constant 0 : index
    %c0_5 = arith.constant 0 : index
    %c0_6 = arith.constant 0 : index
    %c1 = arith.constant 1 : index
    %c0_7 = arith.constant 0 : index
    %3 = vector.load %arg1[%c0_4, %c0_5, %c0_6, %c1, %c0_7] : memref<1x1x9x9x32xbf16, #tpu.memory_space<vmem>>, vector<1x1x8x8x32xbf16>
    %4 = vector.shape_cast %3 : vector<1x1x8x8x32xbf16> to vector<8x8x32xbf16>
    %5 = vector.shape_cast %4 : vector<8x8x32xbf16> to vector<64x32xbf16>
    %c0_8 = arith.constant 0 : index
    %c0_9 = arith.constant 0 : index
    %c1_10 = arith.constant 1 : index
    %c0_11 = arith.constant 0 : index
    %c0_12 = arith.constant 0 : index
    %6 = vector.load %arg1[%c0_8, %c0_9, %c1_10, %c0_11, %c0_12] : memref<1x1x9x9x32xbf16, #tpu.memory_space<vmem>>, vector<1x1x8x8x32xbf16>
    %7 = vector.shape_cast %6 : vector<1x1x8x8x32xbf16> to vector<8x8x32xbf16>
    %8 = vector.shape_cast %7 : vector<8x8x32xbf16> to vector<64x32xbf16>
    %c0_13 = arith.constant 0 : index
    %c0_14 = arith.constant 0 : index
    %c1_15 = arith.constant 1 : index
    %c1_16 = arith.constant 1 : index
    %c0_17 = arith.constant 0 : index
    %9 = vector.load %arg1[%c0_13, %c0_14, %c1_15, %c1_16, %c0_17] : memref<1x1x9x9x32xbf16, #tpu.memory_space<vmem>>, vector<1x1x8x8x32xbf16>
    %10 = vector.shape_cast %9 : vector<1x1x8x8x32xbf16> to vector<8x8x32xbf16>
    %11 = vector.shape_cast %10 : vector<8x8x32xbf16> to vector<64x32xbf16>
    %12 = tpu.concatenate %2, %5, %8, %11 in 1 : vector<64x32xbf16>, vector<64x32xbf16>, vector<64x32xbf16>, vector<64x32xbf16> -> vector<64x128xbf16>
    %c0_18 = arith.constant 0 : index
    %c0_19 = arith.constant 0 : index
    %13 = vector.load %arg2[%c0_18, %c0_19] : memref<128x4xbf16, #tpu.memory_space<vmem>>, vector<128x4xbf16>
    %cst = arith.constant dense<0.000000e+00> : vector<64x4xf32>
    %14 = tpu.matmul %12, %13, %cst {dimension_numbers = #tpu.dot_dimension_numbers<[1], [0], [0], [1], [0, 0, 1, 1], [], []>} : vector<64x128xbf16>, vector<128x4xbf16>, vector<64x4xf32> -> vector<64x4xf32>
    %c0_20 = arith.constant 0 : index
    %c0_21 = arith.constant 0 : index
    %15 = vector.load %arg3[%c0_20, %c0_21] : memref<1x4xf32, #tpu.memory_space<vmem>>, vector<1x4xf32>
    %16 = vector.broadcast %15 : vector<1x4xf32> to vector<64x4xf32>
    %17 = arith.addf %14, %16 : vector<64x4xf32>
    %18 = arith.negf %17 : vector<64x4xf32>
    %19 = math.exp %18 : vector<64x4xf32>
    %cst_22 = arith.constant 1.000000e+00 : f32
    %20 = vector.broadcast %cst_22 : f32 to vector<64x4xf32>
    %21 = arith.addf %20, %19 : vector<64x4xf32>
    %22 = arith.divf %20, %21 : vector<64x4xf32>
    %23 = vector.shape_cast %22 : vector<64x4xf32> to vector<1x64x4xf32>
    %c0_23 = arith.constant 0 : index
    %c0_24 = arith.constant 0 : index
    %c0_25 = arith.constant 0 : index
    %24 = vector.load %arg4[%c0_23, %c0_24, %c0_25] : memref<1x64x4xf32, #tpu.memory_space<vmem>>, vector<1x64x4xf32>
    tpu.vector_store %arg4[%c0_23, %c0_24, %c0_25], %23 {strides = array<i32>} : memref<1x64x4xf32, #tpu.memory_space<vmem>>, vector<1x64x4xf32>,
    return
  }
  func.func @transform_0(%arg0: i32) -> (i32, i32, i32, i32, i32) {
    %c0_i32 = arith.constant 0 : i32
    %c0_i32_0 = arith.constant 0 : i32
    %c0_i32_1 = arith.constant 0 : i32
    %c0_i32_2 = arith.constant 0 : i32
    %c0_i32_3 = arith.constant 0 : i32
    return %c0_i32, %arg0, %c0_i32_0, %c0_i32_1, %c0_i32_2 : i32, i32, i32, i32, i32
  }
  func.func @transform_1(%arg0: i32) -> (i32, i32) {
    %c0_i32 = arith.constant 0 : i32
    %c0_i32_0 = arith.constant 0 : i32
    %c0_i32_1 = arith.constant 0 : i32
    return %c0_i32, %c0_i32_0 : i32, i32
  }
  func.func @transform_2(%arg0: i32) -> (i32, i32) {
    %c0_i32 = arith.constant 0 : i32
    %c0_i32_0 = arith.constant 0 : i32
    %c0_i32_1 = arith.constant 0 : i32
    return %c0_i32, %c0_i32_0 : i32, i32
  }
  func.func @transform_3(%arg0: i32) -> (i32, i32, i32) {
    %c0_i32 = arith.constant 0 : i32
    %c0_i32_0 = arith.constant 0 : i32
    %c0_i32_1 = arith.constant 0 : i32
    return %arg0, %c0_i32, %c0_i32_0 : i32, i32, i32
  }
}

</mosaic_0001>

<bundles_post_ra>
// kernel: vqvae_forward.6
= control target key start
LH: loop header
LB: loop body
LE: loop exit
PB: predicated region body
PF: predicated region fallthrough
CT: control target
= control target key end

     0   :  { %s790_s12 = smov 0   ;;  %s949_s0 = inlined_call_operand.vmem [shape: bf16[1,2,5,9,64], index: 0, kind: input, shape index: {}]   ;;  %s950_s1 = inlined_call_operand.vmem [shape: bf16[256,128], index: 1, kind: input, shape index: {}]   ;;  %s951_s2 = inlined_call_operand.vmem [shape: f32[1,128], index: 2, kind: input, shape index: {}]   ;;  %s952_s3 = inlined_call_operand.vmem [shape: bf16[2,32,128], index: 3, kind: output, shape index: {}]  }
   0x1 LB: > { %s624_s13 = sadd.s32 4294967295, %s767_s12   ;;  %p628_p0 = scmp.ge.s32.totalorder %s767_s12, 1  ;;  %s767_s12 = sphi %s790_s12, %s13_s12  }
   0x2   : > { %p137_p1 = scmp.lt.s32.totalorder %s767_s12, 3 }
   0x4   : > { %p138_p2 = pnand %p628_p0, %p137_p1 }
   0x5   : > { %p161_p3 = scmp.lt.s32.totalorder (!%p138_p2), %s624_s13, 1  ;;  %vm180_vm0 = vsmask.f32 (!%p138_p2), 3328  ;;  %vm181_vm1 = vsmask.f32 (!%p138_p2), 7440  ;;  %v741_v0 = vld [vmem:[%s950_s1 + $0x40] sm:$0xff] (!%p138_p2)  }
   0x6   : > { %141 = sbr.rel (%p138_p2) target bundleno = 384 (0x180), region = 32  ;;  %v742_v1 = vld [vmem:[%s950_s1] sm:$0xff] (!%p138_p2)   ;;  %687 = vmatprep.subr.bf16.mxu0 (!%p138_p2), %v741_v0  ;;  %715 = vmatprep.subr.bf16.mxu1 (!%p138_p2), %v741_v0  ;;  %v743_v2 = vld [vmem:[%s950_s1 + $0x48] sm:$0xff] (!%p138_p2)   ;;  %v745_v4 = vld [vmem:[%s950_s1 + $0x50] sm:$0xff] (!%p138_p2)   ;;  %s769_s15 = smov (!%p138_p2), 64   ;;  %vm344_vm3 = vcmask (!%p138_p2), 523264  }
   0x7   : > { %688 = vmatpush3.bf16.msra.mxu0 (!%p138_p2), %v742_v1  ;;  %723 = vmatpush3.bf16.msra.mxu1 (!%p138_p2), %v742_v1  ;;  %v744_v3 = vld [vmem:[%s950_s1 + $0x8] sm:$0xff] (!%p138_p2)   ;;  %v746_v33 = vld [vmem:[%s950_s1 + $0x10] sm:$0xff] (!%p138_p2)   ;;  %vm855_vm2 = vmor (!%p138_p2), %vm180_vm0, %vm181_vm1 }
   0x8   : > { %689 = vmatprep.subr.bf16.mxu0 (!%p138_p2), %v743_v2  ;;  %716 = vmatprep.subr.bf16.mxu1 (!%p138_p2), %v743_v2  ;;  %v747_v40 = vld [vmem:[%s950_s1 + $0x58] sm:$0xff] (!%p138_p2)   ;;  %v749_v63 = vld [vmem:[%s950_s1 + $0x60] sm:$0xff] (!%p138_p2)  }
   0x9   : > { %v748_v50 = vld [vmem:[%s950_s1 + $0x18] sm:$0xff] (!%p138_p2)  }
   0xb   : > { %690 = vmatpush3.bf16.msra.mxu0 (!%p138_p2), %v744_v3  ;;  %724 = vmatpush3.bf16.msra.mxu1 (!%p138_p2), %v744_v3 }
   0xc   : > { %691 = vmatprep.subr.bf16.mxu0 (!%p138_p2), %v745_v4  ;;  %717 = vmatprep.subr.bf16.mxu1 (!%p138_p2), %v745_v4 }
   0xd   : > { %s956_s13 = smov (!%p161_p3, %s624_s13), 1 }
   0xe   : > { %s731_s18 = smul.u32 40, %s956_s13  ;;  %s671_s28 = sshll.u32 %s956_s13, 4 }
   0xf   : > { %692 = vmatpush3.bf16.msra.mxu0 %v746_v33  ;;  %725 = vmatpush3.bf16.msra.mxu1 %v746_v33  ;;  %s170_s4 = scalar_lea.vmem %s952_s3, %s671_s28 }
  0x10   : > { %s816_s25 = scalar_lea.vmem %s949_s0, %s731_s18  ;;  %693 = vmatprep.subr.bf16.mxu0 %v747_v40  ;;  %718 = vmatprep.subr.bf16.mxu1 %v747_v40 }
  0x11   : > { %v822_v5 = vld [vmem:[%s816_s25 + $0x8] sm:$0xf]  ;;  %v825_v6 = vld [vmem:[%s816_s25 + $0x10] sm:$0xf]  ;;  %v636_v7 = vld [vmem:[%s816_s25 + $0xc] sm:$0x1] }
  0x12   : > { %v637_v8 = vld [vmem:[%s816_s25 + $0x14] sm:$0x1]  ;;  %v249_v9 = vshrl.u32 %v822_v5, 16  ;;  %v252_v10 = vshll.u32 %v822_v5, 16  ;;  %v258_v11 = vshll.u32 %v636_v7, 16  ;;  %v263_v12 = vshrl.u32 %v825_v6, 16 }
  0x13   : > { %v266_v13 = vshll.u32 %v825_v6, 16  ;;  %v272_v14 = vshll.u32 %v637_v8, 16  ;;  %v834_v15 = vld [vmem:[%s816_s25] sm:$0xf]  ;;  %v837_v16 = vld [vmem:[%s816_s25 + $0x8] sm:$0xf]  ;;  %v644_v17 = vcombine.low %v822_v5, %v825_v6  ;;  %694 = vmatpush3.bf16.msra.mxu0 %v748_v50  ;;  %726 = vmatpush3.bf16.msra.mxu1 %v748_v50 }
  0x14   : > { %v251_v18 = vrot.slane %v249_v9, 4  ;;  %v254_v19 = vrot.slane %v252_v10, 5  ;;  %v260_v20 = vrot.slane %v258_v11, 5  ;;  %v265_v21 = vrot.slane %v263_v12, 4  ;;  %v176_v22 = vld [vmem:[%s816_s25 + $0x4] sm:$0x1]  ;;  %695 = vmatprep.subr.bf16.mxu0 %v749_v63  ;;  %719 = vmatprep.subr.bf16.mxu1 %v749_v63 }
  0x15   : > { %v268_v23 = vrot.slane %v266_v13, 5  ;;  %v274_v24 = vrot.slane %v272_v14, 5  ;;  %v177_v25 = vld [vmem:[%s816_s25 + $0xc] sm:$0x1]  ;;  %v184_v26 = vshrl.u32 %v834_v15, 16  ;;  %v187_v27 = vshll.u32 %v834_v15, 16 }
  0x16   : > { %v255_v28 = vor.u32 %v254_v19, %v251_v18  ;;  %v193_v29 = vshll.u32 %v176_v22, 16  ;;  %v198_v30 = vshrl.u32 %v837_v16, 16  ;;  %v201_v31 = vshll.u32 %v837_v16, 16  ;;  %v848_v32 = vld [vmem:[%s816_s25 + $0x18] sm:$0xf]  ;;  %v750_v7 = vld [vmem:[%s950_s1 + $0x20] sm:$0xff]  }
  0x17   : > { %v269_v35 = vor.u32 %v268_v23, %v265_v21  ;;  %v186_v36 = vrot.slane %v184_v26, 4  ;;  %v189_v37 = vrot.slane %v187_v27, 5  ;;  %v207_v38 = vshll.u32 %v177_v25, 16  ;;  %v860_v39 = vld [vmem:[%s816_s25 + $0x20] sm:$0xf]  ;;  %v751_v12 = vld [vmem:[%s950_s1 + $0x68] sm:$0xff]   ;;  %696 = vmatpush3.bf16.msra.mxu0 %v750_v7  ;;  %727 = vmatpush3.bf16.msra.mxu1 %v750_v7 }
  0x18   : > { %v256_v41 = vrot.slane %v255_v28, 4  ;;  %v195_v42 = vrot.slane %v193_v29, 5  ;;  %v200_v43 = vrot.slane %v198_v30, 4  ;;  %v203_v44 = vrot.slane %v201_v31, 5  ;;  %v638_v45 = vld [vmem:[%s816_s25 + $0x1c] sm:$0x1]  ;;  %697 = vmatprep.subr.bf16.mxu0 %v751_v12  ;;  %720 = vmatprep.subr.bf16.mxu1 %v751_v12 }
  0x19   : > { %v270_v46 = vrot.slane %v269_v35, 4  ;;  %v190_v47 = vor.u32 %v189_v37, %v186_v36  ;;  %v209_v48 = vrot.slane %v207_v38, 5  ;;  %v277_v49 = vshrl.u32 %v848_v32, 16  ;;  %v639_v53 = vld [vmem:[%s816_s25 + $0x24] sm:$0x1]  ;;  %v753_v35 = vld [vmem:[%s950_s1 + $0x70] sm:$0xff]  }
  0x1a   : > { %v261_v51 = vsel %vm855_vm2, %v256_v41, %v260_v20  ;;  %v204_v52 = vor.u32 %v203_v44, %v200_v43  ;;  %v280_v54 = vshll.u32 %v848_v32, 16  ;;  %v286_v55 = vshll.u32 %v638_v45, 16  ;;  %v875_v56 = vld [vmem:[%s816_s25 + $0x10] sm:$0xf]  ;;  %v881_v61 = vld [vmem:[%s816_s25 + $0x18] sm:$0xf] }
  0x1b   : > { %v275_v57 = vsel %vm855_vm2, %v270_v46, %v274_v24  ;;  %v191_v58 = vrot.slane %v190_v47, 4  ;;  %v279_v59 = vrot.slane %v277_v49, 4  ;;  %v291_v60 = vshrl.u32 %v860_v39, 16  ;;  %v178_v62 = vld [vmem:[%s816_s25 + $0x14] sm:$0x1]  ;;  %v752_v24 = vld [vmem:[%s950_s1 + $0x28] sm:$0xff]  }
  0x1c   : > { %v646_v0 = vcombine.low %v261_v51, %v275_v57  ;;  %v205_v1 = vrot.slane %v204_v52, 4  ;;  %v282_v2 = vrot.slane %v280_v54, 5  ;;  %v288_v3 = vrot.slane %v286_v55, 5  ;;  %v179_v4 = vld [vmem:[%s816_s25 + $0x1c] sm:$0x1]  ;;  %v754_v44 = vld [vmem:[%s950_s1 + $0x30] sm:$0xff]   ;;  %698 = vmatpush3.bf16.msra.mxu0 %v752_v24  ;;  %728 = vmatpush3.bf16.msra.mxu1 %v752_v24 }
  0x1d   : > { %v196_v8 = vsel %vm855_vm2, %v191_v58, %v195_v42  ;;  %v293_v9 = vrot.slane %v291_v60, 4  ;;  %v294_v10 = vshll.u32 %v860_v39, 16  ;;  %v300_v11 = vshll.u32 %v639_v53, 16  ;;  %v755_v47 = vld [vmem:[%s950_s1 + $0x78] sm:$0xff]   ;;  %699 = vmatprep.subr.bf16.mxu0 %v753_v35  ;;  %721 = vmatprep.subr.bf16.mxu1 %v753_v35 }
  0x1e   : > { %340 = vrot.lane.b32.xlu0 %v646_v0, %s769_s15  ;;  %v210_v13 = vsel %vm855_vm2, %v205_v1, %v209_v48  ;;  %v283_v14 = vor.u32 %v282_v2, %v279_v59  ;;  %v212_v18 = vshrl.u32 %v875_v56, 16  ;;  %v215_v19 = vshll.u32 %v875_v56, 16  ;;  %v756_v50 = vld [vmem:[%s950_s1 + $0x38] sm:$0xff]  }
  0x1f   : > { %v642_v20 = vcombine.low %v196_v8, %v210_v13  ;;  %v296_v21 = vrot.slane %v294_v10, 5  ;;  %v302_v22 = vrot.slane %v300_v11, 5  ;;  %v221_v23 = vshll.u32 %v178_v62, 16 }
  0x20   : > { %v284_v25 = vrot.slane %v283_v14, 4  ;;  %v214_v26 = vrot.slane %v212_v18, 4  ;;  %v217_v27 = vrot.slane %v215_v19, 5  ;;  %v226_v28 = vshrl.u32 %v881_v61, 16  ;;  %700 = vmatpush3.bf16.msra.mxu0 %v754_v44  ;;  %729 = vmatpush3.bf16.msra.mxu1 %v754_v44 }
  0x21   : > { %320 = vrot.lane.b32.xlu1 %v642_v20, %s769_s15  ;;  %v297_v29 = vor.u32 %v296_v21, %v293_v9  ;;  %v223_v30 = vrot.slane %v221_v23, 5  ;;  %v229_v31 = vshll.u32 %v881_v61, 16  ;;  %v235_v33 = vshll.u32 %v179_v4, 16  ;;  %701 = vmatprep.subr.bf16.mxu0 %v755_v47 }
  0x22   : > { %v289_v36 = vsel %vm855_vm2, %v284_v25, %v288_v3  ;;  %v218_v37 = vor.u32 %v217_v27, %v214_v26  ;;  %v228_v38 = vrot.slane %v226_v28, 4  ;;  %v640_v40 = vcombine.low %v834_v15, %v837_v16  ;;  %722 = vmatprep.subr.bf16.mxu1 %v755_v47 }
  0x23   : > { %v298_v41 = vrot.slane %v297_v29, 4  ;;  %v231_v42 = vrot.slane %v229_v31, 5  ;;  %v237_v43 = vrot.slane %v235_v33, 5  ;;  %v645_v45 = vcombine.low %v848_v32, %v860_v39 }
  0x24   : > { %v219_v46 = vrot.slane %v218_v37, 4  ;;  %v641_v15 = vcombine.low %v875_v56, %v881_v61  ;;  %702 = vmatpush3.bf16.msra.mxu0 %v756_v50  ;;  %730 = vmatpush3.bf16.msra.mxu1 %v756_v50  ;;  %v648_v61 = vld [vmem:[%s951_s2] ss:$0 sm:$0xff] }
  0x25   : > { %v303_v16 = vsel %vm855_vm2, %v298_v41, %v302_v22  ;;  %v232_v48 = vor.u32 %v231_v42, %v228_v38 }
  0x26   : > { %v647_v49 = vcombine.low %v289_v36, %v303_v16  ;;  %v224_v32 = vsel %vm855_vm2, %v219_v46, %v223_v30 }
  0x27   : > { %v233_v39 = vrot.slane %v232_v48, 4 }
  0x28   : > { %342 = vrot.lane.b32.xlu0 %v647_v49, %s769_s15 }
  0x29   : > { %v238_v51 = vsel %vm855_vm2, %v233_v39, %v237_v43 }
  0x2a   : > { %v643_v52 = vcombine.low %v224_v32, %v238_v51 }
  0x2c   : > { %322 = vrot.lane.b32.xlu1 %v643_v52, %s769_s15 }
  0x90   : > { %v341_v53 = vpop.permute.xlu0 %340 }
  0x91   : > { %v355_v54 = vsel %vm344_vm3, %v644_v17, %v341_v53 }
  0x92   : > { %528 = vmatprep.mubr.bf16.mxu0 %v355_v54 }
  0x93   : > { %v321_v55 = vpop.permute.xlu1 %320 }
  0x94   : > { %v347_v56 = vsel %vm344_vm3, %v640_v40, %v321_v55 }
  0x95   : > { %529 = vmatmul.mubr.bf16.vlgmr.msra.gmra.mrb[0].mxu0 %v347_v56 }
  0x9a   : > { %v343_v34 = vpop.permute.xlu0 %342 }
  0x9b   : > { %v359_v57 = vsel %vm344_vm3, %v645_v45, %v343_v34 }
  0x9c   : > { %536 = vmatprep.mubr.bf16.mxu1 %v359_v57 }
  0x9e   : > { %v323_v58 = vpop.permute.xlu1 %322 }
  0x9f   : > { %v351_v59 = vsel %vm344_vm3, %v641_v15, %v323_v58 }
  0xa0   : > { %537 = vmatmul.mubr.bf16.vlgmr.msra.gmra.mrb[0].mxu1 %v351_v59 }
 0x168   : > { %v703_v60 = vpop.f32.mrb[0].mxu0 }
 0x169   : > { %v704_v62 = vpop.f32.mrb[1].mxu0 }
 0x16a   : > { %v705_v63 = vadd.f32 %v704_v62, %v703_v60  ;;  %v706_v5 = vpop.f32.mrb[2].mxu0 }
 0x16b   : > { %v707_v6 = vpop.f32.mrb[3].mxu0 }
 0x16c   : > { %v531_v17 = vadd.f32 %v705_v63, %v648_v61  ;;  %v708_v0 = vadd.f32 %v707_v6, %v706_v5 }
 0x16e   : > { %v534_v1 = vadd.f32 %v708_v0, %v648_v61  ;;  %v545_v2 = vmax.f32 %v531_v17, 0.0 }
 0x170   : > { %v546_v3 = vmax.f32 %v534_v1, 0.0 }
 0x172   : > { %v679_v4 = vpack.c.bf16 %v546_v3, %v545_v2 }
 0x173   : > { %v709_v7 = vpop.f32.mrb[0].mxu1 }
 0x174   : > { %680 = vst [vmem:[%s170_s4] sm:$0xff] %v679_v4   ;;  %v710_v8 = vpop.f32.mrb[1].mxu1 }
 0x175   : > { %v711_v9 = vadd.f32 %v710_v8, %v709_v7  ;;  %v712_v10 = vpop.f32.mrb[2].mxu1 }
 0x176   : > { %v713_v11 = vpop.f32.mrb[3].mxu1 }
 0x177   : > { %v539_v12 = vadd.f32 %v711_v9, %v648_v61  ;;  %v714_v13 = vadd.f32 %v713_v11, %v712_v10 }
 0x179   : > { %v542_v14 = vadd.f32 %v714_v13, %v648_v61  ;;  %v547_v18 = vmax.f32 %v539_v12, 0.0 }
 0x17b   : > { %v548_v19 = vmax.f32 %v542_v14, 0.0 }
 0x17d   : > { %v684_v20 = vpack.c.bf16 %v548_v19, %v547_v18 }
 0x17f   : > { %686 = vst [vmem:[%s170_s4 + $0x8] sm:$0xff] %v684_v20  }
 0x180 PF: > { %s13_s12 = sadd.s32 1, %s767_s12  }
 0x181   : > { %p10_p4 = scmp.ge.s32.totalorder %s13_s12, 4  }
 0x183   :  { %12 = sbr.rel (!%p10_p4) target bundleno = 1 (0x1), region = 63 }

// kernel: vqvae_forward.4
= control target key start
LH: loop header
LB: loop body
LE: loop exit
PB: predicated region body
PF: predicated region fallthrough
CT: control target
= control target key end

     0   :  { %s2023_s12 = smov 0   ;;  %s2025_s13 = smov 0   ;;  %s2553_s0 = inlined_call_operand.vmem [shape: bf16[4,2,9,9,1], index: 0, kind: input, shape index: {}]   ;;  %s2554_s1 = inlined_call_operand.vmem [shape: bf16[9,32], index: 1, kind: input, shape index: {}]   ;;  %s2555_s2 = inlined_call_operand.vmem [shape: f32[1,32], index: 2, kind: input, shape index: {}]   ;;  %s2556_s3 = inlined_call_operand.vmem [shape: bf16[2,64,32], index: 3, kind: output, shape index: {}]  }
   0x1   :  { %s2027_s14 = smov 0  }
   0x2 LB: > { %s1684_s15 = sadd.s32 4294967295, %s2000_s14   ;;  %s2040_s16 = sadd.s32 1, %s2000_s14   ;;  %s2000_s14 = sphi %s2027_s14, %s2562_s14   ;;  %s1996_s13 = sphi %s2025_s13, %s2561_s13   ;;  %s1992_s12 = sphi %s2023_s12, %s2560_s12  }
   0x3   : > { %s17_s17 = ssub.s32 %s2000_s14, %s2040_s16  ;;  %s20_s18 = sadd.s32 1, %s1996_s13 }
   0x4   : > { %p18_p0 = scmp.eq.s32.totalorder %s17_s17, 0  ;;  %p27_p1 = scmp.ne.s32.totalorder %s1996_s13, %s1992_s12 }
   0x5   : > { %p28_p2 = scmp.eq.s32.totalorder %s2000_s14, 0  ;;  %p1687_p4 = scmp.ge.s32.totalorder %s2000_s14, 2 }
   0x6   : > { %s2049_s19 = scalar_select %p18_p0, %s1996_s13, %s20_s18  }
   0x7   : > { %p29_p3 = por %p28_p2, %p27_p1  ;;  %127 = sbr.rel (%p1687_p4) target bundleno = 37 (0x25), region = 24 }
   0xe   : > { %130 = sbr.rel (!%p29_p3) target bundleno = 37 (0x25), region = 28  ;;  %s132_s20 = sand.u32 (%p29_p3), 1, %s1996_s13  }
   0xf   : > { %s1769_s21 = smul.u32 (%p29_p3), 72, %s2000_s14 }
  0x10   : > { %s1768_s22 = smul.u32 (%p29_p3), 288, %s132_s20 }
  0x11   : > { %s2057_s25 = scalar_lea.vmem (%p29_p3), %s2553_s0, %s1769_s21 }
  0x12   : > { %v153_v0 = vld [vmem:[%s2057_s25] sm:$0xff] (%p29_p3)   ;;  %v157_v1 = vld [vmem:[%s2057_s25 + $0x8] sm:$0xff] (%p29_p3)   ;;  %v161_v2 = vld [vmem:[%s2057_s25 + $0x10] sm:$0xff] (%p29_p3)   ;;  %s2062_s26 = scalar_lea.vmem (%p29_p3), [#allocation2], %s1768_s22 }
  0x13   : > { %154 = vst [vmem:[%s2062_s26] sm:$0xff] (%p29_p3), %v153_v0   ;;  %158 = vst [vmem:[%s2062_s26 + $0x8] sm:$0xff] (%p29_p3), %v157_v1   ;;  %v165_v3 = vld [vmem:[%s2057_s25 + $0x18] sm:$0xff] (%p29_p3)   ;;  %v169_v4 = vld [vmem:[%s2057_s25 + $0x20] sm:$0xff] (%p29_p3)  }
  0x14   : > { %162 = vst [vmem:[%s2062_s26 + $0x10] sm:$0xff] (%p29_p3), %v161_v2   ;;  %v173_v5 = vld [vmem:[%s2057_s25 + $0x28] sm:$0xff] (%p29_p3)   ;;  %166 = vst [vmem:[%s2062_s26 + $0x18] sm:$0xff] (%p29_p3), %v165_v3   ;;  %v177_v6 = vld [vmem:[%s2057_s25 + $0x30] sm:$0xff] (%p29_p3)  }
  0x15   : > { %170 = vst [vmem:[%s2062_s26 + $0x20] sm:$0xff] %v169_v4   ;;  %174 = vst [vmem:[%s2062_s26 + $0x28] sm:$0xff] %v173_v5   ;;  %v181_v7 = vld [vmem:[%s2057_s25 + $0x38] sm:$0xff]   ;;  %v185_v8 = vld [vmem:[%s2057_s25 + $0x40] sm:$0xff]  }
  0x16   : > { %178 = vst [vmem:[%s2062_s26 + $0x30] sm:$0xff] %v177_v6   ;;  %182 = vst [vmem:[%s2062_s26 + $0x38] sm:$0xff] %v181_v7   ;;  %v189_v9 = vld [vmem:[%s2057_s25 + $0x90] sm:$0xff]   ;;  %v193_v10 = vld [vmem:[%s2057_s25 + $0x98] sm:$0xff]  }
  0x17   : > { %186 = vst [vmem:[%s2062_s26 + $0x40] sm:$0xff] %v185_v8   ;;  %v197_v11 = vld [vmem:[%s2057_s25 + $0xa0] sm:$0xff]   ;;  %190 = vst [vmem:[%s2062_s26 + $0x48] sm:$0xff] %v189_v9   ;;  %v201_v12 = vld [vmem:[%s2057_s25 + $0xa8] sm:$0xff]  }
  0x18   : > { %194 = vst [vmem:[%s2062_s26 + $0x50] sm:$0xff] %v193_v10   ;;  %198 = vst [vmem:[%s2062_s26 + $0x58] sm:$0xff] %v197_v11   ;;  %v205_v13 = vld [vmem:[%s2057_s25 + $0xb0] sm:$0xff]   ;;  %v209_v14 = vld [vmem:[%s2057_s25 + $0xb8] sm:$0xff]  }
  0x19   : > { %202 = vst [vmem:[%s2062_s26 + $0x60] sm:$0xff] %v201_v12   ;;  %206 = vst [vmem:[%s2062_s26 + $0x68] sm:$0xff] %v205_v13   ;;  %v213_v15 = vld [vmem:[%s2057_s25 + $0xc0] sm:$0xff]   ;;  %v217_v16 = vld [vmem:[%s2057_s25 + $0xc8] sm:$0xff]  }
  0x1a   : > { %210 = vst [vmem:[%s2062_s26 + $0x70] sm:$0xff] %v209_v14   ;;  %v221_v17 = vld [vmem:[%s2057_s25 + $0xd0] sm:$0xff]   ;;  %214 = vst [vmem:[%s2062_s26 + $0x78] sm:$0xff] %v213_v15   ;;  %v225_v18 = vld [vmem:[%s2057_s25 + $0x120] sm:$0xff]  }
  0x1b   : > { %218 = vst [vmem:[%s2062_s26 + $0x80] sm:$0xff] %v217_v16   ;;  %222 = vst [vmem:[%s2062_s26 + $0x88] sm:$0xff] %v221_v17   ;;  %v229_v19 = vld [vmem:[%s2057_s25 + $0x128] sm:$0xff]   ;;  %v233_v20 = vld [vmem:[%s2057_s25 + $0x130] sm:$0xff]  }
  0x1c   : > { %226 = vst [vmem:[%s2062_s26 + $0x90] sm:$0xff] %v225_v18   ;;  %230 = vst [vmem:[%s2062_s26 + $0x98] sm:$0xff] %v229_v19   ;;  %v237_v21 = vld [vmem:[%s2057_s25 + $0x138] sm:$0xff]   ;;  %v241_v22 = vld [vmem:[%s2057_s25 + $0x140] sm:$0xff]  }
  0x1d   : > { %234 = vst [vmem:[%s2062_s26 + $0xa0] sm:$0xff] %v233_v20   ;;  %v245_v23 = vld [vmem:[%s2057_s25 + $0x148] sm:$0xff]   ;;  %238 = vst [vmem:[%s2062_s26 + $0xa8] sm:$0xff] %v237_v21   ;;  %v249_v24 = vld [vmem:[%s2057_s25 + $0x150] sm:$0xff]  }
  0x1e   : > { %242 = vst [vmem:[%s2062_s26 + $0xb0] sm:$0xff] %v241_v22   ;;  %246 = vst [vmem:[%s2062_s26 + $0xb8] sm:$0xff] %v245_v23   ;;  %v253_v25 = vld [vmem:[%s2057_s25 + $0x158] sm:$0xff]   ;;  %v257_v26 = vld [vmem:[%s2057_s25 + $0x160] sm:$0xff]  }
  0x1f   : > { %250 = vst [vmem:[%s2062_s26 + $0xc0] sm:$0xff] %v249_v24   ;;  %254 = vst [vmem:[%s2062_s26 + $0xc8] sm:$0xff] %v253_v25   ;;  %v261_v27 = vld [vmem:[%s2057_s25 + $0x1b0] sm:$0xff]   ;;  %v265_v28 = vld [vmem:[%s2057_s25 + $0x1b8] sm:$0xff]  }
  0x20   : > { %258 = vst [vmem:[%s2062_s26 + $0xd0] sm:$0xff] %v257_v26   ;;  %v269_v29 = vld [vmem:[%s2057_s25 + $0x1c0] sm:$0xff]   ;;  %262 = vst [vmem:[%s2062_s26 + $0xd8] sm:$0xff] %v261_v27   ;;  %v273_v30 = vld [vmem:[%s2057_s25 + $0x1c8] sm:$0xff]  }
  0x21   : > { %266 = vst [vmem:[%s2062_s26 + $0xe0] sm:$0xff] %v265_v28   ;;  %270 = vst [vmem:[%s2062_s26 + $0xe8] sm:$0xff] %v269_v29   ;;  %v277_v31 = vld [vmem:[%s2057_s25 + $0x1d0] sm:$0xff]   ;;  %v281_v32 = vld [vmem:[%s2057_s25 + $0x1d8] sm:$0xff]  }
  0x22   : > { %274 = vst [vmem:[%s2062_s26 + $0xf0] sm:$0xff] %v273_v30   ;;  %278 = vst [vmem:[%s2062_s26 + $0xf8] sm:$0xff] %v277_v31   ;;  %v285_v33 = vld [vmem:[%s2057_s25 + $0x1e0] sm:$0xff]   ;;  %v289_v34 = vld [vmem:[%s2057_s25 + $0x1e8] sm:$0xff]  }
  0x23   : > { %282 = vst [vmem:[%s2062_s26 + $0x100] sm:$0xff] %v281_v32   ;;  %v293_v35 = vld [vmem:[%s2057_s25 + $0x1f0] sm:$0xff]   ;;  %286 = vst [vmem:[%s2062_s26 + $0x108] sm:$0xff] %v285_v33  }
  0x24   : > { %290 = vst [vmem:[%s2062_s26 + $0x110] sm:$0xff] %v289_v34   ;;  %294 = vst [vmem:[%s2062_s26 + $0x118] sm:$0xff] %v293_v35  }
  0x25 PF: > { %p1689_p5 = scmp.ge.s32.totalorder %s2000_s14, 1  ;;  %p462_p6 = scmp.lt.s32.totalorder %s2000_s14, 3 }
  0x27   : > { %p463_p7 = pnand %p1689_p5, %p462_p6 }
  0x28   : > { %s469_s27 = sand.u32 (!%p463_p7), 1, %s1992_s12   ;;  %v2002_v36 = vmov (!%p463_p7), 0   ;;  %vm522_vm0 = vsmask.f32 (!%p463_p7), 3328  ;;  %vm523_vm1 = vsmask.f32 (!%p463_p7), 7440 }
  0x29   : > { %466 = sbr.rel (%p463_p7) target bundleno = 275 (0x113), region = 69  ;;  %1807 = vset.pattern.permute.xlu1 (!%p463_p7), %v2002_v36  ;;  %1796 = vset.pattern.permute.xlu0 (!%p463_p7), %v2002_v36  ;;  %vm2179_vm2 = vmor (!%p463_p7), %vm522_vm0, %vm523_vm1  ;;  %p2492_p8 = scmp.lt.s32.totalorder (!%p463_p7), %s1684_s15, 1  ;;  %vm1614_vm3 = vcmask (!%p463_p7), 257024  }
  0x2a   : > { %s1770_s28 = smul.u32 (!%p463_p7), 288, %s469_s27 }
  0x2c   : > { %s2136_s29 = scalar_lea.vmem (!%p463_p7), [#allocation2], %s1770_s28 }
  0x2d   : > { %v501_v37 = vld [vmem:[%s2136_s29 + $0x20] sm:$0xf] (!%p463_p7)  ;;  %v502_v38 = vld [vmem:[%s2136_s29 + $0x28] sm:$0xf] (!%p463_p7)  ;;  %v503_v57 = vld [vmem:[%s2136_s29 + $0x30] sm:$0xf] (!%p463_p7) }
  0x2e   : > { %v497_v39 = vld [vmem:[%s2136_s29] sm:$0xf] (!%p463_p7)  ;;  %v596_v40 = vshrl.u32 (!%p463_p7), %v502_v38, 16  ;;  %v599_v41 = vshll.u32 (!%p463_p7), %v502_v38, 16  ;;  %v943_v42 = vunpack.c.l.bf16 (!%p463_p7), %v501_v37  ;;  %v944_v43 = vunpack.c.l.bf16 (!%p463_p7), %v502_v38  ;;  %v498_v44 = vld [vmem:[%s2136_s29 + $0x8] sm:$0xf] (!%p463_p7) }
  0x2f   : > { %v582_v45 = vshrl.u32 (!%p463_p7), %v501_v37, 16  ;;  %v585_v46 = vshll.u32 (!%p463_p7), %v501_v37, 16  ;;  %v540_v47 = vshrl.u32 (!%p463_p7), %v498_v44, 16  ;;  %v543_v48 = vshll.u32 (!%p463_p7), %v498_v44, 16  ;;  %v504_v62 = vld [vmem:[%s2136_s29 + $0x38] sm:$0xf] (!%p463_p7) }
  0x30   : > { %v2142_v49 = vrot.slane %v596_v40, 4  ;;  %v2144_v50 = vrot.slane %v599_v41, 5  ;;  %v1808_v51 = vpack.i.bf16 %v944_v43, %v943_v42  ;;  %v939_v52 = vunpack.c.l.bf16 %v497_v39  ;;  %v499_v7 = vld [vmem:[%s2136_s29 + $0x10] sm:$0xf]  ;;  %v500_v8 = vld [vmem:[%s2136_s29 + $0x18] sm:$0xf] }
  0x31   : > { %v2146_v53 = vrot.slane %v582_v45, 4  ;;  %v2148_v54 = vrot.slane %v585_v46, 5  ;;  %v2150_v55 = vrot.slane %v540_v47, 4  ;;  %v2152_v56 = vrot.slane %v543_v48, 5  ;;  %v1694_v17 = vld [vmem:[%s2136_s29 + $0x58] ss:$8 sps:$4 sm:$0xff]  }
  0x32   : > { %v602_v58 = vor.u32 %v2144_v50, %v2142_v49  ;;  %1809 = vperm.xlu1 %1807, %v1808_v51   ;;  %v940_v59 = vunpack.c.l.bf16 %v498_v44  ;;  %v526_v60 = vshrl.u32 %v497_v39, 16  ;;  %v529_v61 = vshll.u32 %v497_v39, 16  ;;  %v1692_v22 = vld [vmem:[%s2136_s29 + $0x48] ss:$8 sps:$4 sm:$0xff]   ;;  %v1698_v23 = vld [vmem:[%s2136_s29 + $0x78] ss:$8 sps:$4 sm:$0xff]  }
  0x33   : > { %v588_v63 = vor.u32 %v2148_v54, %v2146_v53  ;;  %v546_v0 = vor.u32 %v2152_v56, %v2150_v55  ;;  %v624_v1 = vshrl.u32 %v504_v62, 16  ;;  %v627_v2 = vshll.u32 %v504_v62, 16  ;;  %v1696_v28 = vld [vmem:[%s2136_s29 + $0x68] ss:$8 sps:$4 sm:$0xff]   ;;  %v516_v33 = vld [vmem:[%s2136_s29 + $0x14] sm:$0x1] }
  0x34   : > { %v1797_v3 = vpack.i.bf16 %v940_v59, %v939_v52  ;;  %v528_v4 = vrot.slane %v526_v60, 4  ;;  %v531_v5 = vrot.slane %v529_v61, 5  ;;  %v945_v6 = vunpack.c.l.bf16 %v503_v57  ;;  %v517_v38 = vld [vmem:[%s2136_s29 + $0x1c] sm:$0x1]  ;;  %v514_v43 = vld [vmem:[%s2136_s29 + $0x4] sm:$0x1] }
  0x35   : > { %v2164_v9 = vrot.slane %v624_v1, 4  ;;  %v2166_v10 = vrot.slane %v627_v2, 5  ;;  %v946_v11 = vunpack.c.l.bf16 %v504_v62  ;;  %v610_v12 = vshrl.u32 %v503_v57, 16  ;;  %v515_v48 = vld [vmem:[%s2136_s29 + $0xc] sm:$0x1]  ;;  %s2564_s15 = smov (!%p2492_p8, %s1684_s15), 1 }
  0x36   : > { %1798 = vperm.xlu0 %1796, %v1797_v3   ;;  %v532_v13 = vor.u32 %v531_v5, %v528_v4  ;;  %v613_v14 = vshll.u32 %v503_v57, 16  ;;  %v568_v15 = vshrl.u32 %v500_v8, 16  ;;  %v571_v16 = vshll.u32 %v500_v8, 16  ;;  %v520_v60 = vld [vmem:[%s2136_s29 + $0x34] sm:$0x1]  ;;  %s1759_s14 = sshll.u32 %s2564_s15, 5 }
  0x37   : > { %v1813_v18 = vpack.i.bf16 %v946_v11, %v945_v6  ;;  %v612_v19 = vrot.slane %v610_v12, 4  ;;  %v941_v20 = vunpack.c.l.bf16 %v499_v7  ;;  %v942_v21 = vunpack.c.l.bf16 %v500_v8  ;;  %v521_v4 = vld [vmem:[%s2136_s29 + $0x3c] sm:$0x1]  ;;  %s2523_s22 = scalar_lea.vmem %s2556_s3, %s1759_s14 }
  0x38   : > { %v615_v24 = vrot.slane %v613_v14, 5  ;;  %v570_v25 = vrot.slane %v568_v15, 4  ;;  %v573_v26 = vrot.slane %v571_v16, 5  ;;  %v554_v27 = vshrl.u32 %v499_v7, 16 }
  0x39   : > { %1814 = vperm.xlu1 %1807, %v1813_v18   ;;  %v1802_v29 = vpack.i.bf16 %v942_v21, %v941_v20  ;;  %v557_v30 = vshll.u32 %v499_v7, 16  ;;  %v1009_v31 = vunpack.c.l.bf16 %v1694_v17  ;;  %v1010_v32 = vunpack.c.h.bf16 %v1694_v17  ;;  %v518_v20 = vld [vmem:[%s2136_s29 + $0x24] sm:$0x1]  ;;  %v519_v21 = vld [vmem:[%s2136_s29 + $0x2c] sm:$0x1] }
  0x3a   : > { %v556_v34 = vrot.slane %v554_v27, 4  ;;  %v1007_v35 = vunpack.c.l.bf16 %v1692_v22  ;;  %v1008_v36 = vunpack.c.h.bf16 %v1692_v22  ;;  %v1013_v37 = vunpack.c.l.bf16 %v1698_v23 }
  0x3b   : > { %v559_v39 = vrot.slane %v557_v30, 5  ;;  %1803 = vperm.xlu0 %1796, %v1802_v29   ;;  %v1823_v40 = vpack.i.bf16 %v1010_v32, %v1009_v31  ;;  %v1014_v41 = vunpack.c.h.bf16 %v1698_v23  ;;  %v1011_v42 = vunpack.c.l.bf16 %v1696_v28 }
  0x3c   : > { %v1818_v44 = vpack.i.bf16 %v1008_v36, %v1007_v35  ;;  %v1012_v45 = vunpack.c.h.bf16 %v1696_v28  ;;  %v563_v46 = vshll.u32 %v516_v33, 16  ;;  %v574_v47 = vor.u32 %v573_v26, %v570_v25  ;;  %v1702_v28 = vld [vmem:[%s2136_s29 + $0xa0] sm:$0xf]  ;;  %v1703_v33 = vld [vmem:[%s2136_s29 + $0xa8] sm:$0xf] }
  0x3d   : > { %1824 = vperm.xlu1 %1807, %v1823_v40   ;;  %v1833_v51 = vpack.i.bf16 %v1014_v41, %v1013_v37  ;;  %v560_v52 = vor.u32 %v559_v39, %v556_v34  ;;  %v577_v57 = vshll.u32 %v517_v38, 16  ;;  %v533_v59 = vrot.slane %v532_v13, 4  ;;  %v1700_v40 = vld [vmem:[%s2136_s29 + $0x90] sm:$0xf] }
  0x3e   : > { %v1828_v61 = vpack.i.bf16 %v1012_v45, %v1011_v42  ;;  %v565_v1 = vrot.slane %v563_v46, 5  ;;  %v575_v2 = vrot.slane %v574_v47, 4  ;;  %v535_v3 = vshll.u32 %v514_v43, 16  ;;  %v1701_v45 = vld [vmem:[%s2136_s29 + $0x98] sm:$0xf] }
  0x3f   : > { %1819 = vperm.xlu0 %1796, %v1818_v44   ;;  %v561_v5 = vrot.slane %v560_v52, 4  ;;  %v579_v6 = vrot.slane %v577_v57, 5  ;;  %v547_v7 = vrot.slane %v546_v0, 4  ;;  %v549_v8 = vshll.u32 %v515_v48, 16 }
  0x40   : > { %v537_v11 = vrot.slane %v535_v3, 5  ;;  %v616_v12 = vor.u32 %v615_v24, %v612_v19  ;;  %v619_v13 = vshll.u32 %v520_v60, 16  ;;  %v630_v14 = vor.u32 %v2166_v10, %v2164_v9 }
  0x41   : > { %1834 = vperm.xlu1 %1807, %v1833_v51   ;;  %v566_v15 = vsel %vm2179_vm2, %v561_v5, %v565_v1  ;;  %v580_v16 = vsel %vm2179_vm2, %v575_v2, %v579_v6  ;;  %v551_v17 = vrot.slane %v549_v8, 5  ;;  %v633_v18 = vshll.u32 %v521_v4, 16  ;;  %v1706_v4 = vld [vmem:[%s2136_s29 + $0xc0] sm:$0xf]  ;;  %v1707_v5 = vld [vmem:[%s2136_s29 + $0xc8] sm:$0xf] }
  0x42   : > { %v1079_v55 = vunpack.c.l.bf16 %v566_v15  ;;  %v1080_v56 = vunpack.c.l.bf16 %v580_v16  ;;  %v538_v0 = vsel %vm2179_vm2, %v533_v59, %v537_v11  ;;  %v617_v19 = vrot.slane %v616_v12, 4  ;;  %v1704_v12 = vld [vmem:[%s2136_s29 + $0xb0] sm:$0xf] }
  0x43   : > { %1829 = vperm.xlu0 %1796, %v1828_v61   ;;  %v552_v9 = vsel %vm2179_vm2, %v547_v7, %v551_v17  ;;  %v1077_v10 = vunpack.c.l.bf16 %v538_v0  ;;  %v621_v22 = vrot.slane %v619_v13, 5  ;;  %v631_v23 = vrot.slane %v630_v14, 4  ;;  %v1705_v17 = vld [vmem:[%s2136_s29 + $0xb8] sm:$0xf] }
  0x44   : > { %v1843_v24 = vpack.i.bf16 %v1080_v56, %v1079_v55  ;;  %v1078_v25 = vunpack.c.l.bf16 %v552_v9  ;;  %v635_v26 = vrot.slane %v633_v18, 5  ;;  %v589_v27 = vrot.slane %v588_v63, 4 }
  0x45   : > { %v622_v29 = vsel %vm2179_vm2, %v617_v19, %v621_v22  ;;  %v591_v30 = vshll.u32 %v518_v20, 16  ;;  %v603_v31 = vrot.slane %v602_v58, 4  ;;  %v605_v32 = vshll.u32 %v519_v21, 16 }
  0x46   : > { %1844 = vperm.xlu1 %1807, %v1843_v24   ;;  %v1838_v34 = vpack.i.bf16 %v1078_v25, %v1077_v10  ;;  %v636_v35 = vsel %vm2179_vm2, %v631_v23, %v635_v26  ;;  %v1083_v36 = vunpack.c.l.bf16 %v622_v29  ;;  %v714_v53 = vshrl.u32 %v1703_v33, 16  ;;  %v1710_v10 = vld [vmem:[%s2136_s29 + $0xe8] ss:$8 sps:$4 sm:$0xff]   ;;  %v1708_v26 = vld [vmem:[%s2136_s29 + $0xd8] ss:$8 sps:$4 sm:$0xff]  }
  0x47   : > { %v1084_v54 = vunpack.c.l.bf16 %v636_v35  ;;  %v593_v63 = vrot.slane %v591_v30, 5  ;;  %v607_v37 = vrot.slane %v605_v32, 5  ;;  %v717_v38 = vshll.u32 %v1703_v33, 16  ;;  %v1712_v32 = vld [vmem:[%s2136_s29 + $0xf8] ss:$8 sps:$4 sm:$0xff]  }
  0x48   : > { %1839 = vperm.xlu0 %1796, %v1838_v34   ;;  %v2211_v39 = vrot.slane %v714_v53, 4  ;;  %v1147_v49 = vunpack.c.l.bf16 %v1702_v28  ;;  %v1148_v50 = vunpack.c.l.bf16 %v1703_v33  ;;  %v700_v58 = vshrl.u32 %v1702_v28, 16  ;;  %v1718_v53 = vld [vmem:[%s2136_s29 + $0xa4] sm:$0x1] }
  0x49   : > { %v1853_v41 = vpack.i.bf16 %v1084_v54, %v1083_v36  ;;  %v594_v42 = vsel %vm2179_vm2, %v589_v27, %v593_v63  ;;  %v608_v43 = vsel %vm2179_vm2, %v603_v31, %v607_v37  ;;  %v2218_v44 = vrot.slane %v717_v38, 5  ;;  %v1714_v27 = vld [vmem:[%s2136_s29 + $0x108] ss:$8 sps:$4 sm:$0xff]  }
  0x4a   : > { %v1081_v46 = vunpack.c.l.bf16 %v594_v42  ;;  %v1082_v47 = vunpack.c.l.bf16 %v608_v43  ;;  %v1863_v48 = vpack.i.bf16 %v1148_v50, %v1147_v49  ;;  %v2221_v51 = vrot.slane %v700_v58, 4  ;;  %v1719_v49 = vld [vmem:[%s2136_s29 + $0xac] sm:$0x1]  ;;  %v1716_v42 = vld [vmem:[%s2136_s29 + $0x94] sm:$0x1] }
  0x4b   : > { %1854 = vperm.xlu1 %1807, %v1853_v41   ;;  %v703_v52 = vshll.u32 %v1702_v28, 16  ;;  %v686_v57 = vshrl.u32 %v1701_v45, 16  ;;  %v689_v59 = vshll.u32 %v1701_v45, 16  ;;  %v1145_v60 = vunpack.c.l.bf16 %v1700_v40 }
  0x4c   : > { %v1848_v61 = vpack.i.bf16 %v1082_v47, %v1081_v46  ;;  %v1146_v1 = vunpack.c.l.bf16 %v1701_v45  ;;  %v672_v2 = vshrl.u32 %v1700_v40, 16  ;;  %v675_v3 = vshll.u32 %v1700_v40, 16 }
  0x4d   : > { %v705_v6 = vrot.slane %v703_v52, 5  ;;  %v2225_v7 = vrot.slane %v686_v57, 4  ;;  %v2227_v8 = vrot.slane %v689_v59, 5  ;;  %v770_v11 = vshrl.u32 %v1707_v5, 16  ;;  %v1717_v59 = vld [vmem:[%s2136_s29 + $0x9c] sm:$0x1] }
  0x4e   : > { %1849 = vperm.xlu0 %1796, %v1848_v61   ;;  %v1858_v13 = vpack.i.bf16 %v1146_v1, %v1145_v60  ;;  %v674_v14 = vrot.slane %v672_v2, 4  ;;  %v677_v15 = vrot.slane %v675_v3, 5  ;;  %v773_v16 = vshll.u32 %v1707_v5, 16 }
  0x4f   : > { %1864 = vperm.xlu1 %1807, %v1863_v48   ;;  %v2231_v18 = vrot.slane %v770_v11, 4  ;;  %v1151_v55 = vunpack.c.l.bf16 %v1706_v4  ;;  %v1152_v56 = vunpack.c.l.bf16 %v1707_v5  ;;  %v756_v0 = vshrl.u32 %v1706_v4, 16 }
  0x50   : > { %v2233_v19 = vrot.slane %v773_v16, 5  ;;  %v759_v20 = vshll.u32 %v1706_v4, 16  ;;  %v742_v21 = vshrl.u32 %v1705_v17, 16  ;;  %v745_v9 = vshll.u32 %v1705_v17, 16  ;;  %v1722_v4 = vld [vmem:[%s2136_s29 + $0xc4] sm:$0x1] }
  0x51   : > { %v1873_v22 = vpack.i.bf16 %v1152_v56, %v1151_v55  ;;  %v758_v23 = vrot.slane %v756_v0, 4  ;;  %v1149_v24 = vunpack.c.l.bf16 %v1704_v12  ;;  %v1150_v25 = vunpack.c.l.bf16 %v1705_v17  ;;  %v1720_v56 = vld [vmem:[%s2136_s29 + $0xb4] sm:$0x1] }
  0x52   : > { %1859 = vperm.xlu0 %1796, %v1858_v13   ;;  %v761_v28 = vrot.slane %v759_v20, 5  ;;  %v2238_v29 = vrot.slane %v742_v21, 4  ;;  %v2240_v30 = vrot.slane %v745_v9, 5  ;;  %v728_v31 = vshrl.u32 %v1704_v12, 16  ;;  %v1723_v13 = vld [vmem:[%s2136_s29 + $0xcc] sm:$0x1] }
  0x53   : > { %1874 = vperm.xlu1 %1807, %v1873_v22   ;;  %v1868_v33 = vpack.i.bf16 %v1150_v25, %v1149_v24  ;;  %v731_v34 = vshll.u32 %v1704_v12, 16  ;;  %v1217_v35 = vunpack.c.l.bf16 %v1710_v10  ;;  %v1218_v36 = vunpack.c.h.bf16 %v1710_v10  ;;  %v1721_v25 = vld [vmem:[%s2136_s29 + $0xbc] sm:$0x1] }
  0x54   : > { %v730_v54 = vrot.slane %v728_v31, 4  ;;  %v1215_v63 = vunpack.c.l.bf16 %v1708_v26  ;;  %v1216_v37 = vunpack.c.h.bf16 %v1708_v26  ;;  %v1221_v38 = vunpack.c.l.bf16 %v1714_v27 }
  0x55   : > { %v733_v50 = vrot.slane %v731_v34, 5  ;;  %v1883_v58 = vpack.i.bf16 %v1218_v36, %v1217_v35  ;;  %v1222_v40 = vunpack.c.h.bf16 %v1714_v27  ;;  %v1219_v41 = vunpack.c.l.bf16 %v1712_v32  ;;  %v1726_v36 = vld [vmem:[%s2136_s29 + $0x18] sm:$0xf] }
  0x56   : > { %1869 = vperm.xlu0 %1796, %v1868_v33   ;;  %v1878_v43 = vpack.i.bf16 %v1216_v37, %v1215_v63  ;;  %v1220_v45 = vunpack.c.h.bf16 %v1712_v32  ;;  %v706_v46 = vor.u32 %v705_v6, %v2221_v51  ;;  %v709_v47 = vshll.u32 %v1718_v53, 16  ;;  %v1727_v53 = vld [vmem:[%s2136_s29 + $0x20] sm:$0xf] }
  0x57   : > { %1884 = vperm.xlu1 %1807, %v1883_v58   ;;  %v1893_v48 = vpack.i.bf16 %v1222_v40, %v1221_v38  ;;  %v720_v52 = vor.u32 %v2218_v44, %v2211_v39  ;;  %v723_v57 = vshll.u32 %v1719_v49, 16  ;;  %v678_v60 = vor.u32 %v677_v15, %v674_v14 }
  0x58   : > { %v1888_v61 = vpack.i.bf16 %v1220_v45, %v1219_v41  ;;  %v707_v1 = vrot.slane %v706_v46, 4  ;;  %v711_v2 = vrot.slane %v709_v47, 5  ;;  %v681_v3 = vshll.u32 %v1716_v42, 16 }
  0x59   : > { %v721_v5 = vrot.slane %v720_v52, 4  ;;  %v725_v11 = vrot.slane %v723_v57, 5  ;;  %v679_v12 = vrot.slane %v678_v60, 4  ;;  %v692_v51 = vor.u32 %v2227_v8, %v2225_v7  ;;  %v1725_v52 = vld [vmem:[%s2136_s29 + $0x10] sm:$0xf] }
  0x5a   : > { %1879 = vperm.xlu0 %1796, %v1878_v43   ;;  %v712_v39 = vsel %vm2179_vm2, %v707_v1, %v711_v2  ;;  %v683_v44 = vrot.slane %v681_v3, 5  ;;  %v695_v6 = vshll.u32 %v1717_v59, 16  ;;  %v762_v14 = vor.u32 %v761_v28, %v758_v23  ;;  %v1724_v43 = vld [vmem:[%s2136_s29 + $0x8] sm:$0xf] }
  0x5b   : > { %1894 = vperm.xlu1 %1807, %v1893_v48   ;;  %v726_v15 = vsel %vm2179_vm2, %v721_v5, %v725_v11  ;;  %v1285_v16 = vunpack.c.l.bf16 %v712_v39  ;;  %v693_v17 = vrot.slane %v692_v51, 4  ;;  %v765_v55 = vshll.u32 %v1722_v4, 16  ;;  %v1730_v5 = vld [vmem:[%s2136_s29 + $0x38] sm:$0xf]  ;;  %v1731_v11 = vld [vmem:[%s2136_s29 + $0x40] sm:$0xf] }
  0x5c   : > { %v1286_v0 = vunpack.c.l.bf16 %v726_v15  ;;  %v684_v7 = vsel %vm2179_vm2, %v679_v12, %v683_v44  ;;  %v697_v8 = vrot.slane %v695_v6, 5  ;;  %v763_v20 = vrot.slane %v762_v14, 4 }
  0x5d   : > { %v1283_v21 = vunpack.c.l.bf16 %v684_v7  ;;  %v767_v9 = vrot.slane %v765_v55, 5  ;;  %v776_v10 = vor.u32 %v2233_v19, %v2231_v18  ;;  %v779_v22 = vshll.u32 %v1723_v13, 16  ;;  %v1729_v7 = vld [vmem:[%s2136_s29 + $0x30] sm:$0xf] }
  0x5e   : > { %1889 = vperm.xlu0 %1796, %v1888_v61   ;;  %v1903_v23 = vpack.i.bf16 %v1286_v0, %v1285_v16  ;;  %v698_v24 = vsel %vm2179_vm2, %v693_v17, %v697_v8  ;;  %v734_v26 = vor.u32 %v733_v50, %v730_v54  ;;  %v737_v27 = vshll.u32 %v1720_v56, 16  ;;  %v1728_v0 = vld [vmem:[%s2136_s29 + $0x28] sm:$0xf] }
  0x5f   : > { %v1284_v28 = vunpack.c.l.bf16 %v698_v24  ;;  %v768_v31 = vsel %vm2179_vm2, %v763_v20, %v767_v9  ;;  %v777_v32 = vrot.slane %v776_v10, 4  ;;  %v781_v33 = vrot.slane %v779_v22, 5 }
  0x60   : > { %1904 = vperm.xlu1 %1807, %v1903_v23   ;;  %v1289_v34 = vunpack.c.l.bf16 %v768_v31  ;;  %v735_v18 = vrot.slane %v734_v26, 4  ;;  %v739_v19 = vrot.slane %v737_v27, 5  ;;  %v748_v35 = vor.u32 %v2240_v30, %v2238_v29 }
  0x61   : > { %v1898_v63 = vpack.i.bf16 %v1284_v28, %v1283_v21  ;;  %v782_v54 = vsel %vm2179_vm2, %v777_v32, %v781_v33  ;;  %v751_v37 = vshll.u32 %v1721_v25, 16  ;;  %v860_v38 = vshrl.u32 %v1727_v53, 16  ;;  %v1734_v25 = vld [vmem:[%s2136_s29 + $0x60] ss:$8 sps:$4 sm:$0xff]   ;;  %v1732_v32 = vld [vmem:[%s2136_s29 + $0x50] ss:$8 sps:$4 sm:$0xff]  }
  0x62   : > { %v1290_v49 = vunpack.c.l.bf16 %v782_v54  ;;  %v740_v50 = vsel %vm2179_vm2, %v735_v18, %v739_v19  ;;  %v749_v58 = vrot.slane %v748_v35, 4  ;;  %v863_v40 = vshll.u32 %v1727_v53, 16  ;;  %v1738_v33 = vld [vmem:[%s2136_s29 + $0x80] ss:$8 sps:$4 sm:$0xff]  }
  0x63   : > { %1899 = vperm.xlu0 %1796, %v1898_v63   ;;  %v753_v41 = vrot.slane %v751_v37, 5  ;;  %v1287_v42 = vunpack.c.l.bf16 %v740_v50  ;;  %v2276_v29 = vrot.slane %v860_v38, 4  ;;  %v1355_v30 = vunpack.c.l.bf16 %v1726_v36  ;;  %v1742_v38 = vld [vmem:[%s2136_s29 + $0x1c] sm:$0x1] }
  0x64   : > { %v1913_v45 = vpack.i.bf16 %v1290_v49, %v1289_v34  ;;  %v2279_v46 = vrot.slane %v863_v40, 5  ;;  %v1356_v47 = vunpack.c.l.bf16 %v1727_v53  ;;  %v846_v48 = vshrl.u32 %v1726_v36, 16 }
  0x65   : > { %v754_v57 = vsel %vm2179_vm2, %v749_v58, %v753_v41  ;;  %v849_v59 = vshll.u32 %v1726_v36, 16  ;;  %v832_v60 = vshrl.u32 %v1725_v52, 16  ;;  %v835_v61 = vshll.u32 %v1725_v52, 16  ;;  %v1736_v36 = vld [vmem:[%s2136_s29 + $0x70] ss:$8 sps:$4 sm:$0xff]  }
  0x66   : > { %1914 = vperm.xlu1 %1807, %v1913_v45   ;;  %v1288_v1 = vunpack.c.l.bf16 %v754_v57  ;;  %v1923_v2 = vpack.i.bf16 %v1356_v47, %v1355_v30  ;;  %v2284_v3 = vrot.slane %v846_v48, 4  ;;  %v1353_v4 = vunpack.c.l.bf16 %v1724_v43  ;;  %v1743_v41 = vld [vmem:[%s2136_s29 + $0x24] sm:$0x1]  ;;  %v1740_v47 = vld [vmem:[%s2136_s29 + $0xc] sm:$0x1] }
  0x67   : > { %v2288_v12 = vrot.slane %v849_v59, 5  ;;  %v2290_v51 = vrot.slane %v832_v60, 4  ;;  %v2292_v39 = vrot.slane %v835_v61, 5  ;;  %v1354_v44 = vunpack.c.l.bf16 %v1725_v52 }
  0x68   : > { %v1908_v6 = vpack.i.bf16 %v1288_v1, %v1287_v42  ;;  %v818_v13 = vshrl.u32 %v1724_v43, 16  ;;  %v821_v14 = vshll.u32 %v1724_v43, 16  ;;  %v916_v15 = vshrl.u32 %v1731_v11, 16 }
  0x69   : > { %v1918_v16 = vpack.i.bf16 %v1354_v44, %v1353_v4  ;;  %v919_v17 = vshll.u32 %v1731_v11, 16  ;;  %v1359_v55 = vunpack.c.l.bf16 %v1730_v5  ;;  %v1360_v56 = vunpack.c.l.bf16 %v1731_v11 }
  0x6a   : > { %1909 = vperm.xlu0 %1796, %v1908_v6   ;;  %1924 = vperm.xlu1 %1807, %v1923_v2   ;;  %v820_v8 = vrot.slane %v818_v13, 4  ;;  %v823_v20 = vrot.slane %v821_v14, 5  ;;  %v2296_v21 = vrot.slane %v916_v15, 4  ;;  %v902_v9 = vshrl.u32 %v1730_v5, 16  ;;  %v1741_v2 = vld [vmem:[%s2136_s29 + $0x14] sm:$0x1] }
  0x6b   : > { %v2298_v10 = vrot.slane %v919_v17, 5  ;;  %v1933_v22 = vpack.i.bf16 %v1360_v56, %v1359_v55  ;;  %v905_v23 = vshll.u32 %v1730_v5, 16  ;;  %v888_v24 = vshrl.u32 %v1729_v7, 16  ;;  %v1746_v13 = vld [vmem:[%s2136_s29 + $0x3c] sm:$0x1] }
  0x6c   : > { %v2301_v26 = vrot.slane %v902_v9, 4  ;;  %v891_v27 = vshll.u32 %v1729_v7, 16  ;;  %v1357_v28 = vunpack.c.l.bf16 %v1728_v0  ;;  %v1358_v31 = vunpack.c.l.bf16 %v1729_v7  ;;  %v1747_v17 = vld [vmem:[%s2136_s29 + $0x44] sm:$0x1] }
  0x6d   : > { %v907_v34 = vrot.slane %v905_v23, 5  ;;  %v2305_v18 = vrot.slane %v888_v24, 4  ;;  %v874_v19 = vshrl.u32 %v1728_v0, 16  ;;  %v877_v35 = vshll.u32 %v1728_v0, 16 }
  0x6e   : > { %1919 = vperm.xlu0 %1796, %v1918_v16   ;;  %1934 = vperm.xlu1 %1807, %v1933_v22   ;;  %v2308_v53 = vrot.slane %v891_v27, 5  ;;  %v1928_v63 = vpack.i.bf16 %v1358_v31, %v1357_v28  ;;  %v1423_v54 = vunpack.c.l.bf16 %v1734_v25  ;;  %v1424_v37 = vunpack.c.h.bf16 %v1734_v25  ;;  %v1745_v31 = vld [vmem:[%s2136_s29 + $0x34] sm:$0x1] }
  0x6f   : > { %v876_v49 = vrot.slane %v874_v19, 4  ;;  %v879_v50 = vrot.slane %v877_v35, 5  ;;  %v1421_v58 = vunpack.c.l.bf16 %v1732_v32  ;;  %v1422_v40 = vunpack.c.h.bf16 %v1732_v32 }
  0x70   : > { %v1943_v42 = vpack.i.bf16 %v1424_v37, %v1423_v54  ;;  %v1427_v30 = vunpack.c.l.bf16 %v1738_v33  ;;  %v1428_v43 = vunpack.c.h.bf16 %v1738_v33  ;;  %v1425_v45 = vunpack.c.l.bf16 %v1736_v36 }
  0x71   : > { %v1938_v48 = vpack.i.bf16 %v1422_v40, %v1421_v58  ;;  %v1426_v52 = vunpack.c.h.bf16 %v1736_v36  ;;  %v852_v57 = vor.u32 %v2288_v12, %v2284_v3  ;;  %v855_v59 = vshll.u32 %v1742_v38, 16 }
  0x72   : > { %1929 = vperm.xlu0 %1796, %v1928_v63   ;;  %1944 = vperm.xlu1 %1807, %v1943_v42   ;;  %v1953_v60 = vpack.i.bf16 %v1428_v43, %v1427_v30  ;;  %v866_v61 = vor.u32 %v2279_v46, %v2276_v29  ;;  %v869_v1 = vshll.u32 %v1743_v41, 16  ;;  %v824_v4 = vor.u32 %v823_v20, %v820_v8  ;;  %v1744_v20 = vld [vmem:[%s2136_s29 + $0x2c] sm:$0x1] }
  0x73   : > { %v1948_v5 = vpack.i.bf16 %v1426_v52, %v1425_v45  ;;  %v853_v11 = vrot.slane %v852_v57, 4  ;;  %v857_v44 = vrot.slane %v855_v59, 5  ;;  %v827_v6 = vshll.u32 %v1740_v47, 16 }
  0x74   : > { %v867_v14 = vrot.slane %v866_v61, 4  ;;  %v871_v15 = vrot.slane %v869_v1, 5  ;;  %v825_v3 = vrot.slane %v824_v4, 4  ;;  %v838_v12 = vor.u32 %v2292_v39, %v2290_v51 }
  0x75   : > { %v858_v16 = vsel %vm2179_vm2, %v853_v11, %v857_v44  ;;  %v829_v29 = vrot.slane %v827_v6, 5  ;;  %v841_v46 = vshll.u32 %v1741_v2, 16  ;;  %v908_v55 = vor.u32 %v907_v34, %v2301_v26  ;;  %v1075_v11 = vld [vmem:[%s2554_s1] sm:$0x2]  ;;  %v1213_v44 = vld [vmem:[%s2554_s1] sm:$0x4] }
  0x76   : > { %1939 = vperm.xlu0 %1796, %v1938_v48   ;;  %1954 = vperm.xlu1 %1807, %v1953_v60   ;;  %v872_v56 = vsel %vm2179_vm2, %v867_v14, %v871_v15  ;;  %v1493_v0 = vunpack.c.l.bf16 %v858_v16  ;;  %v839_v7 = vrot.slane %v838_v12, 4  ;;  %v911_v8 = vshll.u32 %v1746_v13, 16  ;;  %v1351_v13 = vld [vmem:[%s2554_s1] sm:$0x8] }
  0x77   : > { %v1494_v9 = vunpack.c.l.bf16 %v872_v56  ;;  %v830_v51 = vsel %vm2179_vm2, %v825_v3, %v829_v29  ;;  %v843_v39 = vrot.slane %v841_v46, 5  ;;  %v909_v22 = vrot.slane %v908_v55, 4  ;;  %v1489_v55 = vld [vmem:[%s2554_s1 + $0x4] sm:$0x1] }
  0x78   : > { %v1491_v23 = vunpack.c.l.bf16 %v830_v51  ;;  %v913_v24 = vrot.slane %v911_v8, 5  ;;  %v922_v25 = vor.u32 %v2298_v10, %v2296_v21  ;;  %v925_v26 = vshll.u32 %v1747_v17, 16 }
  0x79   : > { %v1963_v27 = vpack.i.bf16 %v1494_v9, %v1493_v0  ;;  %v844_v28 = vsel %vm2179_vm2, %v839_v7, %v843_v39  ;;  %v880_v32 = vor.u32 %v879_v50, %v876_v49  ;;  %v883_v33 = vshll.u32 %v1744_v20, 16 }
  0x7a   : > { %1949 = vperm.xlu0 %1796, %v1948_v5   ;;  %v1492_v34 = vunpack.c.l.bf16 %v844_v28  ;;  %v914_v19 = vsel %vm2179_vm2, %v909_v22, %v913_v24  ;;  %v923_v35 = vrot.slane %v922_v25, 4  ;;  %v927_v36 = vrot.slane %v925_v26, 5  ;;  %v937_v5 = vld [vmem:[%s2554_s1] sm:$0x1] }
  0x7b   : > { %1964 = vperm.xlu1 %1807, %v1963_v27   ;;  %v1497_v63 = vunpack.c.l.bf16 %v914_v19  ;;  %v881_v54 = vrot.slane %v880_v32, 4  ;;  %v885_v37 = vrot.slane %v883_v33, 5  ;;  %v894_v21 = vor.u32 %v2308_v53, %v2305_v18 }
  0x7c   : > { %v1958_v10 = vpack.i.bf16 %v1492_v34, %v1491_v23  ;;  %v928_v38 = vsel %vm2179_vm2, %v923_v35, %v927_v36  ;;  %v897_v49 = vshll.u32 %v1745_v31, 16  ;;  %v987_v62 = vlaneseq }
  0x7d   : > { %v1498_v50 = vunpack.c.l.bf16 %v928_v38  ;;  %v886_v58 = vsel %vm2179_vm2, %v881_v54, %v885_v37  ;;  %v895_v40 = vrot.slane %v894_v21, 4  ;;  %v938_v14 = vunpack.c.l.bf16 %v937_v5 }
  0x7e   : > { %1959 = vperm.xlu0 %1796, %v1958_v10   ;;  %v899_v41 = vrot.slane %v897_v49, 5  ;;  %v1495_v30 = vunpack.c.l.bf16 %v886_v58  ;;  %v988_v2 = vshrl.u32 %v987_v62, 7  ;;  %v1076_v12 = vunpack.c.l.bf16 %v1075_v11 }
  0x7f   : > { %v1973_v42 = vpack.i.bf16 %v1498_v50, %v1497_v63  ;;  %v1214_v46 = vunpack.c.l.bf16 %v1213_v44  ;;  %v1352_v7 = vunpack.c.l.bf16 %v1351_v13  ;;  %v1490_v39 = vunpack.c.l.bf16 %v1489_v55 }
  0x80   : > { %v900_v43 = vsel %vm2179_vm2, %v895_v40, %v899_v41  ;;  %v989_v15 = vsub.s32 0, %v988_v2  ;;  %v1057_v3 = vsub.s32 1, %v988_v2  ;;  %v1127_v16 = vsub.s32 2, %v988_v2 }
  0x81   : > { %1974 = vperm.xlu1 %1807, %v1973_v42   ;;  %v1496_v45 = vunpack.c.l.bf16 %v900_v43  ;;  %v1195_v29 = vsub.s32 3, %v988_v2  ;;  %v1265_v17 = vsub.s32 4, %v988_v2  ;;  %v1333_v0 = vsub.s32 5, %v988_v2 }
  0x82   : > { %v1403_v8 = vsub.s32 6, %v988_v2  ;;  %v990_v9 = vrot.slane %v938_v14, %v989_v15  ;;  %v1471_v51 = vsub.s32 7, %v988_v2  ;;  %v1058_v22 = vrot.slane %v938_v14, %v1057_v3 }
  0x83   : > { %v1968_v18 = vpack.i.bf16 %v1496_v45, %v1495_v30  ;;  %v2382_v23 = vrot.slane %v1076_v12, %v1127_v16  ;;  %v2384_v24 = vrot.slane %v1076_v12, %v1195_v29  ;;  %v2386_v25 = vrot.slane %v1214_v46, %v1265_v17 }
  0x84   : > { %v2390_v31 = vrot.slane %v1214_v46, %v1333_v0  ;;  %v2392_v32 = vrot.slane %v1352_v7, %v1403_v8  ;;  %v2400_v37 = vrot.slane %v1352_v7, %v1471_v51  ;;  %v2402_v21 = vrot.slane %v1490_v39, %v989_v15 }
  0x85   : > { %1969 = vperm.xlu0 %1796, %v1968_v18  }
  0xb1   : > { %v1810_v53 = vpop.permute.xlu1 %1809 }
  0xb2   : > { %v1812_v26 = vunpack.i.h.bf16 %v1810_v53  ;;  %v1811_v27 = vunpack.i.l.bf16 %v1810_v53 }
  0xb4   : > { %v996_v58 = vmul.f32 %v1812_v26, %v990_v9  ;;  %v995_v40 = vmul.f32 %v1811_v27, %v990_v9 }
  0xb5   : > { %v1799_v47 = vpop.permute.xlu0 %1798 }
  0xb6   : > { %v1801_v33 = vunpack.i.h.bf16 %v1799_v47  ;;  %v1800_v34 = vunpack.i.l.bf16 %v1799_v47 }
  0xb8   : > { %v2345_v48 = vpop.permute.xlu1 %1814  ;;  %v992_v43 = vmul.f32 %v1801_v33, %v990_v9  ;;  %v991_v45 = vmul.f32 %v1800_v34, %v990_v9 }
  0xb9   : > { %v1817_v19 = vunpack.i.h.bf16 %v2345_v48  ;;  %v1816_v35 = vunpack.i.l.bf16 %v2345_v48 }
  0xba   : > { %v2347_v52 = vpop.permute.xlu0 %1803 }
  0xbb   : > { %v1806_v41 = vunpack.i.h.bf16 %v2347_v52  ;;  %v1805_v42 = vunpack.i.l.bf16 %v2347_v52  ;;  %v998_v18 = vmul.f32 %v1817_v19, %v990_v9  ;;  %v997_v53 = vmul.f32 %v1816_v35, %v990_v9 }
  0xbc   : > { %v2349_v57 = vpop.permute.xlu1 %1824 }
  0xbd   : > { %v1827_v63 = vunpack.i.h.bf16 %v2349_v57  ;;  %v1826_v54 = vunpack.i.l.bf16 %v2349_v57  ;;  %v994_v44 = vmul.f32 %v1806_v41, %v990_v9  ;;  %v993_v52 = vmul.f32 %v1805_v42, %v990_v9 }
  0xbe   : > { %v2351_v59 = vpop.permute.xlu0 %1819 }
  0xbf   : > { %v1822_v10 = vunpack.i.h.bf16 %v2351_v59  ;;  %v1821_v38 = vunpack.i.l.bf16 %v2351_v59  ;;  %v1062_v48 = vmul.f32 %v1827_v63, %v1058_v22  ;;  %v1061_v57 = vmul.f32 %v1826_v54, %v1058_v22 }
  0xc0   : > { %v2353_v60 = vpop.permute.xlu1 %1834 }
  0xc1   : > { %v1837_v49 = vunpack.i.h.bf16 %v2353_v60  ;;  %v1836_v50 = vunpack.i.l.bf16 %v2353_v60  ;;  %v1060_v62 = vmul.f32 %v1822_v10, %v1058_v22  ;;  %v1059_v2 = vmul.f32 %v1821_v38, %v1058_v22 }
  0xc2   : > { %v2355_v61 = vpop.permute.xlu0 %1829  ;;  %v1069_v46 = vadd.f32 %v1061_v57, %v993_v52  ;;  %v1070_v17 = vadd.f32 %v1062_v48, %v994_v44 }
  0xc3   : > { %v1832_v59 = vunpack.i.h.bf16 %v2355_v61  ;;  %v1831_v60 = vunpack.i.l.bf16 %v2355_v61  ;;  %v1066_v5 = vmul.f32 %v1837_v49, %v1058_v22  ;;  %v1065_v11 = vmul.f32 %v1836_v50, %v1058_v22 }
  0xc4   : > { %v1067_v7 = vadd.f32 %v1059_v2, %v991_v45  ;;  %v1068_v8 = vadd.f32 %v1060_v62, %v992_v43 }
  0xc5   : > { %v2357_v1 = vpop.permute.xlu1 %1844  ;;  %v1064_v55 = vmul.f32 %v1832_v59, %v1058_v22  ;;  %v1063_v0 = vmul.f32 %v1831_v60, %v1058_v22  ;;  %v1073_v9 = vadd.f32 %v1065_v11, %v997_v53 }
  0xc6   : > { %v1847_v13 = vunpack.i.h.bf16 %v2357_v1  ;;  %v1846_v14 = vunpack.i.l.bf16 %v2357_v1  ;;  %v1074_v1 = vadd.f32 %v1066_v5, %v998_v18 }
  0xc7   : > { %v2359_v4 = vpop.permute.xlu0 %1839  ;;  %v1072_v19 = vadd.f32 %v1064_v55, %v996_v58  ;;  %v1071_v35 = vadd.f32 %v1063_v0, %v995_v40 }
  0xc8   : > { %v1842_v3 = vunpack.i.h.bf16 %v2359_v4  ;;  %v1841_v12 = vunpack.i.l.bf16 %v2359_v4  ;;  %v1132_v51 = vmul.f32 %v1847_v13, %v2382_v23  ;;  %v1131_v39 = vmul.f32 %v1846_v14, %v2382_v23 }
  0xca   : > { %v2370_v6 = vpop.permute.xlu1 %1854  ;;  %v1129_v33 = vmul.f32 %v1841_v12, %v2382_v23  ;;  %v1139_v41 = vadd.f32 %v1131_v39, %v1069_v46  ;;  %v1140_v42 = vadd.f32 %v1132_v51, %v1070_v17 }
  0xcb   : > { %v1857_v16 = vunpack.i.h.bf16 %v2370_v6  ;;  %v1856_v61 = vunpack.i.l.bf16 %v2370_v6  ;;  %v1130_v6 = vmul.f32 %v1842_v3, %v2382_v23 }
  0xcc   : > { %v1137_v45 = vadd.f32 %v1129_v33, %v1067_v7 }
  0xcd   : > { %v2378_v56 = vpop.permute.xlu0 %1849  ;;  %v1136_v22 = vmul.f32 %v1857_v16, %v2382_v23  ;;  %v1135_v34 = vmul.f32 %v1856_v61, %v2382_v23  ;;  %v1138_v40 = vadd.f32 %v1130_v6, %v1068_v8 }
  0xce   : > { %v2380_v20 = vpop.permute.xlu1 %1864  ;;  %v1852_v4 = vunpack.i.h.bf16 %v2378_v56  ;;  %v1851_v26 = vunpack.i.l.bf16 %v2378_v56 }
  0xcf   : > { %v1867_v63 = vunpack.i.h.bf16 %v2380_v20  ;;  %v1866_v54 = vunpack.i.l.bf16 %v2380_v20  ;;  %v1144_v18 = vadd.f32 %v1136_v22, %v1074_v1  ;;  %v1143_v20 = vadd.f32 %v1135_v34, %v1073_v9 }
  0xd0   : > { %v1134_v43 = vmul.f32 %v1852_v4, %v2382_v23  ;;  %v1133_v58 = vmul.f32 %v1851_v26, %v2382_v23 }
  0xd1   : > { %v2388_v28 = vpop.permute.xlu0 %1859  ;;  %v1200_v53 = vmul.f32 %v1867_v63, %v2384_v24  ;;  %v1199_v48 = vmul.f32 %v1866_v54, %v2384_v24 }
  0xd2   : > { %v2396_v36 = vpop.permute.xlu1 %1874  ;;  %v1862_v56 = vunpack.i.h.bf16 %v2388_v28  ;;  %v1861_v38 = vunpack.i.l.bf16 %v2388_v28  ;;  %v1142_v2 = vadd.f32 %v1134_v43, %v1072_v19  ;;  %v1141_v5 = vadd.f32 %v1133_v58, %v1071_v35 }
  0xd3   : > { %v1877_v49 = vunpack.i.h.bf16 %v2396_v36  ;;  %v1876_v50 = vunpack.i.l.bf16 %v2396_v36  ;;  %v1207_v12 = vadd.f32 %v1199_v48, %v1139_v41  ;;  %v1208_v16 = vadd.f32 %v1200_v53, %v1140_v42 }
  0xd4   : > { %v1198_v36 = vmul.f32 %v1862_v56, %v2384_v24  ;;  %v1197_v60 = vmul.f32 %v1861_v38, %v2384_v24 }
  0xd5   : > { %v2410_v30 = vpop.permute.xlu0 %1869  ;;  %v1204_v62 = vmul.f32 %v1877_v49, %v2384_v24  ;;  %v1203_v23 = vmul.f32 %v1876_v50, %v2384_v24 }
  0xd6   : > { %v2412_v47 = vpop.permute.xlu1 %1884  ;;  %v1872_v28 = vunpack.i.h.bf16 %v2410_v30  ;;  %v1871_v57 = vunpack.i.l.bf16 %v2410_v30  ;;  %v1205_v17 = vadd.f32 %v1197_v60, %v1137_v45  ;;  %v1206_v55 = vadd.f32 %v1198_v36, %v1138_v40 }
  0xd7   : > { %v1887_v11 = vunpack.i.h.bf16 %v2412_v47  ;;  %v1886_v44 = vunpack.i.l.bf16 %v2412_v47  ;;  %v1211_v0 = vadd.f32 %v1203_v23, %v1143_v20  ;;  %v1212_v7 = vadd.f32 %v1204_v62, %v1144_v18 }
  0xd8   : > { %v1202_v61 = vmul.f32 %v1872_v28, %v2384_v24  ;;  %v1201_v46 = vmul.f32 %v1871_v57, %v2384_v24 }
  0xd9   : > { %v2418_v15 = vpop.permute.xlu0 %1879  ;;  %v1270_v47 = vmul.f32 %v1887_v11, %v2386_v25  ;;  %v1269_v8 = vmul.f32 %v1886_v44, %v2386_v25 }
  0xda   : > { %v2424_v29 = vpop.permute.xlu1 %1894  ;;  %v1882_v13 = vunpack.i.h.bf16 %v2418_v15  ;;  %v1881_v30 = vunpack.i.l.bf16 %v2418_v15  ;;  %v1209_v26 = vadd.f32 %v1201_v46, %v1141_v5  ;;  %v1210_v6 = vadd.f32 %v1202_v61, %v1142_v2 }
  0xdb   : > { %v1897_v14 = vunpack.i.h.bf16 %v2424_v29  ;;  %v1896_v3 = vunpack.i.l.bf16 %v2424_v29  ;;  %v1277_v63 = vadd.f32 %v1269_v8, %v1207_v12  ;;  %v1278_v54 = vadd.f32 %v1270_v47, %v1208_v16 }
  0xdc   : > { %v1268_v51 = vmul.f32 %v1882_v13, %v2386_v25  ;;  %v1267_v39 = vmul.f32 %v1881_v30, %v2386_v25 }
  0xdd   : > { %v2430_v27 = vpop.permute.xlu0 %1889  ;;  %v1274_v24 = vmul.f32 %v1897_v14, %v2386_v25  ;;  %v1273_v4 = vmul.f32 %v1896_v3, %v2386_v25 }
  0xde   : > { %v1892_v15 = vunpack.i.h.bf16 %v2430_v27  ;;  %v1891_v9 = vunpack.i.l.bf16 %v2430_v27  ;;  %v1275_v41 = vadd.f32 %v1267_v39, %v1205_v17  ;;  %v1276_v42 = vadd.f32 %v1268_v51, %v1206_v55 }
  0xdf   : > { %v2438_v10 = vpop.permute.xlu1 %1904  ;;  %v1281_v43 = vadd.f32 %v1273_v4, %v1211_v0  ;;  %v1282_v58 = vadd.f32 %v1274_v24, %v1212_v7 }
  0xe0   : > { %v1907_v33 = vunpack.i.h.bf16 %v2438_v10  ;;  %v1906_v22 = vunpack.i.l.bf16 %v2438_v10  ;;  %v1272_v56 = vmul.f32 %v1892_v15, %v2386_v25  ;;  %v1271_v38 = vmul.f32 %v1891_v9, %v2386_v25 }
  0xe2   : > { %v1900_v59 = vpop.permute.xlu0 %1899  ;;  %v1338_v40 = vmul.f32 %v1907_v33, %v2390_v31  ;;  %v1337_v10 = vmul.f32 %v1906_v22, %v2390_v31  ;;  %v1279_v28 = vadd.f32 %v1271_v38, %v1209_v26  ;;  %v1280_v57 = vadd.f32 %v1272_v56, %v1210_v6 }
  0xe3   : > { %v1902_v34 = vunpack.i.h.bf16 %v1900_v59  ;;  %v1901_v19 = vunpack.i.l.bf16 %v1900_v59 }
  0xe4   : > { %v1345_v44 = vadd.f32 %v1337_v10, %v1277_v63 }
  0xe5   : > { %v1915_v52 = vpop.permute.xlu1 %1914  ;;  %v1336_v20 = vmul.f32 %v1902_v34, %v2390_v31  ;;  %v1335_v53 = vmul.f32 %v1901_v19, %v2390_v31 }
  0xe6   : > { %v1917_v35 = vunpack.i.h.bf16 %v1915_v52  ;;  %v1916_v27 = vunpack.i.l.bf16 %v1915_v52  ;;  %v1346_v52 = vadd.f32 %v1338_v40, %v1278_v54 }
  0xe7   : > { %v1343_v14 = vadd.f32 %v1335_v53, %v1275_v41  ;;  %v1344_v3 = vadd.f32 %v1336_v20, %v1276_v42 }
  0xe8   : > { %v1342_v48 = vmul.f32 %v1917_v35, %v2390_v31  ;;  %v1341_v25 = vmul.f32 %v1916_v27, %v2390_v31 }
  0xe9   : > { %v1910_v1 = vpop.permute.xlu0 %1909  ;;  %v1925_v29 = vpop.permute.xlu1 %1924 }
  0xea   : > { %v1912_v45 = vunpack.i.h.bf16 %v1910_v1  ;;  %v1911_v18 = vunpack.i.l.bf16 %v1910_v1  ;;  %v1927_v59 = vunpack.i.h.bf16 %v1925_v29  ;;  %v1926_v36 = vunpack.i.l.bf16 %v1925_v29 }
  0xeb   : > { %v1349_v12 = vadd.f32 %v1341_v25, %v1281_v43  ;;  %v1350_v16 = vadd.f32 %v1342_v48, %v1282_v58 }
  0xec   : > { %v1340_v13 = vmul.f32 %v1912_v45, %v2390_v31  ;;  %v1339_v30 = vmul.f32 %v1911_v18, %v2390_v31  ;;  %v1408_v61 = vmul.f32 %v1927_v59, %v2392_v32  ;;  %v1407_v46 = vmul.f32 %v1926_v36, %v2392_v32 }
  0xed   : > { %v1920_v49 = vpop.permute.xlu0 %1919  ;;  %v1935_v50 = vpop.permute.xlu1 %1934 }
  0xee   : > { %v1922_v23 = vunpack.i.h.bf16 %v1920_v49  ;;  %v1921_v2 = vunpack.i.l.bf16 %v1920_v49  ;;  %v1937_v5 = vunpack.i.h.bf16 %v1935_v50  ;;  %v1936_v11 = vunpack.i.l.bf16 %v1935_v50 }
  0xef   : > { %v1347_v9 = vadd.f32 %v1339_v30, %v1279_v28  ;;  %v1348_v1 = vadd.f32 %v1340_v13, %v1280_v57  ;;  %v1415_v6 = vadd.f32 %v1407_v46, %v1345_v44  ;;  %v1416_v33 = vadd.f32 %v1408_v61, %v1346_v52 }
  0xf0   : > { %v1406_v47 = vmul.f32 %v1922_v23, %v2392_v32  ;;  %v1405_v8 = vmul.f32 %v1921_v2, %v2392_v32  ;;  %v1412_v15 = vmul.f32 %v1937_v5, %v2392_v32  ;;  %v1411_v31 = vmul.f32 %v1936_v11, %v2392_v32 }
  0xf1   : > { %v1930_v60 = vpop.permute.xlu0 %1929  ;;  %v1945_v62 = vpop.permute.xlu1 %1944 }
  0xf2   : > { %v1947_v17 = vunpack.i.h.bf16 %v1945_v62  ;;  %v1946_v55 = vunpack.i.l.bf16 %v1945_v62  ;;  %v1932_v39 = vunpack.i.h.bf16 %v1930_v60  ;;  %v1931_v24 = vunpack.i.l.bf16 %v1930_v60 }
  0xf3   : > { %v1413_v35 = vadd.f32 %v1405_v8, %v1343_v14  ;;  %v1414_v27 = vadd.f32 %v1406_v47, %v1344_v3  ;;  %v1419_v63 = vadd.f32 %v1411_v31, %v1349_v12  ;;  %v1420_v54 = vadd.f32 %v1412_v15, %v1350_v16 }
  0xf4   : > { %v1476_v22 = vmul.f32 %v1947_v17, %v2400_v37  ;;  %v1475_v34 = vmul.f32 %v1946_v55, %v2400_v37  ;;  %v1410_v42 = vmul.f32 %v1932_v39, %v2392_v32  ;;  %v1409_v43 = vmul.f32 %v1931_v24, %v2392_v32  ;;  %v1748_v32 = vld [vmem:[%s2555_s2] ss:$0 sm:$0xff] }
  0xf5   : > { %v1940_v0 = vpop.permute.xlu0 %1939  ;;  %v1955_v7 = vpop.permute.xlu1 %1954 }
  0xf6   : > { %v1942_v29 = vunpack.i.h.bf16 %v1940_v0  ;;  %v1941_v51 = vunpack.i.l.bf16 %v1940_v0  ;;  %v1957_v4 = vunpack.i.h.bf16 %v1955_v7  ;;  %v1956_v26 = vunpack.i.l.bf16 %v1955_v7 }
  0xf7   : > { %v1483_v10 = vadd.f32 %v1475_v34, %v1415_v6  ;;  %v1484_v45 = vadd.f32 %v1476_v22, %v1416_v33  ;;  %v1417_v7 = vadd.f32 %v1409_v43, %v1347_v9  ;;  %v1418_v47 = vadd.f32 %v1410_v42, %v1348_v1 }
  0xf8   : > { %v1474_v38 = vmul.f32 %v1942_v29, %v2400_v37  ;;  %v1473_v49 = vmul.f32 %v1941_v51, %v2400_v37  ;;  %v1480_v58 = vmul.f32 %v1957_v4, %v2400_v37  ;;  %v1479_v40 = vmul.f32 %v1956_v26, %v2400_v37 }
  0xf9   : > { %v1950_v19 = vpop.permute.xlu0 %1949 }
  0xfa   : > { %v1965_v56 = vpop.permute.xlu1 %1964  ;;  %v1952_v48 = vunpack.i.h.bf16 %v1950_v19  ;;  %v1951_v25 = vunpack.i.l.bf16 %v1950_v19  ;;  %v1481_v59 = vadd.f32 %v1473_v49, %v1413_v35  ;;  %v1482_v36 = vadd.f32 %v1474_v38, %v1414_v27 }
  0xfb   : > { %v1967_v50 = vunpack.i.h.bf16 %v1965_v56  ;;  %v1966_v41 = vunpack.i.l.bf16 %v1965_v56  ;;  %v1487_v23 = vadd.f32 %v1479_v40, %v1419_v63  ;;  %v1488_v2 = vadd.f32 %v1480_v58, %v1420_v54 }
  0xfc   : > { %v1478_v3 = vmul.f32 %v1952_v48, %v2400_v37  ;;  %v1477_v12 = vmul.f32 %v1951_v25, %v2400_v37 }
  0xfd   : > { %v1546_v18 = vmul.f32 %v1967_v50, %v2402_v21  ;;  %v1545_v20 = vmul.f32 %v1966_v41, %v2402_v21  ;;  %v1960_v53 = vpop.permute.xlu0 %1959 }
  0xfe   : > { %v1962_v28 = vunpack.i.h.bf16 %v1960_v53  ;;  %v1961_v57 = vunpack.i.l.bf16 %v1960_v53  ;;  %v1485_v26 = vadd.f32 %v1477_v12, %v1417_v7  ;;  %v1486_v6 = vadd.f32 %v1478_v3, %v1418_v47 }
  0xff   : > { %v1553_v60 = vadd.f32 %v1545_v20, %v1483_v10  ;;  %v1554_v62 = vadd.f32 %v1546_v18, %v1484_v45 }
 0x100   : > { %v1544_v5 = vmul.f32 %v1962_v28, %v2402_v21  ;;  %v1543_v11 = vmul.f32 %v1961_v57, %v2402_v21  ;;  %v1975_v44 = vpop.permute.xlu1 %1974 }
 0x101   : > { %v1568_v52 = vadd.f32 %v1748_v32, %v1553_v60  ;;  %v1569_v13 = vadd.f32 %v1748_v32, %v1554_v62  ;;  %v1977_v30 = vunpack.i.h.bf16 %v1975_v44  ;;  %v1976_v14 = vunpack.i.l.bf16 %v1975_v44 }
 0x102   : > { %v1551_v16 = vadd.f32 %v1543_v11, %v1481_v59  ;;  %v1552_v61 = vadd.f32 %v1544_v5, %v1482_v36 }
 0x103   : > { %v1576_v46 = vmax.f32 %v1568_v52, 0.0  ;;  %v1577_v17 = vmax.f32 %v1569_v13, 0.0  ;;  %v1550_v55 = vmul.f32 %v1977_v30, %v2402_v21  ;;  %v1549_v0 = vmul.f32 %v1976_v14, %v2402_v21 }
 0x104   : > { %v1566_v8 = vadd.f32 %v1748_v32, %v1551_v16  ;;  %v1567_v15 = vadd.f32 %v1748_v32, %v1552_v61  ;;  %v1970_v37 = vpop.permute.xlu0 %1969 }
 0x105   : > { %v1762_v31 = vpack.c.bf16 %v1576_v46, %v1576_v46  ;;  %v1763_v29 = vpack.c.bf16 %v1577_v17, %v1577_v17  ;;  %v1557_v51 = vadd.f32 %v1549_v0, %v1487_v23  ;;  %v1558_v39 = vadd.f32 %v1550_v55, %v1488_v2 }
 0x106   : > { %v1574_v24 = vmax.f32 %v1566_v8, 0.0  ;;  %v1575_v4 = vmax.f32 %v1567_v15, 0.0  ;;  %v1972_v9 = vunpack.i.h.bf16 %v1970_v37  ;;  %v1971_v1 = vunpack.i.l.bf16 %v1970_v37 }
 0x107   : > { %1617 = vst.msk [vmem:[%s2523_s22 + $0x8] sm:$0xf] %vm1614_vm3, %v1762_v31  ;;  %1618 = vst.msk [vmem:[%s2523_s22 + $0xc] sm:$0xf] %vm1614_vm3, %v1763_v29  ;;  %v1572_v33 = vadd.f32 %v1748_v32, %v1557_v51  ;;  %v1573_v22 = vadd.f32 %v1748_v32, %v1558_v39 }
 0x108   : > { %v1760_v34 = vpack.c.bf16 %v1574_v24, %v1574_v24  ;;  %v1761_v19 = vpack.c.bf16 %v1575_v4, %v1575_v4  ;;  %v1548_v35 = vmul.f32 %v1972_v9, %v2402_v21  ;;  %v1547_v27 = vmul.f32 %v1971_v1, %v2402_v21 }
 0x109   : > { %v1580_v63 = vmax.f32 %v1572_v33, 0.0  ;;  %v1581_v54 = vmax.f32 %v1573_v22, 0.0 }
 0x10a   : > { %1615 = vst.msk [vmem:[%s2523_s22] sm:$0xf] %vm1614_vm3, %v1760_v34  ;;  %1616 = vst.msk [vmem:[%s2523_s22 + $0x4] sm:$0xf] %vm1614_vm3, %v1761_v19  ;;  %v1555_v56 = vadd.f32 %v1547_v27, %v1485_v26  ;;  %v1556_v38 = vadd.f32 %v1548_v35, %v1486_v6 }
 0x10b   : > { %v1766_v49 = vpack.c.bf16 %v1580_v63, %v1580_v63  ;;  %v1767_v50 = vpack.c.bf16 %v1581_v54, %v1581_v54 }
 0x10c   : > { %v1570_v41 = vadd.f32 %v1748_v32, %v1555_v56  ;;  %v1571_v42 = vadd.f32 %v1748_v32, %v1556_v38 }
 0x10d   : > { %1621 = vst.msk [vmem:[%s2523_s22 + $0x18] sm:$0xf] %vm1614_vm3, %v1766_v49  ;;  %1622 = vst.msk [vmem:[%s2523_s22 + $0x1c] sm:$0xf] %vm1614_vm3, %v1767_v50 }
 0x10e   : > { %v1578_v43 = vmax.f32 %v1570_v41, 0.0  ;;  %v1579_v21 = vmax.f32 %v1571_v42, 0.0 }
 0x110   : > { %v1764_v58 = vpack.c.bf16 %v1578_v43, %v1578_v43  ;;  %v1765_v40 = vpack.c.bf16 %v1579_v21, %v1579_v21 }
 0x112   : > { %1619 = vst.msk [vmem:[%s2523_s22 + $0x10] sm:$0xf] %vm1614_vm3, %v1764_v58  ;;  %1620 = vst.msk [vmem:[%s2523_s22 + $0x14] sm:$0xf] %vm1614_vm3, %v1765_v40 }
 0x113 PF: > { %p10_p9 = scmp.ge.s32.totalorder %s2040_s16, 4   ;;  %s2560_s12 = smov %s1996_s13 }
 0x114   : > { %s2561_s13 = smov %s2049_s19  ;;  %s2562_s14 = smov %s2040_s16 }
 0x115   :  { %12 = sbr.rel (!%p10_p9) target bundleno = 2 (0x2), region = 113 }

// kernel: vqvae_forward.5
= control target key start
LH: loop header
LB: loop body
LE: loop exit
PB: predicated region body
PF: predicated region fallthrough
CT: control target
= control target key end

     0   :  { %s1885_s21 = smov 0   ;;  %s1887_s22 = smov 0   ;;  %s2358_s0 = inlined_call_operand.vmem [shape: bf16[4,2,5,9,32], index: 0, kind: input, shape index: {}]   ;;  %s2359_s1 = inlined_call_operand.vmem [shape: bf16[288,64], index: 1, kind: input, shape index: {}]   ;;  %s2360_s2 = inlined_call_operand.vmem [shape: f32[1,64], index: 2, kind: input, shape index: {}]   ;;  %s2361_s3 = inlined_call_operand.vmem [shape: bf16[64,512], index: 3, kind: input, shape index: {}]   ;;  %s2362_s4 = inlined_call_operand.vmem [shape: f32[1,512], index: 4, kind: input, shape index: {}]   ;;  %s2363_s5 = inlined_call_operand.vmem [shape: s32[2,32,1], index: 5, kind: output, shape index: {0}]   ;;  %s2364_s6 = inlined_call_operand.vmem [shape: f32[2,32,1], index: 6, kind: output, shape index: {1}]  }
   0x1   :  { %s1889_s23 = smov 0  }
   0x2 LB: > { %s1596_s24 = sadd.s32 4294967295, %s1844_s23   ;;  %s1902_s25 = sadd.s32 1, %s1844_s23   ;;  %s1844_s23 = sphi %s1889_s23, %s2369_s23   ;;  %s1840_s22 = sphi %s1887_s22, %s2368_s22   ;;  %s1836_s21 = sphi %s1885_s21, %s2367_s21  }
   0x3   : > { %s21_s26 = ssub.s32 %s1844_s23, %s1902_s25  ;;  %s24_s27 = sadd.s32 1, %s1840_s22 }
   0x4   : > { %p22_p0 = scmp.eq.s32.totalorder %s21_s26, 0  ;;  %p31_p1 = scmp.ne.s32.totalorder %s1840_s22, %s1836_s21 }
   0x5   : > { %p32_p2 = scmp.eq.s32.totalorder %s1844_s23, 0  ;;  %p1599_p4 = scmp.ge.s32.totalorder %s1844_s23, 2 }
   0x6   : > { %s1911_s28 = scalar_select %p22_p0, %s1840_s22, %s24_s27  }
   0x7   : > { %p33_p3 = por %p32_p2, %p31_p1  ;;  %205 = sbr.rel (%p1599_p4) target bundleno = 29 (0x1d), region = 32 }
   0xe   : > { %208 = sbr.rel (!%p33_p3) target bundleno = 29 (0x1d), region = 36  ;;  %s210_s29 = sand.u32 (%p33_p3), 1, %s1840_s22  }
   0xf   : > { %s1738_s30 = smul.u32 (%p33_p3), 40, %s1844_s23 }
  0x10   : > { %s1737_s7 = smul.u32 (%p33_p3), 160, %s210_s29 }
  0x11   : > { %s1919_s10 = scalar_lea.vmem (%p33_p3), %s2358_s0, %s1738_s30 }
  0x12   : > { %v231_v0 = vld [vmem:[%s1919_s10] sm:$0xff] (%p33_p3)   ;;  %v235_v1 = vld [vmem:[%s1919_s10 + $0x8] sm:$0xff] (%p33_p3)   ;;  %v239_v2 = vld [vmem:[%s1919_s10 + $0x10] sm:$0xff] (%p33_p3)   ;;  %s1924_s11 = scalar_lea.vmem (%p33_p3), [#allocation2], %s1737_s7 }
  0x13   : > { %232 = vst [vmem:[%s1924_s11] sm:$0xff] (%p33_p3), %v231_v0   ;;  %236 = vst [vmem:[%s1924_s11 + $0x8] sm:$0xff] (%p33_p3), %v235_v1   ;;  %v243_v3 = vld [vmem:[%s1919_s10 + $0x18] sm:$0xff] (%p33_p3)   ;;  %v247_v4 = vld [vmem:[%s1919_s10 + $0x20] sm:$0xff] (%p33_p3)  }
  0x14   : > { %240 = vst [vmem:[%s1924_s11 + $0x10] sm:$0xff] (%p33_p3), %v239_v2   ;;  %v251_v5 = vld [vmem:[%s1919_s10 + $0x50] sm:$0xff] (%p33_p3)   ;;  %244 = vst [vmem:[%s1924_s11 + $0x18] sm:$0xff] (%p33_p3), %v243_v3   ;;  %v255_v6 = vld [vmem:[%s1919_s10 + $0x58] sm:$0xff] (%p33_p3)  }
  0x15   : > { %248 = vst [vmem:[%s1924_s11 + $0x20] sm:$0xff] %v247_v4   ;;  %252 = vst [vmem:[%s1924_s11 + $0x28] sm:$0xff] %v251_v5   ;;  %v259_v7 = vld [vmem:[%s1919_s10 + $0x60] sm:$0xff]   ;;  %v263_v8 = vld [vmem:[%s1919_s10 + $0x68] sm:$0xff]  }
  0x16   : > { %256 = vst [vmem:[%s1924_s11 + $0x30] sm:$0xff] %v255_v6   ;;  %260 = vst [vmem:[%s1924_s11 + $0x38] sm:$0xff] %v259_v7   ;;  %v267_v9 = vld [vmem:[%s1919_s10 + $0x70] sm:$0xff]   ;;  %v271_v10 = vld [vmem:[%s1919_s10 + $0xa0] sm:$0xff]  }
  0x17   : > { %264 = vst [vmem:[%s1924_s11 + $0x40] sm:$0xff] %v263_v8   ;;  %v275_v11 = vld [vmem:[%s1919_s10 + $0xa8] sm:$0xff]   ;;  %268 = vst [vmem:[%s1924_s11 + $0x48] sm:$0xff] %v267_v9   ;;  %v279_v12 = vld [vmem:[%s1919_s10 + $0xb0] sm:$0xff]  }
  0x18   : > { %272 = vst [vmem:[%s1924_s11 + $0x50] sm:$0xff] %v271_v10   ;;  %276 = vst [vmem:[%s1924_s11 + $0x58] sm:$0xff] %v275_v11   ;;  %v283_v13 = vld [vmem:[%s1919_s10 + $0xb8] sm:$0xff]   ;;  %v287_v14 = vld [vmem:[%s1919_s10 + $0xc0] sm:$0xff]  }
  0x19   : > { %280 = vst [vmem:[%s1924_s11 + $0x60] sm:$0xff] %v279_v12   ;;  %284 = vst [vmem:[%s1924_s11 + $0x68] sm:$0xff] %v283_v13   ;;  %v291_v15 = vld [vmem:[%s1919_s10 + $0xf0] sm:$0xff]   ;;  %v295_v16 = vld [vmem:[%s1919_s10 + $0xf8] sm:$0xff]  }
  0x1a   : > { %288 = vst [vmem:[%s1924_s11 + $0x70] sm:$0xff] %v287_v14   ;;  %v299_v17 = vld [vmem:[%s1919_s10 + $0x100] sm:$0xff]   ;;  %292 = vst [vmem:[%s1924_s11 + $0x78] sm:$0xff] %v291_v15   ;;  %v303_v18 = vld [vmem:[%s1919_s10 + $0x108] sm:$0xff]  }
  0x1b   : > { %296 = vst [vmem:[%s1924_s11 + $0x80] sm:$0xff] %v295_v16   ;;  %300 = vst [vmem:[%s1924_s11 + $0x88] sm:$0xff] %v299_v17   ;;  %v307_v19 = vld [vmem:[%s1919_s10 + $0x110] sm:$0xff]  }
  0x1c   : > { %304 = vst [vmem:[%s1924_s11 + $0x90] sm:$0xff] %v303_v18   ;;  %308 = vst [vmem:[%s1924_s11 + $0x98] sm:$0xff] %v307_v19  }
  0x1d PF: > { %p1601_p5 = scmp.ge.s32.totalorder %s1844_s23, 1  ;;  %p412_p6 = scmp.lt.s32.totalorder %s1844_s23, 3 }
  0x1f   : > { %p413_p7 = pnand %p1601_p5, %p412_p6 }
  0x20   : > { %s419_s12 = sand.u32 (!%p413_p7), 1, %s1836_s21   ;;  %vm477_vm0 = vsmask.f32 (!%p413_p7), 3328  ;;  %vm478_vm1 = vsmask.f32 (!%p413_p7), 7440  ;;  %v1776_v20 = vld [vmem:[%s2359_s1 + $0x40] sm:$0xff] (!%p413_p7)  }
  0x21   : > { %416 = sbr.rel (%p413_p7) target bundleno = 1100 (0x44c), region = 77  ;;  %v1777_v21 = vld [vmem:[%s2359_s1] sm:$0xff] (!%p413_p7)   ;;  %1697 = vmatprep.subr.bf16.mxu0 (!%p413_p7), %v1776_v20  ;;  %v1778_v28 = vld [vmem:[%s2359_s1 + $0x48] sm:$0xff] (!%p413_p7)   ;;  %s1846_s27 = smov (!%p413_p7), 64   ;;  %v1780_v41 = vld [vmem:[%s2359_s1 + $0x50] sm:$0xff] (!%p413_p7)   ;;  %vm778_vm3 = vcmask (!%p413_p7), 261120  }
  0x22   : > { %s1739_s13 = smul.u32 (!%p413_p7), 160, %s419_s12  ;;  %1698 = vmatpush3.bf16.msra.mxu0 (!%p413_p7), %v1777_v21  ;;  %v1779_v31 = vld [vmem:[%s2359_s1 + $0x8] sm:$0xff] (!%p413_p7)   ;;  %s1847_s29 = smov (!%p413_p7), 32   ;;  %v1781_v53 = vld [vmem:[%s2359_s1 + $0x10] sm:$0xff] (!%p413_p7)   ;;  %vm2019_vm2 = vmor (!%p413_p7), %vm477_vm0, %vm478_vm1  ;;  %vm785_vm4 = vcmask (!%p413_p7), 523264   ;;  %vm790_vm5 = vcmask (!%p413_p7), 785408  }
  0x23   : > { %1699 = vmatprep.subr.bf16.mxu0 (!%p413_p7), %v1778_v28  ;;  %s1848_s8 = smov (!%p413_p7), 96   ;;  %v1782_v63 = vld [vmem:[%s2359_s1 + $0x58] sm:$0xff] (!%p413_p7)   ;;  %v1784_v19 = vld [vmem:[%s2359_s1 + $0x60] sm:$0xff] (!%p413_p7)   ;;  %p453_p8 = scmp.lt.s32.totalorder (!%p413_p7), %s1596_s24, 1 }
  0x24   : > { %s1972_s18 = scalar_lea.vmem (!%p413_p7), [#allocation2], %s1739_s13  ;;  %v1783_v13 = vld [vmem:[%s2359_s1 + $0x18] sm:$0xff] (!%p413_p7)  }
  0x25   : > { %v1975_v22 = vld [vmem:[%s1972_s18 + $0x8] sm:$0xf] (!%p413_p7)  ;;  %v1623_v23 = vld [vmem:[%s1972_s18 + $0x10] sm:$0xf] (!%p413_p7)  ;;  %v1611_v35 = vld [vmem:[%s1972_s18 + $0x58] sm:$0xf] (!%p413_p7) }
  0x26   : > { %v635_v24 = vshrl.u32 (!%p413_p7), %v1623_v23, 16  ;;  %v638_v25 = vshll.u32 (!%p413_p7), %v1623_v23, 16  ;;  %v1646_v26 = vcombine.low (!%p413_p7), %v1975_v22, %v1623_v23  ;;  %v621_v27 = vshrl.u32 (!%p413_p7), %v1975_v22, 16  ;;  %v1769_v29 = vld [vmem:[%s1972_s18 + $0x28] ss:$8 sps:$4 sm:$0xff] (!%p413_p7)   ;;  %1700 = vmatpush3.bf16.msra.mxu0 (!%p413_p7), %v1779_v31 }
  0x27   : > { %v1610_v30 = vld [vmem:[%s1972_s18 + $0x50] sm:$0xf] (!%p413_p7)  ;;  %v624_v34 = vshll.u32 (!%p413_p7), %v1975_v22, 16  ;;  %696 = vrot.lane.b32.xlu0 (!%p413_p7), %v1769_v29, %s1847_s29  ;;  %v565_v38 = vshrl.u32 (!%p413_p7), %v1611_v35, 16  ;;  %v568_v39 = vshll.u32 (!%p413_p7), %v1611_v35, 16  ;;  %1701 = vmatprep.subr.bf16.mxu0 (!%p413_p7), %v1780_v41 }
  0x28   : > { %v1988_v32 = vrot.slane %v635_v24, 4  ;;  %v1990_v33 = vrot.slane %v638_v25, 5  ;;  %754 = vrot.lane.b32.xlu1 %v1646_v26, %s1846_s27  ;;  %v551_v36 = vshrl.u32 %v1610_v30, 16  ;;  %v1995_v37 = vrot.slane %v621_v27, 4  ;;  %v1771_v44 = vld [vmem:[%s1972_s18 + $0x30] ss:$8 sps:$4 sm:$0xff]  }
  0x29   : > { %v1640_v40 = vcombine.low %v1610_v30, %v1611_v35  ;;  %v554_v43 = vshll.u32 %v1610_v30, 16  ;;  %v567_v45 = vrot.slane %v565_v38, 4  ;;  %v570_v46 = vrot.slane %v568_v39, 5  ;;  %v1618_v47 = vld [vmem:[%s1972_s18 + $0x54] sm:$0x1]  ;;  %s2371_s24 = smov (!%p453_p8, %s1596_s24), 1 }
  0x2a   : > { %v553_v42 = vrot.slane %v551_v36, 4  ;;  %v1619_v48 = vld [vmem:[%s1972_s18 + $0x5c] sm:$0x1]  ;;  %v560_v50 = vshll.u32 %v1618_v47, 16  ;;  %v2006_v52 = vld [vmem:[%s1972_s18] sm:$0xf]  ;;  %1702 = vmatpush3.bf16.msra.mxu0 %v1781_v53 }
  0x2b   : > { %v556_v49 = vrot.slane %v554_v43, 5  ;;  %v574_v51 = vshll.u32 %v1619_v48, 16  ;;  %768 = vrot.lane.b32.xlu0 %v1771_v44, %s1848_s8  ;;  %v571_v54 = vor.u32 %v570_v46, %v567_v45  ;;  %v2013_v55 = vld [vmem:[%s1972_s18 + $0x8] sm:$0xf]  ;;  %v473_v56 = vld [vmem:[%s1972_s18 + $0x4] sm:$0x1]  ;;  %1703 = vmatprep.subr.bf16.mxu0 %v1782_v63 }
  0x2c   : > { %720 = vrot.lane.b32.xlu1 %v1640_v40, %s1848_s8  ;;  %v474_v57 = vld [vmem:[%s1972_s18 + $0xc] sm:$0x1]  ;;  %v562_v60 = vrot.slane %v560_v50, 5  ;;  %v481_v62 = vshrl.u32 %v2006_v52, 16  ;;  %v484_v1 = vshll.u32 %v2006_v52, 16  ;;  %v490_v2 = vshll.u32 %v473_v56, 16 }
  0x2d   : > { %v557_v59 = vor.u32 %v556_v49, %v553_v42  ;;  %v576_v61 = vrot.slane %v574_v51, 5  ;;  %v572_v0 = vrot.slane %v571_v54, 4  ;;  %v495_v3 = vshrl.u32 %v2013_v55, 16  ;;  %v1624_v4 = vld [vmem:[%s1972_s18 + $0x18] sm:$0xf] }
  0x2e   : > { %v483_v6 = vrot.slane %v481_v62, 4  ;;  %v498_v7 = vshll.u32 %v2013_v55, 16  ;;  %v504_v8 = vshll.u32 %v474_v57, 16  ;;  %v2031_v9 = vrot.slane %v624_v34, 5  ;;  %v1625_v17 = vld [vmem:[%s1972_s18 + $0x20] sm:$0xf]  ;;  %1704 = vmatpush3.bf16.msra.mxu0 %v1783_v13 }
  0x2f   : > { %v558_v5 = vrot.slane %v557_v59, 4  ;;  %v577_v10 = vsel %vm2019_vm2, %v572_v0, %v576_v61  ;;  %v486_v11 = vrot.slane %v484_v1, 5  ;;  %v497_v12 = vrot.slane %v495_v3, 4  ;;  %v2045_v24 = vld [vmem:[%s1972_s18 + $0x60] sm:$0xf]  ;;  %1705 = vmatprep.subr.bf16.mxu0 %v1784_v19  ;;  %v1787_v1 = vld [vmem:[%s2359_s1 + $0x68] sm:$0xff]  }
  0x30   : > { %v492_v15 = vrot.slane %v490_v2, 5  ;;  %v500_v16 = vrot.slane %v498_v7, 5  ;;  %v649_v18 = vshrl.u32 %v1624_v4, 16  ;;  %v506_v22 = vrot.slane %v504_v8, 5  ;;  %v2050_v28 = vld [vmem:[%s1972_s18 + $0x68] sm:$0xf] }
  0x31   : > { %v563_v14 = vsel %vm2019_vm2, %v558_v5, %v562_v60  ;;  %v487_v21 = vor.u32 %v486_v11, %v483_v6  ;;  %v652_v23 = vshll.u32 %v1624_v4, 16  ;;  %v663_v27 = vshrl.u32 %v1625_v17, 16  ;;  %v1620_v29 = vld [vmem:[%s1972_s18 + $0x64] sm:$0x1]  ;;  %v1621_v35 = vld [vmem:[%s1972_s18 + $0x6c] sm:$0x1] }
  0x32   : > { %v1644_v20 = vcombine.low %v563_v14, %v577_v10  ;;  %v501_v25 = vor.u32 %v500_v16, %v497_v12  ;;  %v2047_v26 = vrot.slane %v649_v18, 4  ;;  %v666_v31 = vshll.u32 %v1625_v17, 16  ;;  %v2060_v42 = vld [vmem:[%s1972_s18 + $0x10] sm:$0xf]  ;;  %v2066_v46 = vld [vmem:[%s1972_s18 + $0x18] sm:$0xf] }
  0x33   : > { %v488_v30 = vrot.slane %v487_v21, 4  ;;  %v1647_v34 = vcombine.low %v1624_v4, %v1625_v17  ;;  %v579_v36 = vshrl.u32 %v2045_v24, 16  ;;  %v2056_v39 = vrot.slane %v652_v23, 5  ;;  %v475_v47 = vld [vmem:[%s1972_s18 + $0x14] sm:$0x1]  ;;  %v1785_v60 = vld [vmem:[%s2359_s1 + $0x20] sm:$0xff]  }
  0x34   : > { %740 = vrot.lane.b32.xlu0 %v1644_v20, %s1847_s29  ;;  %v502_v38 = vrot.slane %v501_v25, 4  ;;  %v582_v40 = vshll.u32 %v2045_v24, 16  ;;  %v588_v41 = vshll.u32 %v1620_v29, 16  ;;  %v593_v45 = vshrl.u32 %v2050_v28, 16  ;;  %v1773_v54 = vld [vmem:[%s1972_s18 + $0x38] ss:$8 sps:$4 sm:$0xff]   ;;  %1706 = vmatpush3.bf16.msra.mxu0 %v1785_v60 }
  0x35   : > { %v493_v43 = vsel %vm2019_vm2, %v488_v30, %v492_v15  ;;  %v581_v44 = vrot.slane %v579_v36, 4  ;;  %v2071_v49 = vrot.slane %v663_v27, 4  ;;  %v2073_v53 = vrot.slane %v666_v31, 5  ;;  %v476_v59 = vld [vmem:[%s1972_s18 + $0x1c] sm:$0x1]  ;;  %1707 = vmatprep.subr.bf16.mxu0 %v1787_v1  ;;  %v1788_v15 = vld [vmem:[%s2359_s1 + $0x28] sm:$0xff]  }
  0x36   : > { %v507_v48 = vsel %vm2019_vm2, %v502_v38, %v506_v22  ;;  %v584_v50 = vrot.slane %v582_v40, 5  ;;  %v595_v56 = vrot.slane %v593_v45, 4  ;;  %v596_v57 = vshll.u32 %v2050_v28, 16  ;;  %v1789_v25 = vld [vmem:[%s2359_s1 + $0x70] sm:$0xff]   ;;  %v1774_v36 = vld [vmem:[%s1972_s18 + $0x40] ss:$8 sps:$4 sm:$0xff]  }
  0x37   : > { %v1638_v51 = vcombine.low %v493_v43, %v507_v48  ;;  %v590_v62 = vrot.slane %v588_v41, 5  ;;  %v602_v63 = vshll.u32 %v1621_v35, 16  ;;  %v509_v0 = vshrl.u32 %v2060_v42, 16  ;;  %v1790_v31 = vld [vmem:[%s2359_s1 + $0x30] sm:$0xff]   ;;  %v1791_v38 = vld [vmem:[%s2359_s1 + $0x80] sm:$0xff]   ;;  %v1793_v48 = vld [vmem:[%s2359_s1 + $0x78] sm:$0xff]  }
  0x38   : > { %756 = vrot.lane.b32.xlu0 %v1647_v34, %s1846_s27  ;;  %v585_v61 = vor.u32 %v584_v50, %v581_v44  ;;  %v598_v2 = vrot.slane %v596_v57, 5  ;;  %v512_v3 = vshll.u32 %v2060_v42, 16  ;;  %v518_v4 = vshll.u32 %v475_v47, 16  ;;  %1708 = vmatpush3.bf16.msra.mxu0 %v1788_v15 }
  0x39   : > { %706 = vrot.lane.b32.xlu1 %v1638_v51, %s1846_s27  ;;  %v523_v5 = vshrl.u32 %v2066_v46, 16  ;;  %v604_v7 = vrot.slane %v602_v63, 5  ;;  %v511_v8 = vrot.slane %v509_v0, 4  ;;  %v526_v10 = vshll.u32 %v2066_v46, 16  ;;  %1709 = vmatprep.subr.bf16.mxu0 %v1789_v25  ;;  %v1797_v25 = vld [vmem:[%s1972_s18 + $0x88] ss:$8 sps:$4 sm:$0xff]  }
  0x3a   : > { %v586_v6 = vrot.slane %v585_v61, 4  ;;  %v599_v11 = vor.u32 %v598_v2, %v595_v56  ;;  %v514_v12 = vrot.slane %v512_v3, 5  ;;  %v520_v13 = vrot.slane %v518_v4, 5  ;;  %1729 = vmatprep.subr.bf16.mxu1 %v1791_v38  ;;  %v1633_v56 = vld [vmem:[%s1972_s18 + $0x24] sm:$0x1] }
  0x3b   : > { %v525_v14 = vrot.slane %v523_v5, 4  ;;  %v528_v16 = vrot.slane %v526_v10, 5  ;;  %v532_v17 = vshll.u32 %v476_v59, 16  ;;  %v1634_v21 = vcombine.low %v2006_v52, %v2013_v55  ;;  %1730 = vmatpush3.bf16.msra.mxu1 %v1791_v38  ;;  %v1798_v2 = vld [vmem:[%s2361_s3] ss:$16 sps:$4 sm:$0xff]  }
  0x3c   : > { %v591_v18 = vsel %vm2019_vm2, %v586_v6, %v590_v62  ;;  %v600_v19 = vrot.slane %v599_v11, 4  ;;  %v515_v20 = vor.u32 %v514_v12, %v511_v8  ;;  %v1635_v27 = vcombine.low %v2060_v42, %v2066_v46  ;;  %1710 = vmatpush3.bf16.msra.mxu0 %v1790_v31  ;;  %v1800_v3 = vld [vmem:[%s2361_s3 + $0x4] ss:$16 sps:$4 sm:$0xff]   ;;  %v1792_v12 = vld [vmem:[%s1972_s18 + $0x78] ss:$8 sps:$4 sm:$0xff]  }
  0x3d   : > { %698 = vrot.lane.b32.xlu1 %v1773_v54, %s1847_s29  ;;  %v529_v22 = vor.u32 %v528_v16, %v525_v14  ;;  %v534_v23 = vrot.slane %v532_v17, 5  ;;  %v655_v40 = vor.u32 %v2056_v39, %v2047_v26  ;;  %v669_v44 = vor.u32 %v2073_v53, %v2071_v49  ;;  %1711 = vmatprep.subr.bf16.mxu0 %v1793_v48  ;;  %v1632_v54 = vld [vmem:[%s1972_s18 + $0x1c] sm:$0x1]  ;;  %v1806_v42 = vld [vmem:[%s2361_s3 + $0x44] ss:$16 sps:$4 sm:$0xff]  }
  0x3e   : > { %v605_v29 = vsel %vm2019_vm2, %v600_v19, %v604_v7  ;;  %v516_v30 = vrot.slane %v515_v20, 4  ;;  %v627_v26 = vor.u32 %v2031_v9, %v1995_v37  ;;  %v1641_v47 = vcombine.low %v2045_v24, %v2050_v28  ;;  %v1794_v37 = vld [vmem:[%s2359_s1 + $0x38] sm:$0xff]   ;;  %v1795_v9 = vld [vmem:[%s2359_s1 + $0x88] sm:$0xff]   ;;  %v1631_v28 = vld [vmem:[%s1972_s18 + $0x14] sm:$0x1] }
  0x3f   : > { %v1645_v34 = vcombine.low %v591_v18, %v605_v29  ;;  %v530_v35 = vrot.slane %v529_v22, 4  ;;  %v656_v39 = vrot.slane %v655_v40, 4  ;;  %v641_v50 = vor.u32 %v1990_v33, %v1988_v32  ;;  %v1630_v24 = vld [vmem:[%s1972_s18 + $0xc] sm:$0x1]  ;;  %1731 = vmatprep.subr.bf16.mxu1 %v1795_v9  ;;  %v1801_v40 = vld [vmem:[%s2361_s3 + $0x20] ss:$16 sps:$4 sm:$0xff]  }
  0x40   : > { %v521_v41 = vsel %vm2019_vm2, %v516_v30, %v520_v13  ;;  %v670_v49 = vrot.slane %v669_v44, 4  ;;  %v628_v51 = vrot.slane %v627_v26, 4  ;;  %1712 = vmatpush3.bf16.msra.mxu0 %v1794_v37  ;;  %v630_v32 = vshll.u32 %v1630_v24, 16  ;;  %1732 = vmatpush3.bf16.msra.mxu1 %v1795_v9  ;;  %v1804_v46 = vld [vmem:[%s2361_s3 + $0x40] ss:$16 sps:$4 sm:$0xff]  }
  0x41   : > { %742 = vrot.lane.b32.xlu0 %v1645_v34, %s1847_s29  ;;  %v535_v43 = vsel %vm2019_vm2, %v530_v35, %v534_v23  ;;  %v642_v33 = vrot.slane %v641_v50, 4  ;;  %v644_v53 = vshll.u32 %v1631_v28, 16  ;;  %v658_v57 = vshll.u32 %v1632_v54, 16  ;;  %1176 = vmatprep.subr.bf16.mxu1 %v1800_v3  ;;  %v1652_v37 = vld [vmem:[%s2360_s2] ss:$0 sm:$0xff] }
  0x42   : > { %v1639_v45 = vcombine.low %v521_v41, %v535_v43  ;;  %v632_v59 = vrot.slane %v630_v32, 5  ;;  %v672_v61 = vshll.u32 %v1633_v56, 16  ;;  %v1803_v41 = vld [vmem:[%s2361_s3 + $0x24] ss:$16 sps:$4 sm:$0xff]   ;;  %v1807_v43 = vld [vmem:[%s2361_s3 + $0x60] ss:$16 sps:$4 sm:$0xff]  }
  0x43   : > { %v646_v60 = vrot.slane %v644_v53, 5  ;;  %v660_v62 = vrot.slane %v658_v57, 5  ;;  %v1849_v44 = vmov 0  }
  0x44   : > { %708 = vrot.lane.b32.xlu1 %v1639_v45, %s1846_s27  ;;  %v633_v63 = vsel %vm2019_vm2, %v628_v51, %v632_v59  ;;  %v674_v1 = vrot.slane %v672_v61, 5  ;;  %v1812_v45 = vld [vmem:[%s2361_s3 + $0xc] ss:$16 sps:$4 sm:$0xff]   ;;  %v1810_v59 = vld [vmem:[%s2361_s3 + $0x8] ss:$16 sps:$4 sm:$0xff]   ;;  %s1695_s27 = sshll.u32 %s2371_s24, 5 }
  0x45   : > { %770 = vrot.lane.b32.xlu0 %v1774_v36, %s1848_s8  ;;  %v647_v0 = vsel %vm2019_vm2, %v642_v33, %v646_v60  ;;  %v661_v5 = vsel %vm2019_vm2, %v656_v39, %v660_v62  ;;  %v1815_v61 = vld [vmem:[%s2361_s3 + $0x2c] ss:$16 sps:$4 sm:$0xff]   ;;  %s2323_s19 = scalar_lea.vmem %s2364_s6, %s1695_s27  ;;  %s457_s20 = scalar_lea.vmem %s2363_s5, %s1695_s27 }
  0x46   : > { %v1650_v4 = vcombine.low %v633_v63, %v647_v0  ;;  %v675_v6 = vsel %vm2019_vm2, %v670_v49, %v674_v1  ;;  %v1813_v63 = vld [vmem:[%s2361_s3 + $0x28] ss:$16 sps:$4 sm:$0xff]   ;;  %v1818_v1 = vld [vmem:[%s2361_s3 + $0x4c] ss:$16 sps:$4 sm:$0xff]  }
  0x47   : > { %v1651_v7 = vcombine.low %v661_v5, %v675_v6 }
  0x48   : > { %722 = vrot.lane.b32.xlu1 %v1641_v47, %s1848_s8  ;;  %1733 = vmatprep.mubr.msk.bf16.mxu1 %vm778_vm3, %v1650_v4 }
  0x49   : > { %1734 = vmatmul.mubr.msk.bf16.vlgmr.msra.gmra.mrb[0].mxu1 %vm778_vm3, %v1651_v7  ;;  %v1816_v7 = vld [vmem:[%s2361_s3 + $0x48] ss:$16 sps:$4 sm:$0xff]  }
  0x4a   : > { %1177 = vmatpush1.bf16.msra.mxu1 %v1798_v2  ;;  %1208 = vmatprep.mubr.bf16.mxu1 %v1849_v44 }
  0x4b   : > { %1178 = vmatprep.subr.bf16.mxu1 %v1803_v41 }
  0x4e   : > { %1179 = vmatpush1.bf16.msra.mxu1 %v1801_v40 }
  0x4f   : > { %1180 = vmatprep.subr.bf16.mxu1 %v1806_v42 }
  0x52   : > { %1181 = vmatpush1.bf16.msra.mxu1 %v1804_v46 }
  0x99   : > { %v697_v8 = vpop.permute.xlu0 %696 }
  0x9a   : > { %v755_v10 = vpop.permute.xlu1 %754  ;;  %v781_v17 = vsel %vm778_vm3, %v1634_v21, %v697_v8  ;;  %v1821_v8 = vld [vmem:[%s2361_s3 + $0x6c] ss:$16 sps:$4 sm:$0xff]  }
  0x9d   : > { %v769_v11 = vpop.permute.xlu0 %768 }
  0x9e   : > { %v721_v13 = vpop.permute.xlu1 %720 }
  0xa6   : > { %v741_v14 = vpop.permute.xlu0 %740 }
  0xa7   : > { %v799_v15 = vsel %vm778_vm3, %v1792_v12, %v741_v14 }
  0xa8   : > { %v804_v58 = vsel %vm785_vm4, %v799_v15, %v755_v10 }
  0xa9   : > { %v808_v16 = vsel %vm790_vm5, %v804_v58, %v769_v11 }
  0xaa   : > { %1002 = vmatprep.mubr.bf16.mxu0 %v808_v16  ;;  %v757_v22 = vpop.permute.xlu0 %756 }
  0xab   : > { %v707_v18 = vpop.permute.xlu1 %706 }
  0xac   : > { %v787_v19 = vsel %vm785_vm4, %v781_v17, %v707_v18 }
  0xad   : > { %v792_v20 = vsel %vm790_vm5, %v787_v19, %v721_v13  ;;  %v1819_v13 = vld [vmem:[%s2361_s3 + $0x68] ss:$16 sps:$4 sm:$0xff]  }
  0xae   : > { %1003 = vmatmul.mubr.bf16.vlgmr.msra.gmra.mrb[0].mxu0 %v792_v20  ;;  %v1300_v20 = vlaneseq }
  0xaf   : > { %v699_v23 = vpop.permute.xlu1 %698 }
  0xb0   : > { %v784_v55 = vsel %vm778_vm3, %v1635_v27, %v699_v23  ;;  %v1809_v27 = vld [vmem:[%s2361_s3 + $0x64] ss:$16 sps:$4 sm:$0xff]  }
  0xb1   : > { %1182 = vmatprep.subr.bf16.mxu1 %v1809_v27 }
  0xb2   : > { %1183 = vmatpush1.bf16.msra.mxu1 %v1807_v43 }
  0xb3   : > { %v743_v29 = vpop.permute.xlu0 %742  ;;  %1229 = vmatprep.subr.bf16.mxu1 %v1812_v45 }
  0xb4   : > { %v802_v30 = vsel %vm778_vm3, %v1797_v25, %v743_v29  ;;  %v1282_v29 = vld [vmem:[%s2362_s4] sm:$0xf] }
  0xb5   : > { %v806_v35 = vsel %vm785_vm4, %v802_v30, %v757_v22  ;;  %v1301_v22 = vshrl.u32 %v1300_v20, 7 }
  0xb6   : > { %v709_v31 = vpop.permute.xlu1 %708 }
  0xb7   : > { %v771_v34 = vpop.permute.xlu0 %770  ;;  %v789_v21 = vsel %vm785_vm4, %v784_v55, %v709_v31  ;;  %v1302_v23 = vsub.s32 0, %v1301_v22  ;;  %v1306_v25 = vsub.s32 1, %v1301_v22  ;;  %v1314_v42 = vsub.s32 3, %v1301_v22 }
  0xb8   : > { %v811_v52 = vsel %vm790_vm5, %v806_v35, %v771_v34 }
  0xb9   : > { %1010 = vmatprep.mubr.bf16.mxu0 %v811_v52  ;;  %v1303_v35 = vrot.slane %v1282_v29, %v1302_v23  ;;  %v1307_v55 = vrot.slane %v1282_v29, %v1306_v25 }
  0xba   : > { %v723_v36 = vpop.permute.xlu1 %722 }
  0xbb   : > { %v795_v38 = vsel %vm790_vm5, %v789_v21, %v723_v36 }
  0xbc   : > { %1011 = vmatmul.mubr.bf16.gmra.mrb[4].mxu0 %v795_v38  ;;  %v1310_v38 = vsub.s32 2, %v1301_v22 }
  0xbe   : > { %v1311_v43 = vrot.slane %v1282_v29, %v1310_v38 }
 0x11c   : > { %v1735_v26 = vpop.f32.mrb[0].mxu1 }
 0x11d   : > { %v1053_v39 = vpop.f32.mrb[1].mxu1 }
 0x11e   : > { %v1736_v47 = vpop.f32.mrb[2].mxu1 }
 0x11f   : > { %v1056_v48 = vpop.f32.mrb[3].mxu1 }
 0x181   : > { %v1713_v50 = vpop.f32.mrb[0].mxu0 }
 0x182   : > { %v1714_v49 = vpop.f32.mrb[1].mxu0 }
 0x183   : > { %v1715_v9 = vadd.f32 %v1714_v49, %v1713_v50  ;;  %v1716_v24 = vpop.f32.mrb[2].mxu0 }
 0x184   : > { %v1717_v28 = vpop.f32.mrb[3].mxu0 }
 0x185   : > { %v1718_v51 = vadd.f32 %v1717_v28, %v1716_v24  ;;  %v1005_v32 = vadd.f32 %v1715_v9, %v1652_v37 }
 0x187   : > { %v1054_v33 = vadd.f32 %v1053_v39, %v1005_v32  ;;  %v1008_v53 = vadd.f32 %v1718_v51, %v1652_v37  ;;  %v1315_v39 = vrot.slane %v1282_v29, %v1314_v42 }
 0x189   : > { %v1057_v54 = vadd.f32 %v1056_v48, %v1008_v53  ;;  %v2203_v56 = vmax.f32 %v1054_v33, 0.0 }
 0x18b   : > { %v2205_v57 = vmax.f32 %v1057_v54, 0.0 }
 0x18d   : > { %v1072_v60 = vpack.c.bf16 %v2205_v57, %v2203_v56 }
 0x18f   : > { %1689 = vmatmul.mubr.msk.bf16.vlgmr.msra.gmra.mrb[4].mxu1 %vm785_vm4, %v1072_v60  ;;  %v1719_v62 = vpop.f32.mrb[4].mxu0 }
 0x190   : > { %1230 = vmatpush1.bf16.msra.mxu1 %v1810_v59  ;;  %1218 = vmatprep.mubr.bf16.mxu1 %v1849_v44  ;;  %v1720_v0 = vpop.f32.mrb[5].mxu0 }
 0x191   : > { %1231 = vmatprep.subr.bf16.mxu1 %v1815_v61  ;;  %v1721_v2 = vadd.f32 %v1720_v0, %v1719_v62  ;;  %v1722_v3 = vpop.f32.mrb[6].mxu0 }
 0x192   : > { %v1723_v4 = vpop.f32.mrb[7].mxu0 }
 0x193   : > { %v1013_v5 = vadd.f32 %v1721_v2, %v1652_v37  ;;  %v1724_v6 = vadd.f32 %v1723_v4, %v1722_v3 }
 0x194   : > { %1232 = vmatpush1.bf16.msra.mxu1 %v1813_v63 }
 0x195   : > { %1233 = vmatprep.subr.bf16.mxu1 %v1818_v1  ;;  %v1062_v10 = vadd.f32 %v1735_v26, %v1013_v5  ;;  %v1016_v11 = vadd.f32 %v1724_v6, %v1652_v37 }
 0x197   : > { %v1065_v12 = vadd.f32 %v1736_v47, %v1016_v11  ;;  %v2231_v14 = vmax.f32 %v1062_v10, 0.0 }
 0x198   : > { %1234 = vmatpush1.bf16.msra.mxu1 %v1816_v7 }
 0x199   : > { %1235 = vmatprep.subr.bf16.mxu1 %v1821_v8  ;;  %v2233_v15 = vmax.f32 %v1065_v12, 0.0 }
 0x19b   : > { %v1073_v58 = vpack.c.bf16 %v2233_v15, %v2231_v14 }
 0x19c   : > { %1236 = vmatpush1.bf16.msra.mxu1 %v1819_v13 }
 0x19d   : > { %1690 = vmatmul.mubr.msk.bf16.gmra.mrb[8].mxu1 %vm785_vm4, %v1073_v58 }
 0x19e   : > { %1261 = vmatprep.mubr.bf16.mxu1 %v1849_v44 }
 0x1a5   : > { %1691 = vmatmul.mubr.msk.bf16.vlgmr.msra.gmra.mrb[12].mxu1 %vm785_vm4, %v1072_v60 }
 0x1a6   : > { %1271 = vmatprep.mubr.bf16.mxu1 %v1849_v44 }
 0x1ad   : > { %1692 = vmatmul.mubr.msk.bf16.gmra.mrb[16].mxu1 %vm785_vm4, %v1073_v58 }
 0x262   : > { %v1210_v16 = vpop.f32.mrb[4].mxu1 }
 0x263   : > { %v1212_v17 = vpop.f32.mrb[5].mxu1  ;;  %v1283_v34 = vmul.f32 2.0, %v1210_v16 }
 0x264   : > { %v1214_v18 = vpop.f32.mrb[6].mxu1  ;;  %v1284_v52 = vmul.f32 2.0, %v1212_v17 }
 0x265   : > { %v1216_v19 = vpop.f32.mrb[7].mxu1  ;;  %v1287_v40 = vmul.f32 2.0, %v1214_v18  ;;  %v1320_v46 = vsub.f32 %v1303_v35, %v1283_v34 }
 0x266   : > { %v1288_v41 = vmul.f32 2.0, %v1216_v19  ;;  %v1321_v27 = vsub.f32 %v1307_v55, %v1284_v52 }
 0x267   : > { %v2244_v44 = vsub.f32 %v1303_v35, %v1287_v40 }
 0x268   : > { %v2246_v45 = vsub.f32 %v1307_v55, %v1288_v41  ;;  %v1336_v50 = vmin.f32 %v1320_v46, %v1321_v27 }
 0x26a   : > { %v1341_v33 = vmin.f32 %v2244_v44, %v2246_v45 }
 0x270   : > { %v1220_v30 = vpop.f32.mrb[8].mxu1 }
 0x271   : > { %v1222_v31 = vpop.f32.mrb[9].mxu1  ;;  %v1291_v9 = vmul.f32 2.0, %v1220_v30 }
 0x272   : > { %v1224_v21 = vpop.f32.mrb[10].mxu1  ;;  %v1292_v24 = vmul.f32 2.0, %v1222_v31 }
 0x273   : > { %v1226_v36 = vpop.f32.mrb[11].mxu1  ;;  %v1295_v59 = vmul.f32 2.0, %v1224_v21  ;;  %v2250_v0 = vsub.f32 %v1303_v35, %v1291_v9 }
 0x274   : > { %v1296_v60 = vmul.f32 2.0, %v1226_v36  ;;  %v2252_v1 = vsub.f32 %v1307_v55, %v1292_v24 }
 0x275   : > { %v2254_v5 = vsub.f32 %v1303_v35, %v1295_v59  ;;  %v1357_v35 = vand.u32 127, %v1300_v20 }
 0x276   : > { %v2256_v6 = vsub.f32 %v1307_v55, %v1296_v60  ;;  %v1346_v13 = vmin.f32 %v2250_v0, %v2252_v1 }
 0x277   : > { %v1358_v52 = vadd.s32 128, %v1357_v35  ;;  %v1359_v21 = vadd.s32 256, %v1357_v35  ;;  %v1360_v41 = vadd.s32 384, %v1357_v35 }
 0x278   : > { %v1263_v26 = vpop.f32.mrb[12].mxu1  ;;  %v1351_v22 = vmin.f32 %v2254_v5, %v2256_v6 }
 0x279   : > { %v1285_v47 = vmul.f32 2.0, %v1263_v26  ;;  %v1265_v48 = vpop.f32.mrb[13].mxu1 }
 0x27a   : > { %v1286_v49 = vmul.f32 2.0, %v1265_v48  ;;  %v1267_v37 = vpop.f32.mrb[14].mxu1 }
 0x27b   : > { %v1322_v28 = vsub.f32 %v1311_v43, %v1285_v47  ;;  %v1289_v51 = vmul.f32 2.0, %v1267_v37  ;;  %v1269_v32 = vpop.f32.mrb[15].mxu1 }
 0x27c   : > { %v1323_v53 = vsub.f32 %v1315_v39, %v1286_v49  ;;  %v1290_v54 = vmul.f32 2.0, %v1269_v32 }
 0x27d   : > { %v1326_v61 = vsub.f32 %v1311_v43, %v1289_v51  ;;  %v1337_v62 = vmin.f32 %v1336_v50, %v1322_v28 }
 0x27e   : > { %v1327_v63 = vsub.f32 %v1315_v39, %v1290_v54 }
 0x27f   : > { %v1338_v2 = vmin.f32 %v1337_v62, %v1323_v53  ;;  %v1342_v3 = vmin.f32 %v1341_v33, %v1326_v61 }
 0x280   : > { %v1273_v4 = vpop.f32.mrb[16].mxu1 }
 0x281   : > { %v1293_v7 = vmul.f32 2.0, %v1273_v4  ;;  %1339 = vmin.xlane.f32.xlu0 %v1338_v2  ;;  %v1275_v8 = vpop.f32.mrb[17].mxu1  ;;  %v1343_v10 = vmin.f32 %v1342_v3, %v1327_v63 }
 0x282   : > { %v1294_v11 = vmul.f32 2.0, %v1275_v8  ;;  %v1277_v12 = vpop.f32.mrb[18].mxu1 }
 0x283   : > { %v1330_v58 = vsub.f32 %v1311_v43, %v1293_v7  ;;  %v1297_v16 = vmul.f32 2.0, %v1277_v12  ;;  %1344 = vmin.xlane.f32.xlu1 %v1343_v10  ;;  %v1279_v17 = vpop.f32.mrb[19].mxu1  ;;  %v1473_v7 = vmul.f32 %v2203_v56, %v2203_v56 }
 0x284   : > { %v2260_v18 = vsub.f32 %v1315_v39, %v1294_v11  ;;  %v1298_v19 = vmul.f32 2.0, %v1279_v17  ;;  %v1474_v11 = vmul.f32 %v2205_v57, %v2205_v57 }
 0x285   : > { %v2264_v23 = vsub.f32 %v1311_v43, %v1297_v16  ;;  %v1347_v25 = vmin.f32 %v1346_v13, %v1330_v58  ;;  %v1477_v12 = vsel %vm785_vm4, %v1473_v7, 0.0 }
 0x286   : > { %v2266_v29 = vsub.f32 %v1315_v39, %v1298_v19  ;;  %v1480_v13 = vsel %vm785_vm4, %v1474_v11, 0.0 }
 0x287   : > { %v1348_v30 = vmin.f32 %v1347_v25, %v2260_v18  ;;  %v1352_v31 = vmin.f32 %v1351_v22, %v2264_v23 }
 0x289   : > { %1349 = vmin.xlane.f32.xlu0 %v1348_v30  ;;  %v1353_v34 = vmin.f32 %v1352_v31, %v2266_v29 }
 0x28d   : > { %1354 = vmin.xlane.f32.xlu0 %v1353_v34  ;;  %v1475_v34 = vmul.f32 %v2231_v14, %v2231_v14 }
 0x28f   : > { %v1483_v14 = vsel %vm785_vm4, %v1475_v34, 0.0 }
 0x30e   : > { %v2272_v55 = vpop.xlane.xlu0 %1339 }
 0x30f   : > { %vm1361_vm6 = vcmp.le.f32.partialorder %v1320_v46, %v2272_v55  ;;  %vm1362_vm7 = vcmp.le.f32.partialorder %v1321_v27, %v2272_v55  ;;  %vm1363_vm8 = vcmp.le.f32.partialorder %v1322_v28, %v2272_v55  ;;  %vm1364_vm9 = vcmp.le.f32.partialorder %v1323_v53, %v2272_v55 }
 0x310   : > { %v1377_v36 = vsel %vm1361_vm6, %v1357_v35, 512  ;;  %v1378_v38 = vsel %vm1362_vm7, %v1358_v52, 512  ;;  %v2277_v40 = vpop.xlane.xlu1 %1344  ;;  %v1379_v46 = vsel %vm1363_vm8, %v1359_v21, 512  ;;  %v1380_v43 = vsel %vm1364_vm9, %v1360_v41, 512 }
 0x311   : > { %vm1365_vm10 = vcmp.le.f32.partialorder %v2244_v44, %v2277_v40  ;;  %vm1366_vm11 = vcmp.le.f32.partialorder %v2246_v45, %v2277_v40  ;;  %vm1393_vm12 = vcmp.lt.s32.totalorder %v1377_v36, %v1378_v38  ;;  %vm1367_vm13 = vcmp.le.f32.partialorder %v1326_v61, %v2277_v40 }
 0x312   : > { %v1381_v20 = vsel %vm1365_vm10, %v1357_v35, 512  ;;  %v1382_v42 = vsel %vm1366_vm11, %v1358_v52, 512  ;;  %v1394_v27 = vsel %vm1393_vm12, %v1377_v36, %v1378_v38  ;;  %vm1368_vm15 = vcmp.le.f32.partialorder %v1327_v63, %v2277_v40 }
 0x313   : > { %vm1395_vm14 = vcmp.lt.s32.totalorder %v1394_v27, %v1379_v46  ;;  %vm1413_vm0 = vcmp.lt.s32.totalorder %v1381_v20, %v1382_v42  ;;  %v1383_v39 = vsel %vm1367_vm13, %v1359_v21, 512  ;;  %v1384_v48 = vsel %vm1368_vm15, %v1360_v41, 512 }
 0x314   : > { %v1396_v26 = vsel %vm1395_vm14, %v1394_v27, %v1379_v46  ;;  %v1414_v47 = vsel %vm1413_vm0, %v1381_v20, %v1382_v42 }
 0x315   : > { %vm1397_vm1 = vcmp.lt.s32.totalorder %v1396_v26, %v1380_v43  ;;  %vm1415_vm2 = vcmp.lt.s32.totalorder %v1414_v47, %v1383_v39 }
 0x316   : > { %v2286_v44 = vpop.xlane.xlu0 %1349  ;;  %v1398_v45 = vsel %vm1397_vm1, %v1396_v26, %v1380_v43  ;;  %v1416_v50 = vsel %vm1415_vm2, %v1414_v47, %v1383_v39 }
 0x317   : > { %vm1369_vm3 = vcmp.le.f32.partialorder %v2250_v0, %v2286_v44  ;;  %vm1370_vm5 = vcmp.le.f32.partialorder %v2252_v1, %v2286_v44  ;;  %v1400_v49 = vshra.s32 %v1398_v45, 16  ;;  %vm1417_vm6 = vcmp.lt.s32.totalorder %v1416_v50, %v1384_v48 }
 0x318   : > { %v1385_v37 = vsel %vm1369_vm3, %v1357_v35, 512  ;;  %v1386_v9 = vsel %vm1370_vm5, %v1358_v52, 512  ;;  %v1418_v24 = vsel %vm1417_vm6, %v1416_v50, %v1384_v48  ;;  %vm1371_vm7 = vcmp.le.f32.partialorder %v1330_v58, %v2286_v44 }
 0x319   : > { %v1402_v28 = vcvt.s32.f32 %v1400_v49  ;;  %v1420_v51 = vshra.s32 %v1418_v24, 16  ;;  %vm1372_vm8 = vcmp.le.f32.partialorder %v2260_v18, %v2286_v44  ;;  %v1387_v33 = vsel %vm1371_vm7, %v1359_v21, 512 }
 0x31a   : > { %v2293_v32 = vpop.xlane.xlu0 %1354  ;;  %vm1433_vm9 = vcmp.lt.s32.totalorder %v1385_v37, %v1386_v9  ;;  %v1388_v61 = vsel %vm1372_vm8, %v1360_v41, 512  ;;  %v1399_v58 = vand.u32 65535, %v1398_v45  ;;  %v1419_v16 = vand.u32 65535, %v1418_v24 }
 0x31b   : > { %vm1373_vm10 = vcmp.le.f32.partialorder %v2254_v5, %v2293_v32  ;;  %vm1374_vm11 = vcmp.le.f32.partialorder %v2256_v6, %v2293_v32  ;;  %1403 = vmin.xlane.f32.xlu1 %v1402_v28  ;;  %v1422_v53 = vcvt.s32.f32 %v1420_v51  ;;  %v1434_v54 = vsel %vm1433_vm9, %v1385_v37, %v1386_v9 }
 0x31c   : > { %v1389_v59 = vsel %vm1373_vm10, %v1357_v35, 512  ;;  %v1390_v60 = vsel %vm1374_vm11, %v1358_v52, 512  ;;  %vm1435_vm12 = vcmp.lt.s32.totalorder %v1434_v54, %v1387_v33  ;;  %vm1375_vm13 = vcmp.le.f32.partialorder %v2264_v23, %v2293_v32 }
 0x31d   : > { %1423 = vmin.xlane.f32.xlu0 %v1422_v53  ;;  %v1436_v62 = vsel %vm1435_vm12, %v1434_v54, %v1387_v33  ;;  %vm1376_vm14 = vcmp.le.f32.partialorder %v2266_v29, %v2293_v32  ;;  %vm1453_vm15 = vcmp.lt.s32.totalorder %v1389_v59, %v1390_v60  ;;  %v1391_v63 = vsel %vm1375_vm13, %v1359_v21, 512 }
 0x31e   : > { %vm1437_vm0 = vcmp.lt.s32.totalorder %v1436_v62, %v1388_v61  ;;  %v1454_v0 = vsel %vm1453_vm15, %v1389_v59, %v1390_v60  ;;  %v1392_v3 = vsel %vm1376_vm14, %v1360_v41, 512  ;;  %v1401_v18 = vcvt.s32.f32 %v1399_v58 }
 0x31f   : > { %v1438_v1 = vsel %vm1437_vm0, %v1436_v62, %v1388_v61  ;;  %vm1455_vm1 = vcmp.lt.s32.totalorder %v1454_v0, %v1391_v63  ;;  %v1421_v22 = vcvt.s32.f32 %v1419_v16  ;;  %vm1489_vm7 = vcmask 7168  }
 0x320   : > { %v1440_v2 = vshra.s32 %v1438_v1, 16  ;;  %v1456_v4 = vsel %vm1455_vm1, %v1454_v0, %v1391_v63  ;;  %v1439_v23 = vand.u32 65535, %v1438_v1  ;;  %v1476_v41 = vmul.f32 %v2233_v15, %v2233_v15 }
 0x321   : > { %vm1457_vm2 = vcmp.lt.s32.totalorder %v1456_v4, %v1392_v3 }
 0x322   : > { %v1442_v5 = vcvt.s32.f32 %v1440_v2  ;;  %v1458_v6 = vsel %vm1457_vm2, %v1456_v4, %v1392_v3  ;;  %v1441_v30 = vcvt.s32.f32 %v1439_v23  ;;  %v1486_v46 = vsel %vm785_vm4, %v1476_v41, 0.0 }
 0x323   : > { %v1460_v8 = vshra.s32 %v1458_v6, 16  ;;  %v1459_v25 = vand.u32 65535, %v1458_v6 }
 0x324   : > { %1443 = vmin.xlane.f32.xlu1 %v1442_v5 }
 0x325   : > { %v1462_v10 = vcvt.s32.f32 %v1460_v8  ;;  %v1461_v52 = vcvt.s32.f32 %v1459_v25 }
 0x327   : > { %1463 = vmin.xlane.f32.xlu0 %v1462_v10 }
 0x328   : > { %1478 = vadd.xlane.f32.xlu1 %v1477_v12 }
 0x32b   : > { %1481 = vadd.xlane.f32.xlu0 %v1480_v13 }
 0x3a8   : > { %v1404_v17 = vpop.xlane.xlu1 %1403 }
 0x3a9   : > { %vm1405_vm3 = vcmp.eq.f32.partialorder %v1402_v28, %v1404_v17  ;;  %v1410_v27 = vcvt.f32.s32 %v1404_v17 }
 0x3aa   : > { %v1424_v56 = vpop.xlane.xlu0 %1423  ;;  %v1406_v19 = vsel %vm1405_vm3, %v1401_v18, inf }
 0x3ab   : > { %1407 = vmin.xlane.f32.xlu1 %v1406_v19  ;;  %vm1425_vm5 = vcmp.eq.f32.partialorder %v1422_v53, %v1424_v56  ;;  %v1411_v26 = vshll.u32 %v1410_v27, 16 }
 0x3ac   : > { %v1426_v57 = vsel %vm1425_vm5, %v1421_v22, inf }
 0x3ad   : > { %1427 = vmin.xlane.f32.xlu0 %v1426_v57 }
 0x3b1   : > { %v1444_v29 = vpop.xlane.xlu1 %1443 }
 0x3b2   : > { %vm1445_vm6 = vcmp.eq.f32.partialorder %v1442_v5, %v1444_v29  ;;  %v1450_v50 = vcvt.f32.s32 %v1444_v29 }
 0x3b3   : > { %v1446_v31 = vsel %vm1445_vm6, %v1441_v30, inf }
 0x3b4   : > { %1447 = vmin.xlane.f32.xlu1 %v1446_v31  ;;  %v1464_v35 = vpop.xlane.xlu0 %1463  ;;  %v1451_v9 = vshll.u32 %v1450_v50, 16 }
 0x3b5   : > { %v1479_v21 = vpop.xlane.xlu1 %1478  ;;  %vm1465_vm8 = vcmp.eq.f32.partialorder %v1462_v10, %v1464_v35  ;;  %v1470_v49 = vcvt.f32.s32 %v1464_v35 }
 0x3b6   : > { %v1494_v36 = vadd.f32 %v1479_v21, %v2272_v55  ;;  %v1466_v38 = vsel %vm1465_vm8, %v1461_v52, inf  ;;  %v1430_v55 = vcvt.f32.s32 %v1424_v56 }
 0x3b7   : > { %1467 = vmin.xlane.f32.xlu0 %v1466_v38  ;;  %v1471_v33 = vshll.u32 %v1470_v49, 16 }
 0x3b8   : > { %1498 = vst.msk [vmem:[%s2323_s19] sm:$0xff] %vm1489_vm7, %v1494_v36  ;;  %1484 = vadd.xlane.f32.xlu1 %v1483_v14  ;;  %v1482_v20 = vpop.xlane.xlu0 %1481  ;;  %v1431_v47 = vshll.u32 %v1430_v55, 16 }
 0x3b9   : > { %v1495_v42 = vadd.f32 %v1482_v20, %v2277_v40 }
 0x3bb   : > { %1499 = vst.msk [vmem:[%s2323_s19 + $0x8] sm:$0xff] %vm1489_vm7, %v1495_v42  ;;  %1487 = vadd.xlane.f32.xlu0 %v1486_v46 }
 0x438   : > { %v1408_v43 = vpop.xlane.xlu1 %1407 }
 0x439   : > { %v1409_v39 = vcvt.f32.s32 %v1408_v43 }
 0x43a   : > { %v1428_v15 = vpop.xlane.xlu0 %1427 }
 0x43b   : > { %v1412_v45 = vadd.s32 %v1411_v26, %v1409_v39  ;;  %v1429_v48 = vcvt.f32.s32 %v1428_v15 }
 0x43d   : > { %1490 = vst.msk [vmem:[%s457_s20] sm:$0xff] %vm1489_vm7, %v1412_v45  ;;  %v1432_v40 = vadd.s32 %v1431_v47, %v1429_v48 }
 0x43f   : > { %1491 = vst.msk [vmem:[%s457_s20 + $0x8] sm:$0xff] %vm1489_vm7, %v1432_v40 }
 0x441   : > { %v1448_v37 = vpop.xlane.xlu1 %1447 }
 0x442   : > { %v1449_v24 = vcvt.f32.s32 %v1448_v37 }
 0x444   : > { %v1452_v28 = vadd.s32 %v1451_v9, %v1449_v24  ;;  %v1468_v51 = vpop.xlane.xlu0 %1467 }
 0x445   : > { %v1485_v53 = vpop.xlane.xlu1 %1484  ;;  %v1469_v54 = vcvt.f32.s32 %v1468_v51 }
 0x446   : > { %1492 = vst.msk [vmem:[%s457_s20 + $0x10] sm:$0xff] %vm1489_vm7, %v1452_v28  ;;  %v1496_v59 = vadd.f32 %v1485_v53, %v2286_v44 }
 0x447   : > { %v1472_v60 = vadd.s32 %v1471_v33, %v1469_v54 }
 0x448   : > { %1500 = vst.msk [vmem:[%s2323_s19 + $0x10] sm:$0xff] %vm1489_vm7, %v1496_v59  ;;  %v1488_v61 = vpop.xlane.xlu0 %1487 }
 0x449   : > { %1493 = vst.msk [vmem:[%s457_s20 + $0x18] sm:$0xff] %vm1489_vm7, %v1472_v60  ;;  %v1497_v62 = vadd.f32 %v1488_v61, %v2293_v32 }
 0x44b   : > { %1501 = vst.msk [vmem:[%s2323_s19 + $0x18] sm:$0xff] %vm1489_vm7, %v1497_v62 }
 0x44c PF: > { %p14_p9 = scmp.ge.s32.totalorder %s1902_s25, 4   ;;  %s2367_s21 = smov %s1840_s22 }
 0x44d   : > { %s2368_s22 = smov %s1911_s28  ;;  %s2369_s23 = smov %s1902_s25 }
 0x44e   :  { %16 = sbr.rel (!%p14_p9) target bundleno = 2 (0x2), region = 133 }

// kernel: vqvae_forward.7
= control target key start
LH: loop header
LB: loop body
LE: loop exit
PB: predicated region body
PF: predicated region fallthrough
CT: control target
= control target key end

     0   :  { %s1006_s12 = smov 0   ;;  %s1222_s0 = inlined_call_operand.vmem [shape: bf16[1,2,9,9,32], index: 0, kind: input, shape index: {}]   ;;  %s1223_s1 = inlined_call_operand.vmem [shape: bf16[128,4], index: 1, kind: input, shape index: {}]   ;;  %s1224_s2 = inlined_call_operand.vmem [shape: f32[1,4], index: 2, kind: input, shape index: {}]   ;;  %s1225_s3 = inlined_call_operand.vmem [shape: f32[2,64,4], index: 3, kind: output, shape index: {}]  }
   0x1 LB: > { %s803_s13 = sadd.s32 4294967295, %s981_s12   ;;  %p807_p0 = scmp.ge.s32.totalorder %s981_s12, 1  ;;  %s981_s12 = sphi %s1006_s12, %s13_s12  }
   0x2   : > { %p137_p1 = scmp.lt.s32.totalorder %s981_s12, 3 }
   0x4   : > { %p138_p2 = pnand %p807_p0, %p137_p1 }
   0x5   : > { %p161_p3 = scmp.lt.s32.totalorder (!%p138_p2), %s803_s13, 1  ;;  %v931_v0 = vld [vmem:[%s1223_s1] sm:$0xff] (!%p138_p2)   ;;  %v932_v1 = vld [vmem:[%s1223_s1 + $0x8] sm:$0xff] (!%p138_p2)   ;;  %v933_v2 = vld [vmem:[%s1223_s1 + $0x10] sm:$0xff] (!%p138_p2)   ;;  %s983_s24 = smov (!%p138_p2), 64   ;;  %vm520_vm3 = vcmask (!%p138_p2), 261120  }
   0x6   : > { %141 = sbr.rel (%p138_p2) target bundleno = 423 (0x1a7), region = 32  ;;  %875 = vmatprep.subr.bf16.mxu0 (!%p138_p2), %v931_v0  ;;  %899 = vmatprep.subr.bf16.mxu1 (!%p138_p2), %v931_v0  ;;  %v934_v19 = vld [vmem:[%s1223_s1 + $0x18] sm:$0xff] (!%p138_p2)   ;;  %vm188_vm0 = vsmask.f32 (!%p138_p2), 3328  ;;  %vm189_vm1 = vsmask.f32 (!%p138_p2), 7440 }
   0x7   : > { %876 = vmatpush3.bf16.msra.mxu0 (!%p138_p2), %v931_v0  ;;  %907 = vmatpush3.bf16.msra.mxu1 (!%p138_p2), %v931_v0  ;;  %v935_v30 = vld [vmem:[%s1223_s1 + $0x20] sm:$0xff] (!%p138_p2)   ;;  %vm1103_vm2 = vmor (!%p138_p2), %vm188_vm0, %vm189_vm1  ;;  %s984_s4 = smov (!%p138_p2), 32   ;;  %s985_s9 = smov (!%p138_p2), 96   ;;  %vm542_vm4 = vcmask (!%p138_p2), 785408   ;;  %vm533_vm5 = vcmask (!%p138_p2), 523264   ;;  %vm739_vm6 = vcmask (!%p138_p2), 31744  }
   0x8   : > { %877 = vmatprep.subr.bf16.mxu0 (!%p138_p2), %v932_v1  ;;  %900 = vmatprep.subr.bf16.mxu1 (!%p138_p2), %v932_v1 }
   0xb   : > { %878 = vmatpush3.bf16.msra.mxu0 (!%p138_p2), %v932_v1  ;;  %908 = vmatpush3.bf16.msra.mxu1 (!%p138_p2), %v932_v1 }
   0xc   : > { %879 = vmatprep.subr.bf16.mxu0 (!%p138_p2), %v933_v2  ;;  %901 = vmatprep.subr.bf16.mxu1 (!%p138_p2), %v933_v2 }
   0xd   : > { %s1229_s13 = smov (!%p161_p3, %s803_s13), 1 }
   0xe   : > { %s915_s18 = smul.u32 72, %s1229_s13  ;;  %s862_s14 = sshll.u32 %s1229_s13, 6 }
   0xf   : > { %880 = vmatpush3.bf16.msra.mxu0 %v933_v2  ;;  %909 = vmatpush3.bf16.msra.mxu1 %v933_v2  ;;  %s170_s17 = scalar_lea.vmem %s1225_s3, %s862_s14 }
  0x10   : > { %s1026_s21 = scalar_lea.vmem %s1222_s0, %s915_s18  ;;  %881 = vmatprep.subr.bf16.mxu0 %v934_v19  ;;  %902 = vmatprep.subr.bf16.mxu1 %v934_v19 }
  0x11   : > { %v815_v3 = vld [vmem:[%s1026_s21 + $0x28] sm:$0xf]  ;;  %v816_v4 = vld [vmem:[%s1026_s21 + $0x30] sm:$0xf]  ;;  %v817_v24 = vld [vmem:[%s1026_s21 + $0x38] sm:$0xf] }
  0x12   : > { %v811_v5 = vld [vmem:[%s1026_s21 + $0x8] sm:$0xf]  ;;  %v391_v6 = vshrl.u32 %v816_v4, 16  ;;  %v394_v7 = vshll.u32 %v816_v4, 16  ;;  %v837_v8 = vcombine.low %v815_v3, %v816_v4  ;;  %v377_v9 = vshrl.u32 %v815_v3, 16 }
  0x13   : > { %v812_v10 = vld [vmem:[%s1026_s21 + $0x10] sm:$0xf]  ;;  %v380_v11 = vshll.u32 %v815_v3, 16  ;;  %v321_v18 = vshrl.u32 %v811_v5, 16  ;;  %v324_v23 = vshll.u32 %v811_v5, 16  ;;  %v405_v28 = vshrl.u32 %v817_v24, 16  ;;  %882 = vmatpush3.bf16.msra.mxu0 %v934_v19  ;;  %910 = vmatpush3.bf16.msra.mxu1 %v934_v19 }
  0x14   : > { %v335_v12 = vshrl.u32 %v812_v10, 16  ;;  %v338_v13 = vshll.u32 %v812_v10, 16  ;;  %v835_v14 = vcombine.low %v811_v5, %v812_v10  ;;  %v393_v15 = vrot.slane %v391_v6, 4  ;;  %496 = vrot.lane.b32.xlu1 %v837_v8, %s983_s24  ;;  %v818_v27 = vld [vmem:[%s1026_s21 + $0x40] sm:$0xf]  ;;  %883 = vmatprep.subr.bf16.mxu0 %v935_v30 }
  0x15   : > { %v396_v16 = vrot.slane %v394_v7, 5  ;;  %v379_v17 = vrot.slane %v377_v9, 4  ;;  %v382_v20 = vrot.slane %v380_v11, 5  ;;  %v323_v26 = vrot.slane %v321_v18, 4  ;;  %v813_v35 = vld [vmem:[%s1026_s21 + $0x18] sm:$0xf]  ;;  %903 = vmatprep.subr.bf16.mxu1 %v935_v30 }
  0x16   : > { %v337_v21 = vrot.slane %v335_v12, 4  ;;  %v340_v22 = vrot.slane %v338_v13, 5  ;;  %492 = vrot.lane.b32.xlu0 %v835_v14, %s983_s24  ;;  %v408_v29 = vshll.u32 %v817_v24, 16  ;;  %v326_v33 = vrot.slane %v324_v23, 5  ;;  %v814_v36 = vld [vmem:[%s1026_s21 + $0x20] sm:$0xf] }
  0x17   : > { %v397_v25 = vor.u32 %v396_v16, %v393_v15  ;;  %v383_v31 = vor.u32 %v382_v20, %v379_v17  ;;  %v419_v34 = vshrl.u32 %v818_v27, 16  ;;  %v1049_v38 = vrot.slane %v405_v28, 4  ;;  %v1054_v41 = vld [vmem:[%s1026_s21 + $0x10] sm:$0xf]  ;;  %v1063_v46 = vld [vmem:[%s1026_s21 + $0x18] sm:$0xf]  ;;  %884 = vmatpush3.bf16.msra.mxu0 %v935_v30  ;;  %911 = vmatpush3.bf16.msra.mxu1 %v935_v30 }
  0x18   : > { %v341_v32 = vor.u32 %v340_v22, %v337_v21  ;;  %v1051_v39 = vrot.slane %v408_v29, 5  ;;  %v422_v40 = vshll.u32 %v818_v27, 16  ;;  %v327_v44 = vor.u32 %v326_v33, %v323_v26  ;;  %v182_v51 = vld [vmem:[%s1026_s21 + $0x14] sm:$0x1]  ;;  %v183_v56 = vld [vmem:[%s1026_s21 + $0x1c] sm:$0x1] }
  0x19   : > { %v1047_v37 = vrot.slane %v397_v25, 4  ;;  %v1056_v42 = vrot.slane %v383_v31, 4  ;;  %v1060_v45 = vrot.slane %v419_v34, 4  ;;  %v838_v48 = vcombine.low %v817_v24, %v818_v27  ;;  %v1079_v61 = vld [vmem:[%s1026_s21] sm:$0xf]  ;;  %v938_v18 = vld [vmem:[%s1223_s1 + $0x28] sm:$0xff]  }
  0x1a   : > { %v1058_v43 = vrot.slane %v341_v32, 4  ;;  %v1065_v47 = vrot.slane %v422_v40, 5  ;;  %v349_v49 = vshrl.u32 %v813_v35, 16  ;;  %v352_v50 = vshll.u32 %v813_v35, 16  ;;  %v180_v2 = vld [vmem:[%s1026_s21 + $0x4] sm:$0x1]  ;;  %885 = vmatprep.subr.bf16.mxu0 %v938_v18  ;;  %904 = vmatprep.subr.bf16.mxu1 %v938_v18 }
  0x1b   : > { %v1068_v52 = vrot.slane %v327_v44, 4  ;;  %v363_v53 = vshrl.u32 %v814_v36, 16  ;;  %v366_v54 = vshll.u32 %v814_v36, 16  ;;  %v836_v55 = vcombine.low %v813_v35, %v814_v36  ;;  %498 = vrot.lane.b32.xlu1 %v838_v48, %s983_s24  ;;  %v1090_v7 = vld [vmem:[%s1026_s21 + $0x8] sm:$0xf]  ;;  %886 = vmatpush3.bf16.msra.mxu0 %v938_v18 }
  0x1c   : > { %v1072_v57 = vrot.slane %v349_v49, 4  ;;  %v1074_v58 = vrot.slane %v352_v50, 5  ;;  %v220_v59 = vshrl.u32 %v1054_v41, 16  ;;  %v223_v60 = vshll.u32 %v1054_v41, 16  ;;  %v181_v10 = vld [vmem:[%s1026_s21 + $0xc] sm:$0x1]  ;;  %912 = vmatpush3.bf16.msra.mxu1 %v938_v18 }
  0x1d   : > { %v1081_v62 = vrot.slane %v363_v53, 4  ;;  %v1083_v63 = vrot.slane %v366_v54, 5  ;;  %494 = vrot.lane.b32.xlu0 %v836_v55, %s983_s24  ;;  %v229_v0 = vshll.u32 %v182_v51, 16  ;;  %v234_v1 = vshrl.u32 %v1063_v46, 16  ;;  %v1096_v17 = vld [vmem:[%s1026_s21 + $0x30] sm:$0xf] }
  0x1e   : > { %v222_v3 = vrot.slane %v220_v59, 4  ;;  %v225_v4 = vrot.slane %v223_v60, 5  ;;  %v237_v5 = vshll.u32 %v1063_v46, 16  ;;  %v243_v6 = vshll.u32 %v183_v56, 16  ;;  %v186_v28 = vld [vmem:[%s1026_s21 + $0x34] sm:$0x1] }
  0x1f   : > { %v231_v8 = vrot.slane %v229_v0, 5  ;;  %v236_v9 = vrot.slane %v234_v1, 4  ;;  %v192_v11 = vshrl.u32 %v1079_v61, 16  ;;  %v195_v12 = vshll.u32 %v1079_v61, 16  ;;  %v1111_v32 = vld [vmem:[%s1026_s21 + $0x38] sm:$0xf] }
  0x20   : > { %v226_v13 = vor.u32 %v225_v4, %v222_v3  ;;  %v239_v14 = vrot.slane %v237_v5, 5  ;;  %v245_v15 = vrot.slane %v243_v6, 5  ;;  %v201_v16 = vshll.u32 %v180_v2, 16  ;;  %v187_v40 = vld [vmem:[%s1026_s21 + $0x3c] sm:$0x1] }
  0x21   : > { %v194_v20 = vrot.slane %v192_v11, 4  ;;  %v197_v21 = vrot.slane %v195_v12, 5  ;;  %v206_v22 = vshrl.u32 %v1090_v7, 16  ;;  %v209_v23 = vshll.u32 %v1090_v7, 16  ;;  %v1119_v53 = vld [vmem:[%s1026_s21 + $0x20] sm:$0xf] }
  0x22   : > { %v227_v24 = vrot.slane %v226_v13, 4  ;;  %v240_v25 = vor.u32 %v239_v14, %v236_v9  ;;  %v203_v26 = vrot.slane %v201_v16, 5  ;;  %v215_v27 = vshll.u32 %v181_v10, 16  ;;  %v184_v60 = vld [vmem:[%s1026_s21 + $0x24] sm:$0x1]  ;;  %v941_v16 = vld [vmem:[%s1223_s1 + $0x30] sm:$0xff]  }
  0x23   : > { %v198_v29 = vor.u32 %v197_v21, %v194_v20  ;;  %v208_v30 = vrot.slane %v206_v22, 4  ;;  %v211_v31 = vrot.slane %v209_v23, 5  ;;  %v276_v33 = vshrl.u32 %v1096_v17, 16  ;;  %v1129_v4 = vld [vmem:[%s1026_s21 + $0x28] sm:$0xf]  ;;  %887 = vmatprep.subr.bf16.mxu0 %v941_v16  ;;  %905 = vmatprep.subr.bf16.mxu1 %v941_v16 }
  0x24   : > { %v232_v34 = vsel %vm1103_vm2, %v227_v24, %v231_v8  ;;  %v241_v35 = vrot.slane %v240_v25, 4  ;;  %v217_v36 = vrot.slane %v215_v27, 5  ;;  %v279_v44 = vshll.u32 %v1096_v17, 16  ;;  %v185_v10 = vld [vmem:[%s1026_s21 + $0x2c] sm:$0x1]  ;;  %888 = vmatpush3.bf16.msra.mxu0 %v941_v16  ;;  %913 = vmatpush3.bf16.msra.mxu1 %v941_v16 }
  0x25   : > { %v199_v48 = vrot.slane %v198_v29, 4  ;;  %v212_v49 = vor.u32 %v211_v31, %v208_v30  ;;  %v278_v50 = vrot.slane %v276_v33, 4  ;;  %v285_v51 = vshll.u32 %v186_v28, 16  ;;  %v824_v23 = vld [vmem:[%s1026_s21 + $0x34] sm:$0x1] }
  0x26   : > { %v246_v54 = vsel %vm1103_vm2, %v241_v35, %v245_v15  ;;  %v281_v55 = vrot.slane %v279_v44, 5  ;;  %v290_v56 = vshrl.u32 %v1111_v32, 16  ;;  %v293_v59 = vshll.u32 %v1111_v32, 16  ;;  %v823_v15 = vld [vmem:[%s1026_s21 + $0x2c] sm:$0x1] }
  0x27   : > { %v832_v0 = vcombine.low %v232_v34, %v246_v54  ;;  %v204_v1 = vsel %vm1103_vm2, %v199_v48, %v203_v26  ;;  %v213_v2 = vrot.slane %v212_v49, 4  ;;  %v287_v3 = vrot.slane %v285_v51, 5  ;;  %v819_v24 = vld [vmem:[%s1026_s21 + $0xc] sm:$0x1]  ;;  %v820_v29 = vld [vmem:[%s1026_s21 + $0x14] sm:$0x1] }
  0x28   : > { %v282_v5 = vor.u32 %v281_v55, %v278_v50  ;;  %v292_v6 = vrot.slane %v290_v56, 4  ;;  %v295_v8 = vrot.slane %v293_v59, 5  ;;  %v299_v9 = vshll.u32 %v187_v40, 16  ;;  %v825_v35 = vld [vmem:[%s1026_s21 + $0x3c] sm:$0x1] }
  0x29   : > { %466 = vrot.lane.b32.xlu1 %v832_v0, %s984_s4  ;;  %v218_v11 = vsel %vm1103_vm2, %v213_v2, %v217_v36  ;;  %v248_v12 = vshrl.u32 %v1119_v53, 16  ;;  %v251_v13 = vshll.u32 %v1119_v53, 16  ;;  %v257_v14 = vshll.u32 %v184_v60, 16  ;;  %v942_v49 = vld [vmem:[%s1223_s1 + $0x38] sm:$0xff]  }
  0x2a   : > { %v831_v18 = vcombine.low %v204_v1, %v218_v11  ;;  %v283_v20 = vrot.slane %v282_v5, 4  ;;  %v296_v21 = vor.u32 %v295_v8, %v292_v6  ;;  %v301_v22 = vrot.slane %v299_v9, 5  ;;  %889 = vmatprep.subr.bf16.mxu0 %v942_v49  ;;  %906 = vmatprep.subr.bf16.mxu1 %v942_v49  ;;  %v826_v5 = vld [vmem:[%s1026_s21 + $0x44] sm:$0x1] }
  0x2b   : > { %v250_v25 = vrot.slane %v248_v12, 4  ;;  %v253_v26 = vrot.slane %v251_v13, 5  ;;  %v259_v27 = vrot.slane %v257_v14, 5  ;;  %v262_v28 = vshrl.u32 %v1129_v4, 16  ;;  %890 = vmatpush3.bf16.msra.mxu0 %v942_v49  ;;  %v821_v12 = vld [vmem:[%s1026_s21 + $0x1c] sm:$0x1]  ;;  %914 = vmatpush3.bf16.msra.mxu1 %v942_v49 }
  0x2c   : > { %464 = vrot.lane.b32.xlu0 %v831_v18, %s984_s4  ;;  %v288_v30 = vsel %vm1103_vm2, %v283_v20, %v287_v3  ;;  %v297_v31 = vrot.slane %v296_v21, 4  ;;  %v265_v33 = vshll.u32 %v1129_v4, 16  ;;  %v271_v34 = vshll.u32 %v185_v10, 16  ;;  %v822_v21 = vld [vmem:[%s1026_s21 + $0x24] sm:$0x1] }
  0x2d   : > { %v254_v36 = vor.u32 %v253_v26, %v250_v25  ;;  %v264_v40 = vrot.slane %v262_v28, 4  ;;  %v386_v44 = vshll.u32 %v823_v15, 16  ;;  %v400_v48 = vshll.u32 %v824_v23, 16 }
  0x2e   : > { %v302_v50 = vsel %vm1103_vm2, %v297_v31, %v301_v22  ;;  %v267_v51 = vrot.slane %v265_v33, 5  ;;  %v273_v54 = vrot.slane %v271_v34, 5  ;;  %v330_v55 = vshll.u32 %v819_v24, 16 }
  0x2f   : > { %v834_v56 = vcombine.low %v288_v30, %v302_v50  ;;  %v255_v59 = vrot.slane %v254_v36, 4  ;;  %v388_v60 = vrot.slane %v386_v44, 5  ;;  %v402_v0 = vrot.slane %v400_v48, 5 }
  0x30   : > { %v268_v1 = vor.u32 %v267_v51, %v264_v40  ;;  %v332_v2 = vrot.slane %v330_v55, 5  ;;  %v344_v3 = vshll.u32 %v820_v29, 16  ;;  %v411_v6 = vor.u32 %v1051_v39, %v1049_v38 }
  0x31   : > { %470 = vrot.lane.b32.xlu1 %v834_v56, %s984_s4  ;;  %v260_v8 = vsel %vm1103_vm2, %v255_v59, %v259_v27  ;;  %v389_v9 = vsel %vm1103_vm2, %v1056_v42, %v388_v60  ;;  %v403_v10 = vsel %vm1103_vm2, %v1047_v37, %v402_v0  ;;  %v414_v11 = vshll.u32 %v825_v35, 16 }
  0x32   : > { %v269_v13 = vrot.slane %v268_v1, 4  ;;  %v841_v38 = vcombine.low %v389_v9, %v403_v10  ;;  %v333_v39 = vsel %vm1103_vm2, %v1068_v52, %v332_v2  ;;  %v346_v14 = vrot.slane %v344_v3, 5 }
  0x33   : > { %v412_v15 = vrot.slane %v411_v6, 4  ;;  %v416_v16 = vrot.slane %v414_v11, 5  ;;  %v425_v18 = vor.u32 %v1065_v47, %v1060_v45  ;;  %v428_v42 = vshll.u32 %v826_v5, 16  ;;  %v843_v5 = vld [vmem:[%s1224_s2] ss:$0 sm:$0xff] }
  0x34   : > { %v274_v20 = vsel %vm1103_vm2, %v269_v13, %v273_v54  ;;  %v347_v37 = vsel %vm1103_vm2, %v1058_v43, %v346_v14  ;;  %v355_v22 = vor.u32 %v1074_v58, %v1072_v57  ;;  %v358_v23 = vshll.u32 %v821_v12, 16 }
  0x35   : > { %v833_v52 = vcombine.low %v260_v8, %v274_v20  ;;  %516 = vrot.lane.b32.xlu1 %v841_v38, %s985_s9  ;;  %v839_v24 = vcombine.low %v333_v39, %v347_v37  ;;  %v417_v45 = vsel %vm1103_vm2, %v412_v15, %v416_v16  ;;  %v426_v47 = vrot.slane %v425_v18, 4 }
  0x36   : > { %v430_v25 = vrot.slane %v428_v42, 5  ;;  %v356_v26 = vrot.slane %v355_v22, 4  ;;  %v360_v27 = vrot.slane %v358_v23, 5  ;;  %v369_v28 = vor.u32 %v1083_v63, %v1081_v62 }
  0x37   : > { %468 = vrot.lane.b32.xlu0 %v833_v52, %s984_s4  ;;  %v372_v43 = vshll.u32 %v822_v21, 16  ;;  %v828_v57 = vcombine.low %v1054_v41, %v1063_v46  ;;  %v827_v58 = vcombine.low %v1079_v61, %v1090_v7  ;;  %v830_v29 = vcombine.low %v1096_v17, %v1111_v32 }
  0x38   : > { %v431_v30 = vsel %vm1103_vm2, %v426_v47, %v430_v25  ;;  %v370_v31 = vrot.slane %v369_v28, 4  ;;  %v829_v33 = vcombine.low %v1119_v53, %v1129_v4  ;;  %v361_v63 = vsel %vm1103_vm2, %v356_v26, %v360_v27 }
  0x39   : > { %v842_v62 = vcombine.low %v417_v45, %v431_v30  ;;  %v374_v34 = vrot.slane %v372_v43, 5 }
  0x3b   : > { %512 = vrot.lane.b32.xlu0 %v839_v24, %s985_s9  ;;  %518 = vrot.lane.b32.xlu1 %v842_v62, %s985_s9  ;;  %v375_v41 = vsel %vm1103_vm2, %v370_v31, %v374_v34 }
  0x3c   : > { %v840_v46 = vcombine.low %v361_v63, %v375_v41 }
  0x3f   : > { %514 = vrot.lane.b32.xlu0 %v840_v46, %s985_s9 }
  0x86   : > { %v497_v61 = vpop.permute.xlu1 %496 }
  0x88   : > { %v493_v7 = vpop.permute.xlu0 %492 }
  0x8d   : > { %v499_v17 = vpop.permute.xlu1 %498 }
  0x8f   : > { %v495_v32 = vpop.permute.xlu0 %494 }
  0x9b   : > { %v467_v35 = vpop.permute.xlu1 %466 }
  0x9c   : > { %v526_v59 = vsel %vm520_vm3, %v828_v57, %v467_v35 }
  0x9d   : > { %v537_v2 = vsel %vm533_vm5, %v526_v59, %v495_v32 }
  0x9e   : > { %v465_v36 = vpop.permute.xlu0 %464 }
  0x9f   : > { %v523_v44 = vsel %vm520_vm3, %v827_v58, %v465_v36 }
  0xa0   : > { %v535_v54 = vsel %vm533_vm5, %v523_v44, %v493_v7 }
  0xa3   : > { %v471_v40 = vpop.permute.xlu1 %470 }
  0xa4   : > { %v532_v48 = vsel %vm520_vm3, %v830_v29, %v471_v40 }
  0xa5   : > { %v541_v56 = vsel %vm533_vm5, %v532_v48, %v499_v17 }
  0xa7   : > { %v517_v53 = vpop.permute.xlu1 %516 }
  0xa9   : > { %v469_v4 = vpop.permute.xlu0 %468 }
  0xaa   : > { %v529_v49 = vsel %vm520_vm3, %v829_v33, %v469_v4 }
  0xab   : > { %v539_v50 = vsel %vm533_vm5, %v529_v49, %v497_v61 }
  0xac   : > { %v550_v19 = vsel %vm542_vm4, %v539_v50, %v517_v53 }
  0xad   : > { %v513_v51 = vpop.permute.xlu0 %512  ;;  %895 = vmatprep.mubr.bf16.mxu1 %v550_v19  ;;  %v519_v55 = vpop.permute.xlu1 %518 }
  0xae   : > { %v544_v60 = vsel %vm542_vm4, %v535_v54, %v513_v51  ;;  %v553_v0 = vsel %vm542_vm4, %v541_v56, %v519_v55 }
  0xaf   : > { %891 = vmatprep.mubr.bf16.mxu0 %v544_v60  ;;  %896 = vmatmul.mubr.bf16.vlgmr.msra.gmra.mrb[0].mxu1 %v553_v0 }
  0xb1   : > { %v515_v1 = vpop.permute.xlu0 %514 }
  0xb2   : > { %v547_v3 = vsel %vm542_vm4, %v537_v2, %v515_v1 }
  0xb3   : > { %892 = vmatmul.mubr.bf16.vlgmr.msra.gmra.mrb[0].mxu0 %v547_v3 }
 0x182   : > { %v897_v6 = vpop.f32.mrb[0].mxu1 }
 0x183   : > { %v685_v8 = vadd.f32 %v897_v6, %v843_v5  ;;  %v676_v9 = vpop.f32.mrb[1].mxu1 }
 0x184   : > { %v677_v10 = vadd.f32 %v843_v5, %v676_v9  ;;  %v898_v11 = vpop.f32.mrb[2].mxu1 }
 0x185   : > { %v858_v12 = vmul.f32 -1.442695, %v685_v8  ;;  %v688_v13 = vadd.f32 %v898_v11, %v843_v5  ;;  %v679_v38 = vpop.f32.mrb[3].mxu1 }
 0x186   : > { %v893_v39 = vpop.f32.mrb[0].mxu0  ;;  %v856_v14 = vmul.f32 -1.442695, %v677_v10  ;;  %v680_v15 = vadd.f32 %v843_v5, %v679_v38 }
 0x187   : > { %v669_v16 = vadd.f32 %v893_v39, %v843_v5  ;;  %943 = vpow2.f32 %v858_v12  ;;  %v660_v18 = vpop.f32.mrb[1].mxu0  ;;  %v859_v42 = vmul.f32 -1.442695, %v688_v13 }
 0x188   : > { %v661_v20 = vadd.f32 %v843_v5, %v660_v18  ;;  %945 = vpow2.f32 %v856_v14  ;;  %v894_v37 = vpop.f32.mrb[2].mxu0  ;;  %v857_v21 = vmul.f32 -1.442695, %v680_v15 }
 0x189   : > { %v854_v22 = vmul.f32 -1.442695, %v669_v16  ;;  %v672_v23 = vadd.f32 %v894_v37, %v843_v5  ;;  %947 = vpow2.f32 %v859_v42  ;;  %v663_v52 = vpop.f32.mrb[3].mxu0 }
 0x18a   : > { %v852_v24 = vmul.f32 -1.442695, %v661_v20  ;;  %v664_v45 = vadd.f32 %v843_v5, %v663_v52  ;;  %949 = vpow2.f32 %v857_v21 }
 0x18b   : > { %951 = vpow2.f32 %v854_v22  ;;  %v855_v47 = vmul.f32 -1.442695, %v672_v23 }
 0x18c   : > { %953 = vpow2.f32 %v852_v24  ;;  %v853_v25 = vmul.f32 -1.442695, %v664_v45 }
 0x18d   : > { %955 = vpow2.f32 %v855_v47 }
 0x18e   : > { %957 = vpow2.f32 %v853_v25 }
 0x191   : > { %v944_v26 = vpop.eup %943 }
 0x192   : > { %v946_v27 = vpop.eup %945  ;;  %v721_v28 = vadd.f32 1.0, %v944_v26 }
 0x193   : > { %v948_v43 = vpop.eup %947  ;;  %v719_v57 = vadd.f32 1.0, %v946_v27 }
 0x194   : > { %v950_v58 = vpop.eup %949  ;;  %959 = vrcp.f32 %v721_v28  ;;  %v722_v29 = vadd.f32 1.0, %v948_v43 }
 0x195   : > { %v952_v30 = vpop.eup %951  ;;  %961 = vrcp.f32 %v719_v57  ;;  %v720_v31 = vadd.f32 1.0, %v950_v58 }
 0x196   : > { %v954_v33 = vpop.eup %953  ;;  %v717_v62 = vadd.f32 1.0, %v952_v30  ;;  %963 = vrcp.f32 %v722_v29 }
 0x197   : > { %v956_v63 = vpop.eup %955  ;;  %v715_v34 = vadd.f32 1.0, %v954_v33  ;;  %965 = vrcp.f32 %v720_v31 }
 0x198   : > { %v958_v41 = vpop.eup %957  ;;  %967 = vrcp.f32 %v717_v62  ;;  %v718_v46 = vadd.f32 1.0, %v956_v63 }
 0x199   : > { %969 = vrcp.f32 %v715_v34  ;;  %v716_v61 = vadd.f32 1.0, %v958_v41 }
 0x19a   : > { %971 = vrcp.f32 %v718_v46 }
 0x19b   : > { %973 = vrcp.f32 %v716_v61 }
 0x19e   : > { %v960_v7 = vpop.eup %959 }
 0x19f   : > { %v962_v17 = vpop.eup %961  ;;  %746 = vst.msk [vmem:[%s170_s17 + $0x30] sm:$0xff] %vm739_vm6, %v960_v7 }
 0x1a0   : > { %v964_v32 = vpop.eup %963  ;;  %744 = vst.msk [vmem:[%s170_s17 + $0x20] sm:$0xff] %vm739_vm6, %v962_v17 }
 0x1a1   : > { %v966_v35 = vpop.eup %965  ;;  %747 = vst.msk [vmem:[%s170_s17 + $0x38] sm:$0xff] %vm739_vm6, %v964_v32 }
 0x1a2   : > { %v968_v36 = vpop.eup %967  ;;  %745 = vst.msk [vmem:[%s170_s17 + $0x28] sm:$0xff] %vm739_vm6, %v966_v35 }
 0x1a3   : > { %v970_v40 = vpop.eup %969  ;;  %742 = vst.msk [vmem:[%s170_s17 + $0x10] sm:$0xff] %vm739_vm6, %v968_v36 }
 0x1a4   : > { %v972_v53 = vpop.eup %971  ;;  %740 = vst.msk [vmem:[%s170_s17] sm:$0xff] %vm739_vm6, %v970_v40 }
 0x1a5   : > { %v974_v4 = vpop.eup %973  ;;  %743 = vst.msk [vmem:[%s170_s17 + $0x18] sm:$0xff] %vm739_vm6, %v972_v53 }
 0x1a6   : > { %741 = vst.msk [vmem:[%s170_s17 + $0x8] sm:$0xff] %vm739_vm6, %v974_v4 }
 0x1a7 PF: > { %s13_s12 = sadd.s32 1, %s981_s12  }
 0x1a8   : > { %p10_p4 = scmp.ge.s32.totalorder %s13_s12, 4  }
 0x1aa   :  { %12 = sbr.rel (!%p10_p4) target bundleno = 1 (0x1), region = 63 }

</bundles_post_ra>
